<compile_context>
chip_gen: v7x
topology: tpu7x:2x2x1
jax: 0.10.0
libtpu: 0.0.40
codegen_flags: <defaults>
</compile_context>

<pallas_src>
import functools

import jax
import jax.numpy as jnp
from jax.experimental import pallas as pl
from jax.experimental.pallas import tpu as pltpu

f32 = jnp.float32
bf16 = jnp.bfloat16


# --------------------------------------------------------------------------
# small helpers (glue, plain JAX)
# --------------------------------------------------------------------------
def _round_up(x, m):
    return ((x + m - 1) // m) * m


def _pad_to(x, axis, target):
    size = x.shape[axis]
    if size == target:
        return x
    pad = [(0, 0)] * x.ndim
    pad[axis] = (0, target - size)
    return jnp.pad(x, pad)


def _pick_row_tile(n, unit=16, tmax=512):
    """Row-tile size: aim for >=2 grid steps (v7x dual-TC / pipelining), 16-aligned."""
    if n <= unit:
        return unit
    half = -(-n // 2)
    return min(tmax, _round_up(half, unit))


def _fold_bn(bn, eps=1e-3):
    gamma, beta, mean, var = bn
    scale = gamma / jnp.sqrt(var + eps)
    shift = beta - mean * scale
    return scale, shift


def _extract_patches(x, kh, kw, stride, pad):
    # Only used for the tiny 3-channel stem conv (K = 27).
    # TODO(synk): at real b7 sizes the stem should also be halo-tiled in-kernel.
    B, H, W, C = x.shape
    xp = jnp.pad(x, ((0, 0), (pad, pad), (pad, pad), (0, 0)))
    Ho = (H + 2 * pad - kh) // stride + 1
    Wo = (W + 2 * pad - kw) // stride + 1
    pats = []
    for i in range(kh):
        for j in range(kw):
            pats.append(xp[:, i:i + stride * Ho:stride, j:j + stride * Wo:stride, :])
    return jnp.stack(pats, axis=3), Ho, Wo


def _stride_components(x, s, pad, Ho, Wo, kh, kw):
    """(B,H,W,Cp) -> (B, s*s*Hs, Ws, Cp) polyphase components.

    Every depthwise tap (ki,kj) then becomes a UNIT-STRIDE static slice of one
    component inside the kernel, so there is no kh*kw im2col inflation in HBM.
    """
    B, H, W, Cp = x.shape
    xp = jnp.pad(x, ((0, 0), (pad, pad), (pad, pad), (0, 0)))
    Hs = (kh - 1) // s + Ho
    Ws = (kw - 1) // s + Wo
    comps = []
    for p in range(s):
        for q in range(s):
            c = xp[:, p::s, q::s, :][:, :Hs, :Ws, :]
            c = jnp.pad(c, ((0, 0), (0, Hs - c.shape[1]),
                            (0, Ws - c.shape[2]), (0, 0)))
            comps.append(c)
    xs = jnp.stack(comps, axis=1)                       # (B, s*s, Hs, Ws, Cp)
    return xs.reshape(B, s * s * Hs, Ws, Cp), Hs, Ws


# --------------------------------------------------------------------------
# in-kernel math helpers
# --------------------------------------------------------------------------
def _silu(y):
    # Approx EUP reciprocal is fine for inner activations (cheap, own slot).
    return y * pl.reciprocal(1.0 + jnp.exp(-y), approx=True)


# --------------------------------------------------------------------------
# Pallas kernels
# --------------------------------------------------------------------------
def _mm_bias_act_kernel(a_ref, b_ref, bias_ref, o_ref, *, act):
    # bf16 MXU matmul, f32 accumulate + bias + SiLU epilogue, bf16 store.
    y = jnp.dot(a_ref[...], b_ref[...], preferred_element_type=jnp.float32)
    y = y + bias_ref[...]
    if act == "silu":
        y = _silu(y)
    o_ref[...] = y.astype(o_ref.dtype)


def _dw_se_kernel(x_ref, w_ref, shift_ref, w1_ref, b1_ref, w2_ref, b2_ref,
                  y_ref, gate_ref, *, kh, kw, s, Hs, Ho, Wo):
    # x_ref: (1, s*s*Hs, Ws, Cp) bf16 polyphase components for one batch element
    # w_ref: (kh*kw, 1, 1, Cp) f32 depthwise taps (BN scale folded in)
    # shift_ref: (1, 1, Cp) f32 folded BN shift
    # w1/b1/w2/b2: SE FC weights (lane padded)
    # y_ref: (1, Ho, Wo, Cp) bf16 activated slab; gate_ref: (1, 1, Cp) f32 gate
    xb = x_ref[0].astype(jnp.float32)                   # (s*s*Hs, Ws, Cp)
    wb = w_ref[...]                                     # (kk, 1, 1, Cp)
    acc = None
    for ki in range(kh):
        for kj in range(kw):
            cidx = (ki % s) * s + (kj % s)
            r0 = cidx * Hs + ki // s
            c0 = kj // s
            tap = xb[r0:r0 + Ho, c0:c0 + Wo, :]         # (Ho, Wo, Cp) unit stride
            term = tap * wb[ki * kw + kj]
            acc = term if acc is None else acc + term
    y = _silu(acc + shift_ref[...])
    y_ref[0] = y.astype(y_ref.dtype)

    # Squeeze-excite gate fused here: this grid step owns the whole batch
    # element, so the global pool is complete.  Gate multiply happens in the
    # projection matmul kernel.
    pooled = jnp.sum(jnp.sum(y, axis=0), axis=0, keepdims=True) * (1.0 / (Ho * Wo))
    s1 = jnp.dot(pooled, w1_ref[...], preferred_element_type=jnp.float32) + b1_ref[...]
    s1 = _silu(s1)
    g = jnp.dot(s1, w2_ref[...], preferred_element_type=jnp.float32) + b2_ref[...]
    gate_ref[0] = 1.0 / (1.0 + jnp.exp(-g))             # exact sigmoid for SE gate


def _proj_gate_kernel(a_ref, gate_ref, b_ref, bias_ref, o_ref):
    # SE gate multiply fused into the projection matmul.
    x = a_ref[0].astype(jnp.float32) * gate_ref[0]
    y = jnp.dot(x.astype(jnp.bfloat16), b_ref[...], preferred_element_type=jnp.float32)
    o_ref[0] = (y + bias_ref[...]).astype(o_ref.dtype)


def _proj_gate_res_kernel(a_ref, gate_ref, b_ref, bias_ref, res_ref, o_ref):
    # SE gate + bias + residual add fused into the projection matmul.
    x = a_ref[0].astype(jnp.float32) * gate_ref[0]
    y = jnp.dot(x.astype(jnp.bfloat16), b_ref[...], preferred_element_type=jnp.float32)
    y = y + bias_ref[...] + res_ref[0].astype(jnp.float32)
    o_ref[0] = y.astype(o_ref.dtype)


def _gap_fc_kernel(x_ref, w_ref, bias_ref, o_ref, acc_ref, *, inv_hw):
    # Row-tiled global average pool (reduction grid axis) + final Linear.
    @pl.when(pl.program_id(0) == 0)
    def _():
        acc_ref[...] = jnp.zeros_like(acc_ref)

    acc_ref[...] += jnp.sum(x_ref[...].astype(jnp.float32), axis=1)

    @pl.when(pl.program_id(0) == pl.num_programs(0) - 1)
    def _():
        pooled = acc_ref[...] * inv_hw
        o_ref[...] = (jnp.dot(pooled, w_ref[...],
                              preferred_element_type=jnp.float32) + bias_ref[...])


# --------------------------------------------------------------------------
# fused layer wrappers
# --------------------------------------------------------------------------
def matmul_bias_act(a, bmat, bias, act):
    """act(a @ bmat + bias): a (M,Kp) bf16, bmat (Kp,Np) bf16 (lane padded),
    bias (1,Np) f32 -> (M,Np) bf16 with unmasked 128-lane stores."""
    M, Kp = a.shape
    Np = bmat.shape[1]
    tm = _pick_row_tile(M)
    Mp = _round_up(M, tm)
    ap = _pad_to(a, 0, Mp)
    out = pl.pallas_call(
        functools.partial(_mm_bias_act_kernel, act=act),
        out_shape=jax.ShapeDtypeStruct((Mp, Np), bf16),
        grid=(Mp // tm,),
        in_specs=[pl.BlockSpec((tm, Kp), lambda i: (i, 0)),
                  pl.BlockSpec((Kp, Np), lambda i: (0, 0)),
                  pl.BlockSpec((1, Np), lambda i: (0, 0))],
        out_specs=pl.BlockSpec((tm, Np), lambda i: (i, 0)),
        compiler_params=pltpu.CompilerParams(
            dimension_semantics=("parallel",)),
    )(ap, bmat, bias)
    return out[:M]


def conv1x1_bn_act(x4, w, bn, act="silu"):
    """1x1 conv + folded BN + activation.  x4: (B,H,W,Cp) bf16 lane-padded slab;
    w: (Cout,Cin,1,1).  Output lane-padded to a 128 multiple, bf16."""
    B, H, W, Cp = x4.shape
    Cout, Cin = w.shape[0], w.shape[1]
    Np = _round_up(Cout, 128)
    scale, shift = _fold_bn(bn)
    bmat = (w.reshape(Cout, Cin) * scale[:, None]).T          # (Cin, Cout)
    bmat = _pad_to(_pad_to(bmat, 0, Cp), 1, Np).astype(bf16)  # zero pad rows+cols
    biasp = _pad_to(shift.reshape(1, Cout), 1, Np).astype(f32)
    y = matmul_bias_act(x4.reshape(B * H * W, Cp), bmat, biasp, act)
    return y.reshape(B, H, W, Np)


def conv3x3_bn_act(x, w, bn, stride, pad, act="silu"):
    """Stem KxK conv (im2col, 3 input channels) + folded BN + SiLU."""
    Cout, Cin, kh, kw = w.shape
    Np = _round_up(Cout, 128)
    scale, shift = _fold_bn(bn)
    wf = w * scale[:, None, None, None]
    patches, Ho, Wo = _extract_patches(x, kh, kw, stride, pad)
    B = x.shape[0]
    K = kh * kw * Cin
    Kp = _round_up(K, 128)
    a = _pad_to(patches.reshape(B * Ho * Wo, K), 1, Kp).astype(bf16)
    bmat = jnp.transpose(wf, (2, 3, 1, 0)).reshape(K, Cout)
    bmat = _pad_to(_pad_to(bmat, 0, Kp), 1, Np).astype(bf16)
    biasp = _pad_to(shift.reshape(1, Cout), 1, Np).astype(f32)
    y = matmul_bias_act(a, bmat, biasp, act)
    return y.reshape(B, Ho, Wo, Np)


def depthwise_se_bn_act(x4, w_dw, bn, se_w1, se_b1, se_w2, se_b2, stride, pad):
    """Depthwise conv + folded BN + SiLU + SE gate computation in ONE kernel.

    Returns the activated bf16 slab (B,Ho,Wo,Cp) and the SE gate (B,1,Cp) f32;
    the gate multiply is applied later inside the projection matmul kernel.
    TODO(synk): grid is (B,) with the full spatial extent resident per step; at
    realistic EfficientNet sizes this must be row/halo-tiled with the SE pool
    accumulated across row tiles.
    """
    B, H, W, Cp = x4.shape
    C = w_dw.shape[0]
    kh, kw = w_dw.shape[2], w_dw.shape[3]
    Ho = (H + 2 * pad - kh) // stride + 1
    Wo = (W + 2 * pad - kw) // stride + 1
    xs, Hs, Ws = _stride_components(x4, stride, pad, Ho, Wo, kh, kw)

    scale, shift = _fold_bn(bn)
    wk = (w_dw.reshape(C, kh * kw).T * scale[None, :])        # (kk, C), scale folded
    wk = _pad_to(wk, 1, Cp).reshape(kh * kw, 1, 1, Cp).astype(f32)
    shiftp = _pad_to(shift.reshape(1, 1, C), 2, Cp).astype(f32)

    Cse = se_w1.shape[0]
    Csep = _round_up(Cse, 128)
    w1p = _pad_to(_pad_to(se_w1.T, 0, Cp), 1, Csep).astype(f32)   # (Cp, Csep)
    b1p = _pad_to(se_b1.reshape(1, Cse), 1, Csep).astype(f32)
    w2p = _pad_to(_pad_to(se_w2.T, 0, Csep), 1, Cp).astype(f32)   # (Csep, Cp)
    b2p = _pad_to(se_b2.reshape(1, C), 1, Cp).astype(f32)

    ss = stride * stride
    kernel = functools.partial(_dw_se_kernel, kh=kh, kw=kw, s=stride,
                               Hs=Hs, Ho=Ho, Wo=Wo)
    y4, gate = pl.pallas_call(
        kernel,
        out_shape=(jax.ShapeDtypeStruct((B, Ho, Wo, Cp), bf16),
                   jax.ShapeDtypeStruct((B, 1, Cp), f32)),
        grid=(B,),
        in_specs=[pl.BlockSpec((1, ss * Hs, Ws, Cp), lambda b: (b, 0, 0, 0)),
                  pl.BlockSpec((kh * kw, 1, 1, Cp), lambda b: (0, 0, 0, 0)),
                  pl.BlockSpec((1, 1, Cp), lambda b: (0, 0, 0)),
                  pl.BlockSpec((Cp, Csep), lambda b: (0, 0)),
                  pl.BlockSpec((1, Csep), lambda b: (0, 0)),
                  pl.BlockSpec((Csep, Cp), lambda b: (0, 0)),
                  pl.BlockSpec((1, Cp), lambda b: (0, 0))],
        out_specs=(pl.BlockSpec((1, Ho, Wo, Cp), lambda b: (b, 0, 0, 0)),
                   pl.BlockSpec((1, 1, Cp), lambda b: (b, 0, 0))),
        compiler_params=pltpu.CompilerParams(
            dimension_semantics=("parallel",)),
    )(xs, wk, shiftp, w1p, b1p, w2p, b2p)
    return y4, gate


def gated_proj_bn(y4, gate, w, bn, res=None):
    """Projection 1x1 conv + folded BN with the SE gate multiply (and optional
    residual add) fused into the matmul kernel.  Output (B,Ho,Wo,Np) bf16."""
    B, Ho, Wo, Cp = y4.shape
    Cout, Cin = w.shape[0], w.shape[1]
    Np = _round_up(Cout, 128)
    scale, shift = _fold_bn(bn)
    bmat = (w.reshape(Cout, Cin) * scale[:, None]).T
    bmat = _pad_to(_pad_to(bmat, 0, Cp), 1, Np).astype(bf16)
    biasp = _pad_to(shift.reshape(1, Cout), 1, Np).astype(f32)

    R = Ho * Wo
    tr = _pick_row_tile(R)
    Rp = _round_up(R, tr)
    a = _pad_to(y4.reshape(B, R, Cp), 1, Rp)                  # bf16

    in_specs = [pl.BlockSpec((1, tr, Cp), lambda b, r: (b, r, 0)),
                pl.BlockSpec((1, 1, Cp), lambda b, r: (b, 0, 0)),
                pl.BlockSpec((Cp, Np), lambda b, r: (0, 0)),
                pl.BlockSpec((1, Np), lambda b, r: (0, 0))]
    args = [a, gate, bmat, biasp]
    if res is not None:
        resp = res.reshape(B, R, res.shape[-1]).astype(bf16)
        resp = _pad_to(_pad_to(resp, 2, Np), 1, Rp)           # lane + row padded, bf16
        in_specs.append(pl.BlockSpec((1, tr, Np), lambda b, r: (b, r, 0)))
        args.append(resp)
        kernel = _proj_gate_res_kernel
    else:
        kernel = _proj_gate_kernel

    out = pl.pallas_call(
        kernel,
        out_shape=jax.ShapeDtypeStruct((B, Rp, Np), bf16),
        grid=(B, Rp // tr),
        in_specs=in_specs,
        out_specs=pl.BlockSpec((1, tr, Np), lambda b, r: (b, r, 0)),
        compiler_params=pltpu.CompilerParams(
            dimension_semantics=("parallel", "parallel")),
    )(*args)
    return out[:, :R].reshape(B, Ho, Wo, Np)


def gap_fc(x4, fc_w, fc_b):
    """Row-tiled global average pool (reduction grid) + final Linear."""
    B, H, W, Cp = x4.shape
    class_n = fc_w.shape[0]
    Np = _round_up(class_n, 128)
    HW = H * W
    tr = _pick_row_tile(HW)
    Rp = _round_up(HW, tr)
    x = _pad_to(x4.reshape(B, HW, Cp), 1, Rp)                 # padded rows are zeros
    wt = _pad_to(_pad_to(fc_w.T, 0, Cp), 1, Np).astype(f32)
    bp = _pad_to(fc_b.reshape(1, class_n), 1, Np).astype(f32)
    out = pl.pallas_call(
        functools.partial(_gap_fc_kernel, inv_hw=1.0 / HW),
        out_shape=jax.ShapeDtypeStruct((B, Np), f32),
        grid=(Rp // tr,),
        in_specs=[pl.BlockSpec((B, tr, Cp), lambda r: (0, r, 0)),
                  pl.BlockSpec((Cp, Np), lambda r: (0, 0)),
                  pl.BlockSpec((1, Np), lambda r: (0, 0))],
        out_specs=pl.BlockSpec((B, Np), lambda r: (0, 0)),
        scratch_shapes=[pltpu.VMEM((B, Cp), jnp.float32)],
        compiler_params=pltpu.CompilerParams(
            dimension_semantics=("arbitrary",)),
    )(x, wt, bp)
    return out[:, :class_n]


# --------------------------------------------------------------------------
# model definition (scaled-down EfficientNet-style encoder)
# --------------------------------------------------------------------------
def mbconv(h, p, prefix, expand, stride, cin, cout):
    x_in = h
    if expand != 1:
        h = conv1x1_bn_act(h, p[prefix + "_exp_w"], p[prefix + "_bn0"], act="silu")
    y4, gate = depthwise_se_bn_act(
        h, p[prefix + "_dw_w"], p[prefix + "_bn1"],
        p[prefix + "_se_w1"], p[prefix + "_se_b1"],
        p[prefix + "_se_w2"], p[prefix + "_se_b2"],
        stride=stride, pad=1)
    # TODO(synk): stochastic depth (drop_connect) skipped (inference mode).
    res = x_in if (stride == 1 and cin == cout) else None
    return gated_proj_bn(y4, gate, p[prefix + "_proj_w"], p[prefix + "_bn2"], res=res)


def cnn_encoder_forward(params, x_nchw):
    # NCHW (PyTorch) -> NHWC (kernel layout)
    x = jnp.transpose(x_nchw, (0, 2, 3, 1)).astype(f32)
    h = conv3x3_bn_act(x, params["stem_w"], params["stem_bn"],
                       stride=2, pad=1, act="silu")
    h = mbconv(h, params, "b1", expand=1, stride=1, cin=32, cout=16)
    h = mbconv(h, params, "b2", expand=6, stride=2, cin=16, cout=24)
    h = mbconv(h, params, "b3", expand=6, stride=1, cin=24, cout=24)
    h = conv1x1_bn_act(h, params["head_w"], params["head_bn"], act="silu")
    # TODO(synk): dropout skipped (eval mode => identity).
    return gap_fc(h, params["fc_w"], params["fc_b"])


def init_params(key, class_n=10):
    keys = iter(jax.random.split(key, 128))

    def conv_w(cout, cin, k):
        return 0.1 * jax.random.normal(next(keys), (cout, cin, k, k), f32)

    def dw_w(c, k):
        return 0.1 * jax.random.normal(next(keys), (c, 1, k, k), f32)

    def bn(c):
        return (1.0 + 0.1 * jax.random.normal(next(keys), (c,), f32),   # gamma
                0.1 * jax.random.normal(next(keys), (c,), f32),         # beta
                0.05 * jax.random.normal(next(keys), (c,), f32),        # running_mean
                1.0 + 0.1 * jax.random.uniform(next(keys), (c,), f32))  # running_var

    def se(c_exp, c_se):
        return (0.1 * jax.random.normal(next(keys), (c_se, c_exp), f32),
                0.01 * jax.random.normal(next(keys), (c_se,), f32),
                0.1 * jax.random.normal(next(keys), (c_exp, c_se), f32),
                0.01 * jax.random.normal(next(keys), (c_exp,), f32))

    p = {}
    # stem
    p["stem_w"] = conv_w(32, 3, 3)
    p["stem_bn"] = bn(32)
    # block 1: MBConv1, 32 -> 16, stride 1, no expansion
    p["b1_dw_w"] = dw_w(32, 3)
    p["b1_bn1"] = bn(32)
    p["b1_se_w1"], p["b1_se_b1"], p["b1_se_w2"], p["b1_se_b2"] = se(32, 8)
    p["b1_proj_w"] = conv_w(16, 32, 1)
    p["b1_bn2"] = bn(16)
    # block 2: MBConv6, 16 -> 24, stride 2
    p["b2_exp_w"] = conv_w(96, 16, 1)
    p["b2_bn0"] = bn(96)
    p["b2_dw_w"] = dw_w(96, 3)
    p["b2_bn1"] = bn(96)
    p["b2_se_w1"], p["b2_se_b1"], p["b2_se_w2"], p["b2_se_b2"] = se(96, 4)
    p["b2_proj_w"] = conv_w(24, 96, 1)
    p["b2_bn2"] = bn(24)
    # block 3: MBConv6, 24 -> 24, stride 1 (residual)
    p["b3_exp_w"] = conv_w(144, 24, 1)
    p["b3_bn0"] = bn(144)
    p["b3_dw_w"] = dw_w(144, 3)
    p["b3_bn1"] = bn(144)
    p["b3_se_w1"], p["b3_se_b1"], p["b3_se_w2"], p["b3_se_b2"] = se(144, 6)
    p["b3_proj_w"] = conv_w(24, 144, 1)
    p["b3_bn2"] = bn(24)
    # head conv + classifier
    p["head_w"] = conv_w(128, 24, 1)
    p["head_bn"] = bn(128)
    p["fc_w"] = 0.1 * jax.random.normal(next(keys), (class_n, 128), f32)
    p["fc_b"] = 0.01 * jax.random.normal(next(keys), (class_n,), f32)
    return p


if __name__ == "__main__":
    key = jax.random.PRNGKey(0)
    k_param, k_input = jax.random.split(key)
    class_n = 10
    params = init_params(k_param, class_n=class_n)
    # PyTorch-convention NCHW input: batch=2, 3 channels (RGB), 16x16 spatial.
    x = jax.random.normal(k_input, (2, 3, 16, 16), f32)

    fwd = jax.jit(cnn_encoder_forward)
    logits = fwd(params, x)
    logits = jax.block_until_ready(logits)

    assert logits.shape == (2, class_n), logits.shape
    assert logits.dtype == jnp.float32
    assert bool(jnp.all(jnp.isfinite(logits)))
    print("KERNEL_OK")
</pallas_src>

<mosaic_0001>
module attributes {stable_mosaic.version = 11 : i64} {
  func.func @_mm_bias_act_kernel(%arg0: i32, %arg1: memref<64x128xbf16, #tpu.memory_space<vmem>>, %arg2: memref<128x128xbf16, #tpu.memory_space<vmem>>, %arg3: memref<1x128xf32, #tpu.memory_space<vmem>>, %arg4: memref<64x128xbf16, #tpu.memory_space<vmem>>) attributes {dimension_semantics = [#tpu.dimension_semantics<parallel>], iteration_bounds = array<i64: 2>, scalar_prefetch = 0 : i64, scratch_operands = 0 : i64, tpu.core_type = #tpu.core_type<tc>, window_params = [{transform_indices = @transform_0, window_bounds = array<i64: 64, 128>}, {pipeline_mode = #tpu.pipeline_mode<synchronous>, transform_indices = @transform_1, window_bounds = array<i64: 128, 128>}, {pipeline_mode = #tpu.pipeline_mode<synchronous>, transform_indices = @transform_2, window_bounds = array<i64: 1, 128>}, {transform_indices = @transform_3, window_bounds = array<i64: 64, 128>}]} {
    %c0 = arith.constant 0 : index
    %c0_0 = arith.constant 0 : index
    %0 = vector.load %arg1[%c0, %c0_0] : memref<64x128xbf16, #tpu.memory_space<vmem>>, vector<64x128xbf16>
    %c0_1 = arith.constant 0 : index
    %c0_2 = arith.constant 0 : index
    %1 = vector.load %arg2[%c0_1, %c0_2] : memref<128x128xbf16, #tpu.memory_space<vmem>>, vector<128x128xbf16>
    %cst = arith.constant dense<0.000000e+00> : vector<64x128xf32>
    %2 = tpu.matmul %0, %1, %cst {dimension_numbers = #tpu.dot_dimension_numbers<[1], [0], [0], [1], [0, 0, 1, 1], [], []>} : vector<64x128xbf16>, vector<128x128xbf16>, vector<64x128xf32> -> vector<64x128xf32>
    %c0_3 = arith.constant 0 : index
    %c0_4 = arith.constant 0 : index
    %3 = vector.load %arg3[%c0_3, %c0_4] : memref<1x128xf32, #tpu.memory_space<vmem>>, vector<1x128xf32>
    %4 = vector.broadcast %3 : vector<1x128xf32> to vector<64x128xf32>
    %5 = arith.addf %2, %4 : vector<64x128xf32>
    %cst_5 = arith.constant 0.000000e+00 : f32
    %6 = vector.broadcast %cst_5 : f32 to vector<64x128xf32>
    %7 = arith.subf %6, %5 : vector<64x128xf32>
    %8 = math.exp %7 : vector<64x128xf32>
    %cst_6 = arith.constant 1.000000e+00 : f32
    %9 = vector.broadcast %cst_6 : f32 to vector<64x128xf32>
    %10 = arith.addf %9, %8 : vector<64x128xf32>
    %11 = tpu.reciprocal %10 {approx = true} : vector<64x128xf32> -> vector<64x128xf32>
    %12 = arith.mulf %5, %11 : vector<64x128xf32>
    %13 = arith.truncf %12 : vector<64x128xf32> to vector<64x128xbf16>
    %c0_7 = arith.constant 0 : index
    %c0_8 = arith.constant 0 : index
    %14 = vector.load %arg4[%c0_7, %c0_8] : memref<64x128xbf16, #tpu.memory_space<vmem>>, vector<64x128xbf16>
    tpu.vector_store %arg4[%c0_7, %c0_8], %13 {strides = array<i32>} : memref<64x128xbf16, #tpu.memory_space<vmem>>, vector<64x128xbf16>,
    return
  }
  func.func @transform_0(%arg0: i32) -> (i32, i32) {
    %c0_i32 = arith.constant 0 : i32
    %c0_i32_0 = arith.constant 0 : i32
    return %arg0, %c0_i32 : i32, i32
  }
  func.func @transform_1(%arg0: i32) -> (i32, i32) {
    %c0_i32 = arith.constant 0 : i32
    %c0_i32_0 = arith.constant 0 : i32
    %c0_i32_1 = arith.constant 0 : i32
    return %c0_i32, %c0_i32_0 : i32, i32
  }
  func.func @transform_2(%arg0: i32) -> (i32, i32) {
    %c0_i32 = arith.constant 0 : i32
    %c0_i32_0 = arith.constant 0 : i32
    %c0_i32_1 = arith.constant 0 : i32
    return %c0_i32, %c0_i32_0 : i32, i32
  }
  func.func @transform_3(%arg0: i32) -> (i32, i32) {
    %c0_i32 = arith.constant 0 : i32
    %c0_i32_0 = arith.constant 0 : i32
    return %arg0, %c0_i32 : i32, i32
  }
}

module attributes {stable_mosaic.version = 11 : i64} {
  func.func @_proj_gate_kernel(%arg0: i32, %arg1: i32, %arg2: memref<1x32x128xbf16, #tpu.memory_space<vmem>>, %arg3: memref<1x1x128xf32, #tpu.memory_space<vmem>>, %arg4: memref<128x128xbf16, #tpu.memory_space<vmem>>, %arg5: memref<1x128xf32, #tpu.memory_space<vmem>>, %arg6: memref<1x32x128xbf16, #tpu.memory_space<vmem>>) attributes {dimension_semantics = [#tpu.dimension_semantics<parallel>, #tpu.dimension_semantics<parallel>], iteration_bounds = array<i64: 2, 2>, scalar_prefetch = 0 : i64, scratch_operands = 0 : i64, tpu.core_type = #tpu.core_type<tc>, window_params = [{transform_indices = @transform_0, window_bounds = array<i64: 1, 32, 128>}, {transform_indices = @transform_1, window_bounds = array<i64: 1, 1, 128>}, {pipeline_mode = #tpu.pipeline_mode<synchronous>, transform_indices = @transform_2, window_bounds = array<i64: 128, 128>}, {pipeline_mode = #tpu.pipeline_mode<synchronous>, transform_indices = @transform_3, window_bounds = array<i64: 1, 128>}, {transform_indices = @transform_4, window_bounds = array<i64: 1, 32, 128>}]} {
    %c0 = arith.constant 0 : index
    %c0_0 = arith.constant 0 : index
    %c0_1 = arith.constant 0 : index
    %0 = vector.load %arg2[%c0, %c0_0, %c0_1] : memref<1x32x128xbf16, #tpu.memory_space<vmem>>, vector<1x32x128xbf16>
    %1 = vector.shape_cast %0 : vector<1x32x128xbf16> to vector<32x128xbf16>
    %2 = arith.extf %1 : vector<32x128xbf16> to vector<32x128xf32>
    %c0_2 = arith.constant 0 : index
    %c0_3 = arith.constant 0 : index
    %c0_4 = arith.constant 0 : index
    %3 = vector.load %arg3[%c0_2, %c0_3, %c0_4] : memref<1x1x128xf32, #tpu.memory_space<vmem>>, vector<1x1x128xf32>
    %4 = vector.shape_cast %3 : vector<1x1x128xf32> to vector<1x128xf32>
    %5 = vector.broadcast %4 : vector<1x128xf32> to vector<32x128xf32>
    %6 = arith.mulf %2, %5 : vector<32x128xf32>
    %7 = arith.truncf %6 : vector<32x128xf32> to vector<32x128xbf16>
    %c0_5 = arith.constant 0 : index
    %c0_6 = arith.constant 0 : index
    %8 = vector.load %arg4[%c0_5, %c0_6] : memref<128x128xbf16, #tpu.memory_space<vmem>>, vector<128x128xbf16>
    %cst = arith.constant dense<0.000000e+00> : vector<32x128xf32>
    %9 = tpu.matmul %7, %8, %cst {dimension_numbers = #tpu.dot_dimension_numbers<[1], [0], [0], [1], [0, 0, 1, 1], [], []>} : vector<32x128xbf16>, vector<128x128xbf16>, vector<32x128xf32> -> vector<32x128xf32>
    %c0_7 = arith.constant 0 : index
    %c0_8 = arith.constant 0 : index
    %10 = vector.load %arg5[%c0_7, %c0_8] : memref<1x128xf32, #tpu.memory_space<vmem>>, vector<1x128xf32>
    %11 = vector.broadcast %10 : vector<1x128xf32> to vector<32x128xf32>
    %12 = arith.addf %9, %11 : vector<32x128xf32>
    %13 = arith.truncf %12 : vector<32x128xf32> to vector<32x128xbf16>
    %c0_9 = arith.constant 0 : index
    %c0_10 = arith.constant 0 : index
    %c0_11 = arith.constant 0 : index
    %14 = vector.load %arg6[%c0_9, %c0_10, %c0_11] : memref<1x32x128xbf16, #tpu.memory_space<vmem>>, vector<1x32x128xbf16>
    %15 = vector.shape_cast %14 : vector<1x32x128xbf16> to vector<32x128xbf16>
    %16 = vector.shape_cast %13 : vector<32x128xbf16> to vector<1x32x128xbf16>
    tpu.vector_store %arg6[%c0_9, %c0_10, %c0_11], %16 {strides = array<i32>} : memref<1x32x128xbf16, #tpu.memory_space<vmem>>, vector<1x32x128xbf16>,
    return
  }
  func.func @transform_0(%arg0: i32, %arg1: i32) -> (i32, i32, i32) {
    %c0_i32 = arith.constant 0 : i32
    %c0_i32_0 = arith.constant 0 : i32
    return %arg0, %arg1, %c0_i32 : i32, i32, i32
  }
  func.func @transform_1(%arg0: i32, %arg1: i32) -> (i32, i32, i32) {
    %c0_i32 = arith.constant 0 : i32
    %c0_i32_0 = arith.constant 0 : i32
    %c0_i32_1 = arith.constant 0 : i32
    return %arg0, %c0_i32, %c0_i32_0 : i32, i32, i32
  }
  func.func @transform_2(%arg0: i32, %arg1: i32) -> (i32, i32) {
    %c0_i32 = arith.constant 0 : i32
    %c0_i32_0 = arith.constant 0 : i32
    %c0_i32_1 = arith.constant 0 : i32
    return %c0_i32, %c0_i32_0 : i32, i32
  }
  func.func @transform_3(%arg0: i32, %arg1: i32) -> (i32, i32) {
    %c0_i32 = arith.constant 0 : i32
    %c0_i32_0 = arith.constant 0 : i32
    %c0_i32_1 = arith.constant 0 : i32
    return %c0_i32, %c0_i32_0 : i32, i32
  }
  func.func @transform_4(%arg0: i32, %arg1: i32) -> (i32, i32, i32) {
    %c0_i32 = arith.constant 0 : i32
    %c0_i32_0 = arith.constant 0 : i32
    return %arg0, %arg1, %c0_i32 : i32, i32, i32
  }
}

module attributes {stable_mosaic.version = 11 : i64} {
  func.func @_dw_se_kernel(%arg0: i32, %arg1: memref<1x10x10x128xbf16, #tpu.memory_space<vmem>>, %arg2: memref<9x1x1x128xf32, #tpu.memory_space<vmem>>, %arg3: memref<1x1x128xf32, #tpu.memory_space<vmem>>, %arg4: memref<128x128xf32, #tpu.memory_space<vmem>>, %arg5: memref<1x128xf32, #tpu.memory_space<vmem>>, %arg6: memref<128x128xf32, #tpu.memory_space<vmem>>, %arg7: memref<1x128xf32, #tpu.memory_space<vmem>>, %arg8: memref<1x8x8x128xbf16, #tpu.memory_space<vmem>>, %arg9: memref<1x1x128xf32, #tpu.memory_space<vmem>>) attributes {dimension_semantics = [#tpu.dimension_semantics<parallel>], iteration_bounds = array<i64: 2>, scalar_prefetch = 0 : i64, scratch_operands = 0 : i64, tpu.core_type = #tpu.core_type<tc>, window_params = [{transform_indices = @transform_0, window_bounds = array<i64: 1, 10, 10, 128>}, {pipeline_mode = #tpu.pipeline_mode<synchronous>, transform_indices = @transform_1, window_bounds = array<i64: 9, 1, 1, 128>}, {pipeline_mode = #tpu.pipeline_mode<synchronous>, transform_indices = @transform_2, window_bounds = array<i64: 1, 1, 128>}, {pipeline_mode = #tpu.pipeline_mode<synchronous>, transform_indices = @transform_3, window_bounds = array<i64: 128, 128>}, {pipeline_mode = #tpu.pipeline_mode<synchronous>, transform_indices = @transform_4, window_bounds = array<i64: 1, 128>}, {pipeline_mode = #tpu.pipeline_mode<synchronous>, transform_indices = @transform_5, window_bounds = array<i64: 128, 128>}, {pipeline_mode = #tpu.pipeline_mode<synchronous>, transform_indices = @transform_6, window_bounds = array<i64: 1, 128>}, {transform_indices = @transform_7, window_bounds = array<i64: 1, 8, 8, 128>}, {transform_indices = @transform_8, window_bounds = array<i64: 1, 1, 128>}]} {
    %c0 = arith.constant 0 : index
    %c0_0 = arith.constant 0 : index
    %c0_1 = arith.constant 0 : index
    %c0_2 = arith.constant 0 : index
    %0 = vector.load %arg1[%c0, %c0_0, %c0_1, %c0_2] : memref<1x10x10x128xbf16, #tpu.memory_space<vmem>>, vector<1x10x10x128xbf16>
    %1 = vector.shape_cast %0 : vector<1x10x10x128xbf16> to vector<10x10x128xbf16>
    %2 = arith.extf %1 : vector<10x10x128xbf16> to vector<10x10x128xf32>
    %c0_3 = arith.constant 0 : index
    %c0_4 = arith.constant 0 : index
    %c0_5 = arith.constant 0 : index
    %c0_6 = arith.constant 0 : index
    %3 = vector.load %arg2[%c0_3, %c0_4, %c0_5, %c0_6] : memref<9x1x1x128xf32, #tpu.memory_space<vmem>>, vector<9x1x1x128xf32>
    %4 = vector.extract_strided_slice %2 {offsets = [0, 0, 0], sizes = [8, 8, 128], strides = [1, 1, 1]} : vector<10x10x128xf32> to vector<8x8x128xf32>
    %5 = vector.extract_strided_slice %3 {offsets = [0, 0, 0, 0], sizes = [1, 1, 1, 128], strides = [1, 1, 1, 1]} : vector<9x1x1x128xf32> to vector<1x1x1x128xf32>
    %6 = vector.shape_cast %5 : vector<1x1x1x128xf32> to vector<1x1x128xf32>
    %7 = vector.broadcast %6 : vector<1x1x128xf32> to vector<8x8x128xf32>
    %8 = arith.mulf %4, %7 : vector<8x8x128xf32>
    %9 = vector.extract_strided_slice %2 {offsets = [0, 1, 0], sizes = [8, 8, 128], strides = [1, 1, 1]} : vector<10x10x128xf32> to vector<8x8x128xf32>
    %10 = vector.extract_strided_slice %3 {offsets = [1, 0, 0, 0], sizes = [1, 1, 1, 128], strides = [1, 1, 1, 1]} : vector<9x1x1x128xf32> to vector<1x1x1x128xf32>
    %11 = vector.shape_cast %10 : vector<1x1x1x128xf32> to vector<1x1x128xf32>
    %12 = vector.broadcast %11 : vector<1x1x128xf32> to vector<8x8x128xf32>
    %13 = arith.mulf %9, %12 : vector<8x8x128xf32>
    %14 = arith.addf %8, %13 : vector<8x8x128xf32>
    %15 = vector.extract_strided_slice %2 {offsets = [0, 2, 0], sizes = [8, 8, 128], strides = [1, 1, 1]} : vector<10x10x128xf32> to vector<8x8x128xf32>
    %16 = vector.extract_strided_slice %3 {offsets = [2, 0, 0, 0], sizes = [1, 1, 1, 128], strides = [1, 1, 1, 1]} : vector<9x1x1x128xf32> to vector<1x1x1x128xf32>
    %17 = vector.shape_cast %16 : vector<1x1x1x128xf32> to vector<1x1x128xf32>
    %18 = vector.broadcast %17 : vector<1x1x128xf32> to vector<8x8x128xf32>
    %19 = arith.mulf %15, %18 : vector<8x8x128xf32>
    %20 = arith.addf %14, %19 : vector<8x8x128xf32>
    %21 = vector.extract_strided_slice %2 {offsets = [1, 0, 0], sizes = [8, 8, 128], strides = [1, 1, 1]} : vector<10x10x128xf32> to vector<8x8x128xf32>
    %22 = vector.extract_strided_slice %3 {offsets = [3, 0, 0, 0], sizes = [1, 1, 1, 128], strides = [1, 1, 1, 1]} : vector<9x1x1x128xf32> to vector<1x1x1x128xf32>
    %23 = vector.shape_cast %22 : vector<1x1x1x128xf32> to vector<1x1x128xf32>
    %24 = vector.broadcast %23 : vector<1x1x128xf32> to vector<8x8x128xf32>
    %25 = arith.mulf %21, %24 : vector<8x8x128xf32>
    %26 = arith.addf %20, %25 : vector<8x8x128xf32>
    %27 = vector.extract_strided_slice %2 {offsets = [1, 1, 0], sizes = [8, 8, 128], strides = [1, 1, 1]} : vector<10x10x128xf32> to vector<8x8x128xf32>
    %28 = vector.extract_strided_slice %3 {offsets = [4, 0, 0, 0], sizes = [1, 1, 1, 128], strides = [1, 1, 1, 1]} : vector<9x1x1x128xf32> to vector<1x1x1x128xf32>
    %29 = vector.shape_cast %28 : vector<1x1x1x128xf32> to vector<1x1x128xf32>
    %30 = vector.broadcast %29 : vector<1x1x128xf32> to vector<8x8x128xf32>
    %31 = arith.mulf %27, %30 : vector<8x8x128xf32>
    %32 = arith.addf %26, %31 : vector<8x8x128xf32>
    %33 = vector.extract_strided_slice %2 {offsets = [1, 2, 0], sizes = [8, 8, 128], strides = [1, 1, 1]} : vector<10x10x128xf32> to vector<8x8x128xf32>
    %34 = vector.extract_strided_slice %3 {offsets = [5, 0, 0, 0], sizes = [1, 1, 1, 128], strides = [1, 1, 1, 1]} : vector<9x1x1x128xf32> to vector<1x1x1x128xf32>
    %35 = vector.shape_cast %34 : vector<1x1x1x128xf32> to vector<1x1x128xf32>
    %36 = vector.broadcast %35 : vector<1x1x128xf32> to vector<8x8x128xf32>
    %37 = arith.mulf %33, %36 : vector<8x8x128xf32>
    %38 = arith.addf %32, %37 : vector<8x8x128xf32>
    %39 = vector.extract_strided_slice %2 {offsets = [2, 0, 0], sizes = [8, 8, 128], strides = [1, 1, 1]} : vector<10x10x128xf32> to vector<8x8x128xf32>
    %40 = vector.extract_strided_slice %3 {offsets = [6, 0, 0, 0], sizes = [1, 1, 1, 128], strides = [1, 1, 1, 1]} : vector<9x1x1x128xf32> to vector<1x1x1x128xf32>
    %41 = vector.shape_cast %40 : vector<1x1x1x128xf32> to vector<1x1x128xf32>
    %42 = vector.broadcast %41 : vector<1x1x128xf32> to vector<8x8x128xf32>
    %43 = arith.mulf %39, %42 : vector<8x8x128xf32>
    %44 = arith.addf %38, %43 : vector<8x8x128xf32>
    %45 = vector.extract_strided_slice %2 {offsets = [2, 1, 0], sizes = [8, 8, 128], strides = [1, 1, 1]} : vector<10x10x128xf32> to vector<8x8x128xf32>
    %46 = vector.extract_strided_slice %3 {offsets = [7, 0, 0, 0], sizes = [1, 1, 1, 128], strides = [1, 1, 1, 1]} : vector<9x1x1x128xf32> to vector<1x1x1x128xf32>
    %47 = vector.shape_cast %46 : vector<1x1x1x128xf32> to vector<1x1x128xf32>
    %48 = vector.broadcast %47 : vector<1x1x128xf32> to vector<8x8x128xf32>
    %49 = arith.mulf %45, %48 : vector<8x8x128xf32>
    %50 = arith.addf %44, %49 : vector<8x8x128xf32>
    %51 = vector.extract_strided_slice %2 {offsets = [2, 2, 0], sizes = [8, 8, 128], strides = [1, 1, 1]} : vector<10x10x128xf32> to vector<8x8x128xf32>
    %52 = vector.extract_strided_slice %3 {offsets = [8, 0, 0, 0], sizes = [1, 1, 1, 128], strides = [1, 1, 1, 1]} : vector<9x1x1x128xf32> to vector<1x1x1x128xf32>
    %53 = vector.shape_cast %52 : vector<1x1x1x128xf32> to vector<1x1x128xf32>
    %54 = vector.broadcast %53 : vector<1x1x128xf32> to vector<8x8x128xf32>
    %55 = arith.mulf %51, %54 : vector<8x8x128xf32>
    %56 = arith.addf %50, %55 : vector<8x8x128xf32>
    %c0_7 = arith.constant 0 : index
    %c0_8 = arith.constant 0 : index
    %c0_9 = arith.constant 0 : index
    %57 = vector.load %arg3[%c0_7, %c0_8, %c0_9] : memref<1x1x128xf32, #tpu.memory_space<vmem>>, vector<1x1x128xf32>
    %58 = vector.broadcast %57 : vector<1x1x128xf32> to vector<8x8x128xf32>
    %59 = arith.addf %56, %58 : vector<8x8x128xf32>
    %cst = arith.constant 0.000000e+00 : f32
    %60 = vector.broadcast %cst : f32 to vector<8x8x128xf32>
    %61 = arith.subf %60, %59 : vector<8x8x128xf32>
    %62 = math.exp %61 : vector<8x8x128xf32>
    %cst_10 = arith.constant 1.000000e+00 : f32
    %63 = vector.broadcast %cst_10 : f32 to vector<8x8x128xf32>
    %64 = arith.addf %63, %62 : vector<8x8x128xf32>
    %65 = tpu.reciprocal %64 {approx = true} : vector<8x8x128xf32> -> vector<8x8x128xf32>
    %66 = arith.mulf %59, %65 : vector<8x8x128xf32>
    %67 = arith.truncf %66 : vector<8x8x128xf32> to vector<8x8x128xbf16>
    %c0_11 = arith.constant 0 : index
    %c0_12 = arith.constant 0 : index
    %c0_13 = arith.constant 0 : index
    %c0_14 = arith.constant 0 : index
    %68 = vector.load %arg8[%c0_11, %c0_12, %c0_13, %c0_14] : memref<1x8x8x128xbf16, #tpu.memory_space<vmem>>, vector<1x8x8x128xbf16>
    %69 = vector.shape_cast %68 : vector<1x8x8x128xbf16> to vector<8x8x128xbf16>
    %70 = vector.shape_cast %67 : vector<8x8x128xbf16> to vector<1x8x8x128xbf16>
    tpu.vector_store %arg8[%c0_11, %c0_12, %c0_13, %c0_14], %70 {strides = array<i32>} : memref<1x8x8x128xbf16, #tpu.memory_space<vmem>>, vector<1x8x8x128xbf16>,
    %cst_15 = arith.constant dense<0.000000e+00> : vector<8x128xf32>
    %71 = vector.multi_reduction <add>, %66, %cst_15 [0] : vector<8x8x128xf32> to vector<8x128xf32>
    %cst_16 = arith.constant dense<0.000000e+00> : vector<128xf32>
    %72 = vector.multi_reduction <add>, %71, %cst_16 [0] : vector<8x128xf32> to vector<128xf32>
    %73 = vector.shape_cast %72 : vector<128xf32> to vector<1x128xf32>
    %cst_17 = arith.constant 1.562500e-02 : f32
    %74 = vector.broadcast %cst_17 : f32 to vector<1x128xf32>
    %75 = arith.mulf %73, %74 : vector<1x128xf32>
    %c0_18 = arith.constant 0 : index
    %c0_19 = arith.constant 0 : index
    %76 = vector.load %arg4[%c0_18, %c0_19] : memref<128x128xf32, #tpu.memory_space<vmem>>, vector<128x128xf32>
    %cst_20 = arith.constant dense<0.000000e+00> : vector<1x128xf32>
    %77 = tpu.matmul %75, %76, %cst_20 {dimension_numbers = #tpu.dot_dimension_numbers<[1], [0], [0], [1], [0, 0, 1, 1], [], []>} : vector<1x128xf32>, vector<128x128xf32>, vector<1x128xf32> -> vector<1x128xf32>
    %c0_21 = arith.constant 0 : index
    %c0_22 = arith.constant 0 : index
    %78 = vector.load %arg5[%c0_21, %c0_22] : memref<1x128xf32, #tpu.memory_space<vmem>>, vector<1x128xf32>
    %79 = arith.addf %77, %78 : vector<1x128xf32>
    %cst_23 = arith.constant 0.000000e+00 : f32
    %80 = vector.broadcast %cst_23 : f32 to vector<1x128xf32>
    %81 = arith.subf %80, %79 : vector<1x128xf32>
    %82 = math.exp %81 : vector<1x128xf32>
    %cst_24 = arith.constant 1.000000e+00 : f32
    %83 = vector.broadcast %cst_24 : f32 to vector<1x128xf32>
    %84 = arith.addf %83, %82 : vector<1x128xf32>
    %85 = tpu.reciprocal %84 {approx = true} : vector<1x128xf32> -> vector<1x128xf32>
    %86 = arith.mulf %79, %85 : vector<1x128xf32>
    %c0_25 = arith.constant 0 : index
    %c0_26 = arith.constant 0 : index
    %87 = vector.load %arg6[%c0_25, %c0_26] : memref<128x128xf32, #tpu.memory_space<vmem>>, vector<128x128xf32>
    %cst_27 = arith.constant dense<0.000000e+00> : vector<1x128xf32>
    %88 = tpu.matmul %86, %87, %cst_27 {dimension_numbers = #tpu.dot_dimension_numbers<[1], [0], [0], [1], [0, 0, 1, 1], [], []>} : vector<1x128xf32>, vector<128x128xf32>, vector<1x128xf32> -> vector<1x128xf32>
    %c0_28 = arith.constant 0 : index
    %c0_29 = arith.constant 0 : index
    %89 = vector.load %arg7[%c0_28, %c0_29] : memref<1x128xf32, #tpu.memory_space<vmem>>, vector<1x128xf32>
    %90 = arith.addf %88, %89 : vector<1x128xf32>
    %cst_30 = arith.constant 0.000000e+00 : f32
    %91 = vector.broadcast %cst_30 : f32 to vector<1x128xf32>
    %92 = arith.subf %91, %90 : vector<1x128xf32>
    %93 = math.exp %92 : vector<1x128xf32>
    %cst_31 = arith.constant 1.000000e+00 : f32
    %94 = vector.broadcast %cst_31 : f32 to vector<1x128xf32>
    %95 = arith.addf %94, %93 : vector<1x128xf32>
    %cst_32 = arith.constant 1.000000e+00 : f32
    %96 = vector.broadcast %cst_32 : f32 to vector<1x128xf32>
    %97 = arith.divf %96, %95 : vector<1x128xf32>
    %c0_33 = arith.constant 0 : index
    %c0_34 = arith.constant 0 : index
    %c0_35 = arith.constant 0 : index
    %98 = vector.load %arg9[%c0_33, %c0_34, %c0_35] : memref<1x1x128xf32, #tpu.memory_space<vmem>>, vector<1x1x128xf32>
    %99 = vector.shape_cast %98 : vector<1x1x128xf32> to vector<1x128xf32>
    %100 = vector.shape_cast %97 : vector<1x128xf32> to vector<1x1x128xf32>
    tpu.vector_store %arg9[%c0_33, %c0_34, %c0_35], %100 {strides = array<i32>} : memref<1x1x128xf32, #tpu.memory_space<vmem>>, vector<1x1x128xf32>,
    return
  }
  func.func @transform_0(%arg0: i32) -> (i32, i32, i32, i32) {
    %c0_i32 = arith.constant 0 : i32
    %c0_i32_0 = arith.constant 0 : i32
    %c0_i32_1 = arith.constant 0 : i32
    %c0_i32_2 = arith.constant 0 : i32
    return %arg0, %c0_i32, %c0_i32_0, %c0_i32_1 : i32, i32, i32, i32
  }
  func.func @transform_1(%arg0: i32) -> (i32, i32, i32, i32) {
    %c0_i32 = arith.constant 0 : i32
    %c0_i32_0 = arith.constant 0 : i32
    %c0_i32_1 = arith.constant 0 : i32
    %c0_i32_2 = arith.constant 0 : i32
    %c0_i32_3 = arith.constant 0 : i32
    return %c0_i32, %c0_i32_0, %c0_i32_1, %c0_i32_2 : i32, i32, i32, i32
  }
  func.func @transform_2(%arg0: i32) -> (i32, i32, i32) {
    %c0_i32 = arith.constant 0 : i32
    %c0_i32_0 = arith.constant 0 : i32
    %c0_i32_1 = arith.constant 0 : i32
    %c0_i32_2 = arith.constant 0 : i32
    return %c0_i32, %c0_i32_0, %c0_i32_1 : i32, i32, i32
  }
  func.func @transform_3(%arg0: i32) -> (i32, i32) {
    %c0_i32 = arith.constant 0 : i32
    %c0_i32_0 = arith.constant 0 : i32
    %c0_i32_1 = arith.constant 0 : i32
    return %c0_i32, %c0_i32_0 : i32, i32
  }
  func.func @transform_4(%arg0: i32) -> (i32, i32) {
    %c0_i32 = arith.constant 0 : i32
    %c0_i32_0 = arith.constant 0 : i32
    %c0_i32_1 = arith.constant 0 : i32
    return %c0_i32, %c0_i32_0 : i32, i32
  }
  func.func @transform_5(%arg0: i32) -> (i32, i32) {
    %c0_i32 = arith.constant 0 : i32
    %c0_i32_0 = arith.constant 0 : i32
    %c0_i32_1 = arith.constant 0 : i32
    return %c0_i32, %c0_i32_0 : i32, i32
  }
  func.func @transform_6(%arg0: i32) -> (i32, i32) {
    %c0_i32 = arith.constant 0 : i32
    %c0_i32_0 = arith.constant 0 : i32
    %c0_i32_1 = arith.constant 0 : i32
    return %c0_i32, %c0_i32_0 : i32, i32
  }
  func.func @transform_7(%arg0: i32) -> (i32, i32, i32, i32) {
    %c0_i32 = arith.constant 0 : i32
    %c0_i32_0 = arith.constant 0 : i32
    %c0_i32_1 = arith.constant 0 : i32
    %c0_i32_2 = arith.constant 0 : i32
    return %arg0, %c0_i32, %c0_i32_0, %c0_i32_1 : i32, i32, i32, i32
  }
  func.func @transform_8(%arg0: i32) -> (i32, i32, i32) {
    %c0_i32 = arith.constant 0 : i32
    %c0_i32_0 = arith.constant 0 : i32
    %c0_i32_1 = arith.constant 0 : i32
    return %arg0, %c0_i32, %c0_i32_0 : i32, i32, i32
  }
}

module attributes {stable_mosaic.version = 11 : i64} {
  func.func @_dw_se_kernel(%arg0: i32, %arg1: memref<1x20x5x128xbf16, #tpu.memory_space<vmem>>, %arg2: memref<9x1x1x128xf32, #tpu.memory_space<vmem>>, %arg3: memref<1x1x128xf32, #tpu.memory_space<vmem>>, %arg4: memref<128x128xf32, #tpu.memory_space<vmem>>, %arg5: memref<1x128xf32, #tpu.memory_space<vmem>>, %arg6: memref<128x128xf32, #tpu.memory_space<vmem>>, %arg7: memref<1x128xf32, #tpu.memory_space<vmem>>, %arg8: memref<1x4x4x128xbf16, #tpu.memory_space<vmem>>, %arg9: memref<1x1x128xf32, #tpu.memory_space<vmem>>) attributes {dimension_semantics = [#tpu.dimension_semantics<parallel>], iteration_bounds = array<i64: 2>, scalar_prefetch = 0 : i64, scratch_operands = 0 : i64, tpu.core_type = #tpu.core_type<tc>, window_params = [{transform_indices = @transform_0, window_bounds = array<i64: 1, 20, 5, 128>}, {pipeline_mode = #tpu.pipeline_mode<synchronous>, transform_indices = @transform_1, window_bounds = array<i64: 9, 1, 1, 128>}, {pipeline_mode = #tpu.pipeline_mode<synchronous>, transform_indices = @transform_2, window_bounds = array<i64: 1, 1, 128>}, {pipeline_mode = #tpu.pipeline_mode<synchronous>, transform_indices = @transform_3, window_bounds = array<i64: 128, 128>}, {pipeline_mode = #tpu.pipeline_mode<synchronous>, transform_indices = @transform_4, window_bounds = array<i64: 1, 128>}, {pipeline_mode = #tpu.pipeline_mode<synchronous>, transform_indices = @transform_5, window_bounds = array<i64: 128, 128>}, {pipeline_mode = #tpu.pipeline_mode<synchronous>, transform_indices = @transform_6, window_bounds = array<i64: 1, 128>}, {transform_indices = @transform_7, window_bounds = array<i64: 1, 4, 4, 128>}, {transform_indices = @transform_8, window_bounds = array<i64: 1, 1, 128>}]} {
    %c0 = arith.constant 0 : index
    %c0_0 = arith.constant 0 : index
    %c0_1 = arith.constant 0 : index
    %c0_2 = arith.constant 0 : index
    %0 = vector.load %arg1[%c0, %c0_0, %c0_1, %c0_2] : memref<1x20x5x128xbf16, #tpu.memory_space<vmem>>, vector<1x20x5x128xbf16>
    %1 = vector.shape_cast %0 : vector<1x20x5x128xbf16> to vector<20x5x128xbf16>
    %2 = arith.extf %1 : vector<20x5x128xbf16> to vector<20x5x128xf32>
    %c0_3 = arith.constant 0 : index
    %c0_4 = arith.constant 0 : index
    %c0_5 = arith.constant 0 : index
    %c0_6 = arith.constant 0 : index
    %3 = vector.load %arg2[%c0_3, %c0_4, %c0_5, %c0_6] : memref<9x1x1x128xf32, #tpu.memory_space<vmem>>, vector<9x1x1x128xf32>
    %4 = vector.extract_strided_slice %2 {offsets = [0, 0, 0], sizes = [4, 4, 128], strides = [1, 1, 1]} : vector<20x5x128xf32> to vector<4x4x128xf32>
    %5 = vector.extract_strided_slice %3 {offsets = [0, 0, 0, 0], sizes = [1, 1, 1, 128], strides = [1, 1, 1, 1]} : vector<9x1x1x128xf32> to vector<1x1x1x128xf32>
    %6 = vector.shape_cast %5 : vector<1x1x1x128xf32> to vector<1x1x128xf32>
    %7 = vector.broadcast %6 : vector<1x1x128xf32> to vector<4x4x128xf32>
    %8 = arith.mulf %4, %7 : vector<4x4x128xf32>
    %9 = vector.extract_strided_slice %2 {offsets = [5, 0, 0], sizes = [4, 4, 128], strides = [1, 1, 1]} : vector<20x5x128xf32> to vector<4x4x128xf32>
    %10 = vector.extract_strided_slice %3 {offsets = [1, 0, 0, 0], sizes = [1, 1, 1, 128], strides = [1, 1, 1, 1]} : vector<9x1x1x128xf32> to vector<1x1x1x128xf32>
    %11 = vector.shape_cast %10 : vector<1x1x1x128xf32> to vector<1x1x128xf32>
    %12 = vector.broadcast %11 : vector<1x1x128xf32> to vector<4x4x128xf32>
    %13 = arith.mulf %9, %12 : vector<4x4x128xf32>
    %14 = arith.addf %8, %13 : vector<4x4x128xf32>
    %15 = vector.extract_strided_slice %2 {offsets = [0, 1, 0], sizes = [4, 4, 128], strides = [1, 1, 1]} : vector<20x5x128xf32> to vector<4x4x128xf32>
    %16 = vector.extract_strided_slice %3 {offsets = [2, 0, 0, 0], sizes = [1, 1, 1, 128], strides = [1, 1, 1, 1]} : vector<9x1x1x128xf32> to vector<1x1x1x128xf32>
    %17 = vector.shape_cast %16 : vector<1x1x1x128xf32> to vector<1x1x128xf32>
    %18 = vector.broadcast %17 : vector<1x1x128xf32> to vector<4x4x128xf32>
    %19 = arith.mulf %15, %18 : vector<4x4x128xf32>
    %20 = arith.addf %14, %19 : vector<4x4x128xf32>
    %21 = vector.extract_strided_slice %2 {offsets = [10, 0, 0], sizes = [4, 4, 128], strides = [1, 1, 1]} : vector<20x5x128xf32> to vector<4x4x128xf32>
    %22 = vector.extract_strided_slice %3 {offsets = [3, 0, 0, 0], sizes = [1, 1, 1, 128], strides = [1, 1, 1, 1]} : vector<9x1x1x128xf32> to vector<1x1x1x128xf32>
    %23 = vector.shape_cast %22 : vector<1x1x1x128xf32> to vector<1x1x128xf32>
    %24 = vector.broadcast %23 : vector<1x1x128xf32> to vector<4x4x128xf32>
    %25 = arith.mulf %21, %24 : vector<4x4x128xf32>
    %26 = arith.addf %20, %25 : vector<4x4x128xf32>
    %27 = vector.extract_strided_slice %2 {offsets = [15, 0, 0], sizes = [4, 4, 128], strides = [1, 1, 1]} : vector<20x5x128xf32> to vector<4x4x128xf32>
    %28 = vector.extract_strided_slice %3 {offsets = [4, 0, 0, 0], sizes = [1, 1, 1, 128], strides = [1, 1, 1, 1]} : vector<9x1x1x128xf32> to vector<1x1x1x128xf32>
    %29 = vector.shape_cast %28 : vector<1x1x1x128xf32> to vector<1x1x128xf32>
    %30 = vector.broadcast %29 : vector<1x1x128xf32> to vector<4x4x128xf32>
    %31 = arith.mulf %27, %30 : vector<4x4x128xf32>
    %32 = arith.addf %26, %31 : vector<4x4x128xf32>
    %33 = vector.extract_strided_slice %2 {offsets = [10, 1, 0], sizes = [4, 4, 128], strides = [1, 1, 1]} : vector<20x5x128xf32> to vector<4x4x128xf32>
    %34 = vector.extract_strided_slice %3 {offsets = [5, 0, 0, 0], sizes = [1, 1, 1, 128], strides = [1, 1, 1, 1]} : vector<9x1x1x128xf32> to vector<1x1x1x128xf32>
    %35 = vector.shape_cast %34 : vector<1x1x1x128xf32> to vector<1x1x128xf32>
    %36 = vector.broadcast %35 : vector<1x1x128xf32> to vector<4x4x128xf32>
    %37 = arith.mulf %33, %36 : vector<4x4x128xf32>
    %38 = arith.addf %32, %37 : vector<4x4x128xf32>
    %39 = vector.extract_strided_slice %2 {offsets = [1, 0, 0], sizes = [4, 4, 128], strides = [1, 1, 1]} : vector<20x5x128xf32> to vector<4x4x128xf32>
    %40 = vector.extract_strided_slice %3 {offsets = [6, 0, 0, 0], sizes = [1, 1, 1, 128], strides = [1, 1, 1, 1]} : vector<9x1x1x128xf32> to vector<1x1x1x128xf32>
    %41 = vector.shape_cast %40 : vector<1x1x1x128xf32> to vector<1x1x128xf32>
    %42 = vector.broadcast %41 : vector<1x1x128xf32> to vector<4x4x128xf32>
    %43 = arith.mulf %39, %42 : vector<4x4x128xf32>
    %44 = arith.addf %38, %43 : vector<4x4x128xf32>
    %45 = vector.extract_strided_slice %2 {offsets = [6, 0, 0], sizes = [4, 4, 128], strides = [1, 1, 1]} : vector<20x5x128xf32> to vector<4x4x128xf32>
    %46 = vector.extract_strided_slice %3 {offsets = [7, 0, 0, 0], sizes = [1, 1, 1, 128], strides = [1, 1, 1, 1]} : vector<9x1x1x128xf32> to vector<1x1x1x128xf32>
    %47 = vector.shape_cast %46 : vector<1x1x1x128xf32> to vector<1x1x128xf32>
    %48 = vector.broadcast %47 : vector<1x1x128xf32> to vector<4x4x128xf32>
    %49 = arith.mulf %45, %48 : vector<4x4x128xf32>
    %50 = arith.addf %44, %49 : vector<4x4x128xf32>
    %51 = vector.extract_strided_slice %2 {offsets = [1, 1, 0], sizes = [4, 4, 128], strides = [1, 1, 1]} : vector<20x5x128xf32> to vector<4x4x128xf32>
    %52 = vector.extract_strided_slice %3 {offsets = [8, 0, 0, 0], sizes = [1, 1, 1, 128], strides = [1, 1, 1, 1]} : vector<9x1x1x128xf32> to vector<1x1x1x128xf32>
    %53 = vector.shape_cast %52 : vector<1x1x1x128xf32> to vector<1x1x128xf32>
    %54 = vector.broadcast %53 : vector<1x1x128xf32> to vector<4x4x128xf32>
    %55 = arith.mulf %51, %54 : vector<4x4x128xf32>
    %56 = arith.addf %50, %55 : vector<4x4x128xf32>
    %c0_7 = arith.constant 0 : index
    %c0_8 = arith.constant 0 : index
    %c0_9 = arith.constant 0 : index
    %57 = vector.load %arg3[%c0_7, %c0_8, %c0_9] : memref<1x1x128xf32, #tpu.memory_space<vmem>>, vector<1x1x128xf32>
    %58 = vector.broadcast %57 : vector<1x1x128xf32> to vector<4x4x128xf32>
    %59 = arith.addf %56, %58 : vector<4x4x128xf32>
    %cst = arith.constant 0.000000e+00 : f32
    %60 = vector.broadcast %cst : f32 to vector<4x4x128xf32>
    %61 = arith.subf %60, %59 : vector<4x4x128xf32>
    %62 = math.exp %61 : vector<4x4x128xf32>
    %cst_10 = arith.constant 1.000000e+00 : f32
    %63 = vector.broadcast %cst_10 : f32 to vector<4x4x128xf32>
    %64 = arith.addf %63, %62 : vector<4x4x128xf32>
    %65 = tpu.reciprocal %64 {approx = true} : vector<4x4x128xf32> -> vector<4x4x128xf32>
    %66 = arith.mulf %59, %65 : vector<4x4x128xf32>
    %67 = arith.truncf %66 : vector<4x4x128xf32> to vector<4x4x128xbf16>
    %c0_11 = arith.constant 0 : index
    %c0_12 = arith.constant 0 : index
    %c0_13 = arith.constant 0 : index
    %c0_14 = arith.constant 0 : index
    %68 = vector.load %arg8[%c0_11, %c0_12, %c0_13, %c0_14] : memref<1x4x4x128xbf16, #tpu.memory_space<vmem>>, vector<1x4x4x128xbf16>
    %69 = vector.shape_cast %68 : vector<1x4x4x128xbf16> to vector<4x4x128xbf16>
    %70 = vector.shape_cast %67 : vector<4x4x128xbf16> to vector<1x4x4x128xbf16>
    tpu.vector_store %arg8[%c0_11, %c0_12, %c0_13, %c0_14], %70 {strides = array<i32>} : memref<1x4x4x128xbf16, #tpu.memory_space<vmem>>, vector<1x4x4x128xbf16>,
    %cst_15 = arith.constant dense<0.000000e+00> : vector<4x128xf32>
    %71 = vector.multi_reduction <add>, %66, %cst_15 [0] : vector<4x4x128xf32> to vector<4x128xf32>
    %cst_16 = arith.constant dense<0.000000e+00> : vector<128xf32>
    %72 = vector.multi_reduction <add>, %71, %cst_16 [0] : vector<4x128xf32> to vector<128xf32>
    %73 = vector.shape_cast %72 : vector<128xf32> to vector<1x128xf32>
    %cst_17 = arith.constant 6.250000e-02 : f32
    %74 = vector.broadcast %cst_17 : f32 to vector<1x128xf32>
    %75 = arith.mulf %73, %74 : vector<1x128xf32>
    %c0_18 = arith.constant 0 : index
    %c0_19 = arith.constant 0 : index
    %76 = vector.load %arg4[%c0_18, %c0_19] : memref<128x128xf32, #tpu.memory_space<vmem>>, vector<128x128xf32>
    %cst_20 = arith.constant dense<0.000000e+00> : vector<1x128xf32>
    %77 = tpu.matmul %75, %76, %cst_20 {dimension_numbers = #tpu.dot_dimension_numbers<[1], [0], [0], [1], [0, 0, 1, 1], [], []>} : vector<1x128xf32>, vector<128x128xf32>, vector<1x128xf32> -> vector<1x128xf32>
    %c0_21 = arith.constant 0 : index
    %c0_22 = arith.constant 0 : index
    %78 = vector.load %arg5[%c0_21, %c0_22] : memref<1x128xf32, #tpu.memory_space<vmem>>, vector<1x128xf32>
    %79 = arith.addf %77, %78 : vector<1x128xf32>
    %cst_23 = arith.constant 0.000000e+00 : f32
    %80 = vector.broadcast %cst_23 : f32 to vector<1x128xf32>
    %81 = arith.subf %80, %79 : vector<1x128xf32>
    %82 = math.exp %81 : vector<1x128xf32>
    %cst_24 = arith.constant 1.000000e+00 : f32
    %83 = vector.broadcast %cst_24 : f32 to vector<1x128xf32>
    %84 = arith.addf %83, %82 : vector<1x128xf32>
    %85 = tpu.reciprocal %84 {approx = true} : vector<1x128xf32> -> vector<1x128xf32>
    %86 = arith.mulf %79, %85 : vector<1x128xf32>
    %c0_25 = arith.constant 0 : index
    %c0_26 = arith.constant 0 : index
    %87 = vector.load %arg6[%c0_25, %c0_26] : memref<128x128xf32, #tpu.memory_space<vmem>>, vector<128x128xf32>
    %cst_27 = arith.constant dense<0.000000e+00> : vector<1x128xf32>
    %88 = tpu.matmul %86, %87, %cst_27 {dimension_numbers = #tpu.dot_dimension_numbers<[1], [0], [0], [1], [0, 0, 1, 1], [], []>} : vector<1x128xf32>, vector<128x128xf32>, vector<1x128xf32> -> vector<1x128xf32>
    %c0_28 = arith.constant 0 : index
    %c0_29 = arith.constant 0 : index
    %89 = vector.load %arg7[%c0_28, %c0_29] : memref<1x128xf32, #tpu.memory_space<vmem>>, vector<1x128xf32>
    %90 = arith.addf %88, %89 : vector<1x128xf32>
    %cst_30 = arith.constant 0.000000e+00 : f32
    %91 = vector.broadcast %cst_30 : f32 to vector<1x128xf32>
    %92 = arith.subf %91, %90 : vector<1x128xf32>
    %93 = math.exp %92 : vector<1x128xf32>
    %cst_31 = arith.constant 1.000000e+00 : f32
    %94 = vector.broadcast %cst_31 : f32 to vector<1x128xf32>
    %95 = arith.addf %94, %93 : vector<1x128xf32>
    %cst_32 = arith.constant 1.000000e+00 : f32
    %96 = vector.broadcast %cst_32 : f32 to vector<1x128xf32>
    %97 = arith.divf %96, %95 : vector<1x128xf32>
    %c0_33 = arith.constant 0 : index
    %c0_34 = arith.constant 0 : index
    %c0_35 = arith.constant 0 : index
    %98 = vector.load %arg9[%c0_33, %c0_34, %c0_35] : memref<1x1x128xf32, #tpu.memory_space<vmem>>, vector<1x1x128xf32>
    %99 = vector.shape_cast %98 : vector<1x1x128xf32> to vector<1x128xf32>
    %100 = vector.shape_cast %97 : vector<1x128xf32> to vector<1x1x128xf32>
    tpu.vector_store %arg9[%c0_33, %c0_34, %c0_35], %100 {strides = array<i32>} : memref<1x1x128xf32, #tpu.memory_space<vmem>>, vector<1x1x128xf32>,
    return
  }
  func.func @transform_0(%arg0: i32) -> (i32, i32, i32, i32) {
    %c0_i32 = arith.constant 0 : i32
    %c0_i32_0 = arith.constant 0 : i32
    %c0_i32_1 = arith.constant 0 : i32
    %c0_i32_2 = arith.constant 0 : i32
    return %arg0, %c0_i32, %c0_i32_0, %c0_i32_1 : i32, i32, i32, i32
  }
  func.func @transform_1(%arg0: i32) -> (i32, i32, i32, i32) {
    %c0_i32 = arith.constant 0 : i32
    %c0_i32_0 = arith.constant 0 : i32
    %c0_i32_1 = arith.constant 0 : i32
    %c0_i32_2 = arith.constant 0 : i32
    %c0_i32_3 = arith.constant 0 : i32
    return %c0_i32, %c0_i32_0, %c0_i32_1, %c0_i32_2 : i32, i32, i32, i32
  }
  func.func @transform_2(%arg0: i32) -> (i32, i32, i32) {
    %c0_i32 = arith.constant 0 : i32
    %c0_i32_0 = arith.constant 0 : i32
    %c0_i32_1 = arith.constant 0 : i32
    %c0_i32_2 = arith.constant 0 : i32
    return %c0_i32, %c0_i32_0, %c0_i32_1 : i32, i32, i32
  }
  func.func @transform_3(%arg0: i32) -> (i32, i32) {
    %c0_i32 = arith.constant 0 : i32
    %c0_i32_0 = arith.constant 0 : i32
    %c0_i32_1 = arith.constant 0 : i32
    return %c0_i32, %c0_i32_0 : i32, i32
  }
  func.func @transform_4(%arg0: i32) -> (i32, i32) {
    %c0_i32 = arith.constant 0 : i32
    %c0_i32_0 = arith.constant 0 : i32
    %c0_i32_1 = arith.constant 0 : i32
    return %c0_i32, %c0_i32_0 : i32, i32
  }
  func.func @transform_5(%arg0: i32) -> (i32, i32) {
    %c0_i32 = arith.constant 0 : i32
    %c0_i32_0 = arith.constant 0 : i32
    %c0_i32_1 = arith.constant 0 : i32
    return %c0_i32, %c0_i32_0 : i32, i32
  }
  func.func @transform_6(%arg0: i32) -> (i32, i32) {
    %c0_i32 = arith.constant 0 : i32
    %c0_i32_0 = arith.constant 0 : i32
    %c0_i32_1 = arith.constant 0 : i32
    return %c0_i32, %c0_i32_0 : i32, i32
  }
  func.func @transform_7(%arg0: i32) -> (i32, i32, i32, i32) {
    %c0_i32 = arith.constant 0 : i32
    %c0_i32_0 = arith.constant 0 : i32
    %c0_i32_1 = arith.constant 0 : i32
    %c0_i32_2 = arith.constant 0 : i32
    return %arg0, %c0_i32, %c0_i32_0, %c0_i32_1 : i32, i32, i32, i32
  }
  func.func @transform_8(%arg0: i32) -> (i32, i32, i32) {
    %c0_i32 = arith.constant 0 : i32
    %c0_i32_0 = arith.constant 0 : i32
    %c0_i32_1 = arith.constant 0 : i32
    return %arg0, %c0_i32, %c0_i32_0 : i32, i32, i32
  }
}

module attributes {stable_mosaic.version = 11 : i64} {
  func.func @_proj_gate_kernel(%arg0: i32, %arg1: i32, %arg2: memref<1x16x128xbf16, #tpu.memory_space<vmem>>, %arg3: memref<1x1x128xf32, #tpu.memory_space<vmem>>, %arg4: memref<128x128xbf16, #tpu.memory_space<vmem>>, %arg5: memref<1x128xf32, #tpu.memory_space<vmem>>, %arg6: memref<1x16x128xbf16, #tpu.memory_space<vmem>>) attributes {dimension_semantics = [#tpu.dimension_semantics<parallel>, #tpu.dimension_semantics<parallel>], iteration_bounds = array<i64: 2, 1>, scalar_prefetch = 0 : i64, scratch_operands = 0 : i64, tpu.core_type = #tpu.core_type<tc>, window_params = [{transform_indices = @transform_0, window_bounds = array<i64: 1, 16, 128>}, {transform_indices = @transform_1, window_bounds = array<i64: 1, 1, 128>}, {pipeline_mode = #tpu.pipeline_mode<synchronous>, transform_indices = @transform_2, window_bounds = array<i64: 128, 128>}, {pipeline_mode = #tpu.pipeline_mode<synchronous>, transform_indices = @transform_3, window_bounds = array<i64: 1, 128>}, {transform_indices = @transform_4, window_bounds = array<i64: 1, 16, 128>}]} {
    %c0 = arith.constant 0 : index
    %c0_0 = arith.constant 0 : index
    %c0_1 = arith.constant 0 : index
    %0 = vector.load %arg2[%c0, %c0_0, %c0_1] : memref<1x16x128xbf16, #tpu.memory_space<vmem>>, vector<1x16x128xbf16>
    %1 = vector.shape_cast %0 : vector<1x16x128xbf16> to vector<16x128xbf16>
    %2 = arith.extf %1 : vector<16x128xbf16> to vector<16x128xf32>
    %c0_2 = arith.constant 0 : index
    %c0_3 = arith.constant 0 : index
    %c0_4 = arith.constant 0 : index
    %3 = vector.load %arg3[%c0_2, %c0_3, %c0_4] : memref<1x1x128xf32, #tpu.memory_space<vmem>>, vector<1x1x128xf32>
    %4 = vector.shape_cast %3 : vector<1x1x128xf32> to vector<1x128xf32>
    %5 = vector.broadcast %4 : vector<1x128xf32> to vector<16x128xf32>
    %6 = arith.mulf %2, %5 : vector<16x128xf32>
    %7 = arith.truncf %6 : vector<16x128xf32> to vector<16x128xbf16>
    %c0_5 = arith.constant 0 : index
    %c0_6 = arith.constant 0 : index
    %8 = vector.load %arg4[%c0_5, %c0_6] : memref<128x128xbf16, #tpu.memory_space<vmem>>, vector<128x128xbf16>
    %cst = arith.constant dense<0.000000e+00> : vector<16x128xf32>
    %9 = tpu.matmul %7, %8, %cst {dimension_numbers = #tpu.dot_dimension_numbers<[1], [0], [0], [1], [0, 0, 1, 1], [], []>} : vector<16x128xbf16>, vector<128x128xbf16>, vector<16x128xf32> -> vector<16x128xf32>
    %c0_7 = arith.constant 0 : index
    %c0_8 = arith.constant 0 : index
    %10 = vector.load %arg5[%c0_7, %c0_8] : memref<1x128xf32, #tpu.memory_space<vmem>>, vector<1x128xf32>
    %11 = vector.broadcast %10 : vector<1x128xf32> to vector<16x128xf32>
    %12 = arith.addf %9, %11 : vector<16x128xf32>
    %13 = arith.truncf %12 : vector<16x128xf32> to vector<16x128xbf16>
    %c0_9 = arith.constant 0 : index
    %c0_10 = arith.constant 0 : index
    %c0_11 = arith.constant 0 : index
    %14 = vector.load %arg6[%c0_9, %c0_10, %c0_11] : memref<1x16x128xbf16, #tpu.memory_space<vmem>>, vector<1x16x128xbf16>
    %15 = vector.shape_cast %14 : vector<1x16x128xbf16> to vector<16x128xbf16>
    %16 = vector.shape_cast %13 : vector<16x128xbf16> to vector<1x16x128xbf16>
    tpu.vector_store %arg6[%c0_9, %c0_10, %c0_11], %16 {strides = array<i32>} : memref<1x16x128xbf16, #tpu.memory_space<vmem>>, vector<1x16x128xbf16>,
    return
  }
  func.func @transform_0(%arg0: i32, %arg1: i32) -> (i32, i32, i32) {
    %c0_i32 = arith.constant 0 : i32
    %c0_i32_0 = arith.constant 0 : i32
    return %arg0, %arg1, %c0_i32 : i32, i32, i32
  }
  func.func @transform_1(%arg0: i32, %arg1: i32) -> (i32, i32, i32) {
    %c0_i32 = arith.constant 0 : i32
    %c0_i32_0 = arith.constant 0 : i32
    %c0_i32_1 = arith.constant 0 : i32
    return %arg0, %c0_i32, %c0_i32_0 : i32, i32, i32
  }
  func.func @transform_2(%arg0: i32, %arg1: i32) -> (i32, i32) {
    %c0_i32 = arith.constant 0 : i32
    %c0_i32_0 = arith.constant 0 : i32
    %c0_i32_1 = arith.constant 0 : i32
    return %c0_i32, %c0_i32_0 : i32, i32
  }
  func.func @transform_3(%arg0: i32, %arg1: i32) -> (i32, i32) {
    %c0_i32 = arith.constant 0 : i32
    %c0_i32_0 = arith.constant 0 : i32
    %c0_i32_1 = arith.constant 0 : i32
    return %c0_i32, %c0_i32_0 : i32, i32
  }
  func.func @transform_4(%arg0: i32, %arg1: i32) -> (i32, i32, i32) {
    %c0_i32 = arith.constant 0 : i32
    %c0_i32_0 = arith.constant 0 : i32
    return %arg0, %arg1, %c0_i32 : i32, i32, i32
  }
}

module attributes {stable_mosaic.version = 11 : i64} {
  func.func @_mm_bias_act_kernel(%arg0: i32, %arg1: memref<16x128xbf16, #tpu.memory_space<vmem>>, %arg2: memref<128x256xbf16, #tpu.memory_space<vmem>>, %arg3: memref<1x256xf32, #tpu.memory_space<vmem>>, %arg4: memref<16x256xbf16, #tpu.memory_space<vmem>>) attributes {dimension_semantics = [#tpu.dimension_semantics<parallel>], iteration_bounds = array<i64: 2>, scalar_prefetch = 0 : i64, scratch_operands = 0 : i64, tpu.core_type = #tpu.core_type<tc>, window_params = [{transform_indices = @transform_0, window_bounds = array<i64: 16, 128>}, {pipeline_mode = #tpu.pipeline_mode<synchronous>, transform_indices = @transform_1, window_bounds = array<i64: 128, 256>}, {pipeline_mode = #tpu.pipeline_mode<synchronous>, transform_indices = @transform_2, window_bounds = array<i64: 1, 256>}, {transform_indices = @transform_3, window_bounds = array<i64: 16, 256>}]} {
    %c0 = arith.constant 0 : index
    %c0_0 = arith.constant 0 : index
    %0 = vector.load %arg1[%c0, %c0_0] : memref<16x128xbf16, #tpu.memory_space<vmem>>, vector<16x128xbf16>
    %c0_1 = arith.constant 0 : index
    %c0_2 = arith.constant 0 : index
    %1 = vector.load %arg2[%c0_1, %c0_2] : memref<128x256xbf16, #tpu.memory_space<vmem>>, vector<128x256xbf16>
    %cst = arith.constant dense<0.000000e+00> : vector<16x256xf32>
    %2 = tpu.matmul %0, %1, %cst {dimension_numbers = #tpu.dot_dimension_numbers<[1], [0], [0], [1], [0, 0, 1, 1], [], []>} : vector<16x128xbf16>, vector<128x256xbf16>, vector<16x256xf32> -> vector<16x256xf32>
    %c0_3 = arith.constant 0 : index
    %c0_4 = arith.constant 0 : index
    %3 = vector.load %arg3[%c0_3, %c0_4] : memref<1x256xf32, #tpu.memory_space<vmem>>, vector<1x256xf32>
    %4 = vector.broadcast %3 : vector<1x256xf32> to vector<16x256xf32>
    %5 = arith.addf %2, %4 : vector<16x256xf32>
    %cst_5 = arith.constant 0.000000e+00 : f32
    %6 = vector.broadcast %cst_5 : f32 to vector<16x256xf32>
    %7 = arith.subf %6, %5 : vector<16x256xf32>
    %8 = math.exp %7 : vector<16x256xf32>
    %cst_6 = arith.constant 1.000000e+00 : f32
    %9 = vector.broadcast %cst_6 : f32 to vector<16x256xf32>
    %10 = arith.addf %9, %8 : vector<16x256xf32>
    %11 = tpu.reciprocal %10 {approx = true} : vector<16x256xf32> -> vector<16x256xf32>
    %12 = arith.mulf %5, %11 : vector<16x256xf32>
    %13 = arith.truncf %12 : vector<16x256xf32> to vector<16x256xbf16>
    %c0_7 = arith.constant 0 : index
    %c0_8 = arith.constant 0 : index
    %14 = vector.load %arg4[%c0_7, %c0_8] : memref<16x256xbf16, #tpu.memory_space<vmem>>, vector<16x256xbf16>
    tpu.vector_store %arg4[%c0_7, %c0_8], %13 {strides = array<i32>} : memref<16x256xbf16, #tpu.memory_space<vmem>>, vector<16x256xbf16>,
    return
  }
  func.func @transform_0(%arg0: i32) -> (i32, i32) {
    %c0_i32 = arith.constant 0 : i32
    %c0_i32_0 = arith.constant 0 : i32
    return %arg0, %c0_i32 : i32, i32
  }
  func.func @transform_1(%arg0: i32) -> (i32, i32) {
    %c0_i32 = arith.constant 0 : i32
    %c0_i32_0 = arith.constant 0 : i32
    %c0_i32_1 = arith.constant 0 : i32
    return %c0_i32, %c0_i32_0 : i32, i32
  }
  func.func @transform_2(%arg0: i32) -> (i32, i32) {
    %c0_i32 = arith.constant 0 : i32
    %c0_i32_0 = arith.constant 0 : i32
    %c0_i32_1 = arith.constant 0 : i32
    return %c0_i32, %c0_i32_0 : i32, i32
  }
  func.func @transform_3(%arg0: i32) -> (i32, i32) {
    %c0_i32 = arith.constant 0 : i32
    %c0_i32_0 = arith.constant 0 : i32
    return %arg0, %c0_i32 : i32, i32
  }
}

module attributes {stable_mosaic.version = 11 : i64} {
  func.func @_dw_se_kernel(%arg0: i32, %arg1: memref<1x6x6x256xbf16, #tpu.memory_space<vmem>>, %arg2: memref<9x1x1x256xf32, #tpu.memory_space<vmem>>, %arg3: memref<1x1x256xf32, #tpu.memory_space<vmem>>, %arg4: memref<256x128xf32, #tpu.memory_space<vmem>>, %arg5: memref<1x128xf32, #tpu.memory_space<vmem>>, %arg6: memref<128x256xf32, #tpu.memory_space<vmem>>, %arg7: memref<1x256xf32, #tpu.memory_space<vmem>>, %arg8: memref<1x4x4x256xbf16, #tpu.memory_space<vmem>>, %arg9: memref<1x1x256xf32, #tpu.memory_space<vmem>>) attributes {dimension_semantics = [#tpu.dimension_semantics<parallel>], iteration_bounds = array<i64: 2>, scalar_prefetch = 0 : i64, scratch_operands = 0 : i64, tpu.core_type = #tpu.core_type<tc>, window_params = [{transform_indices = @transform_0, window_bounds = array<i64: 1, 6, 6, 256>}, {pipeline_mode = #tpu.pipeline_mode<synchronous>, transform_indices = @transform_1, window_bounds = array<i64: 9, 1, 1, 256>}, {pipeline_mode = #tpu.pipeline_mode<synchronous>, transform_indices = @transform_2, window_bounds = array<i64: 1, 1, 256>}, {pipeline_mode = #tpu.pipeline_mode<synchronous>, transform_indices = @transform_3, window_bounds = array<i64: 256, 128>}, {pipeline_mode = #tpu.pipeline_mode<synchronous>, transform_indices = @transform_4, window_bounds = array<i64: 1, 128>}, {pipeline_mode = #tpu.pipeline_mode<synchronous>, transform_indices = @transform_5, window_bounds = array<i64: 128, 256>}, {pipeline_mode = #tpu.pipeline_mode<synchronous>, transform_indices = @transform_6, window_bounds = array<i64: 1, 256>}, {transform_indices = @transform_7, window_bounds = array<i64: 1, 4, 4, 256>}, {transform_indices = @transform_8, window_bounds = array<i64: 1, 1, 256>}]} {
    %c0 = arith.constant 0 : index
    %c0_0 = arith.constant 0 : index
    %c0_1 = arith.constant 0 : index
    %c0_2 = arith.constant 0 : index
    %0 = vector.load %arg1[%c0, %c0_0, %c0_1, %c0_2] : memref<1x6x6x256xbf16, #tpu.memory_space<vmem>>, vector<1x6x6x256xbf16>
    %1 = vector.shape_cast %0 : vector<1x6x6x256xbf16> to vector<6x6x256xbf16>
    %2 = arith.extf %1 : vector<6x6x256xbf16> to vector<6x6x256xf32>
    %c0_3 = arith.constant 0 : index
    %c0_4 = arith.constant 0 : index
    %c0_5 = arith.constant 0 : index
    %c0_6 = arith.constant 0 : index
    %3 = vector.load %arg2[%c0_3, %c0_4, %c0_5, %c0_6] : memref<9x1x1x256xf32, #tpu.memory_space<vmem>>, vector<9x1x1x256xf32>
    %4 = vector.extract_strided_slice %2 {offsets = [0, 0, 0], sizes = [4, 4, 256], strides = [1, 1, 1]} : vector<6x6x256xf32> to vector<4x4x256xf32>
    %5 = vector.extract_strided_slice %3 {offsets = [0, 0, 0, 0], sizes = [1, 1, 1, 256], strides = [1, 1, 1, 1]} : vector<9x1x1x256xf32> to vector<1x1x1x256xf32>
    %6 = vector.shape_cast %5 : vector<1x1x1x256xf32> to vector<1x1x256xf32>
    %7 = vector.broadcast %6 : vector<1x1x256xf32> to vector<4x4x256xf32>
    %8 = arith.mulf %4, %7 : vector<4x4x256xf32>
    %9 = vector.extract_strided_slice %2 {offsets = [0, 1, 0], sizes = [4, 4, 256], strides = [1, 1, 1]} : vector<6x6x256xf32> to vector<4x4x256xf32>
    %10 = vector.extract_strided_slice %3 {offsets = [1, 0, 0, 0], sizes = [1, 1, 1, 256], strides = [1, 1, 1, 1]} : vector<9x1x1x256xf32> to vector<1x1x1x256xf32>
    %11 = vector.shape_cast %10 : vector<1x1x1x256xf32> to vector<1x1x256xf32>
    %12 = vector.broadcast %11 : vector<1x1x256xf32> to vector<4x4x256xf32>
    %13 = arith.mulf %9, %12 : vector<4x4x256xf32>
    %14 = arith.addf %8, %13 : vector<4x4x256xf32>
    %15 = vector.extract_strided_slice %2 {offsets = [0, 2, 0], sizes = [4, 4, 256], strides = [1, 1, 1]} : vector<6x6x256xf32> to vector<4x4x256xf32>
    %16 = vector.extract_strided_slice %3 {offsets = [2, 0, 0, 0], sizes = [1, 1, 1, 256], strides = [1, 1, 1, 1]} : vector<9x1x1x256xf32> to vector<1x1x1x256xf32>
    %17 = vector.shape_cast %16 : vector<1x1x1x256xf32> to vector<1x1x256xf32>
    %18 = vector.broadcast %17 : vector<1x1x256xf32> to vector<4x4x256xf32>
    %19 = arith.mulf %15, %18 : vector<4x4x256xf32>
    %20 = arith.addf %14, %19 : vector<4x4x256xf32>
    %21 = vector.extract_strided_slice %2 {offsets = [1, 0, 0], sizes = [4, 4, 256], strides = [1, 1, 1]} : vector<6x6x256xf32> to vector<4x4x256xf32>
    %22 = vector.extract_strided_slice %3 {offsets = [3, 0, 0, 0], sizes = [1, 1, 1, 256], strides = [1, 1, 1, 1]} : vector<9x1x1x256xf32> to vector<1x1x1x256xf32>
    %23 = vector.shape_cast %22 : vector<1x1x1x256xf32> to vector<1x1x256xf32>
    %24 = vector.broadcast %23 : vector<1x1x256xf32> to vector<4x4x256xf32>
    %25 = arith.mulf %21, %24 : vector<4x4x256xf32>
    %26 = arith.addf %20, %25 : vector<4x4x256xf32>
    %27 = vector.extract_strided_slice %2 {offsets = [1, 1, 0], sizes = [4, 4, 256], strides = [1, 1, 1]} : vector<6x6x256xf32> to vector<4x4x256xf32>
    %28 = vector.extract_strided_slice %3 {offsets = [4, 0, 0, 0], sizes = [1, 1, 1, 256], strides = [1, 1, 1, 1]} : vector<9x1x1x256xf32> to vector<1x1x1x256xf32>
    %29 = vector.shape_cast %28 : vector<1x1x1x256xf32> to vector<1x1x256xf32>
    %30 = vector.broadcast %29 : vector<1x1x256xf32> to vector<4x4x256xf32>
    %31 = arith.mulf %27, %30 : vector<4x4x256xf32>
    %32 = arith.addf %26, %31 : vector<4x4x256xf32>
    %33 = vector.extract_strided_slice %2 {offsets = [1, 2, 0], sizes = [4, 4, 256], strides = [1, 1, 1]} : vector<6x6x256xf32> to vector<4x4x256xf32>
    %34 = vector.extract_strided_slice %3 {offsets = [5, 0, 0, 0], sizes = [1, 1, 1, 256], strides = [1, 1, 1, 1]} : vector<9x1x1x256xf32> to vector<1x1x1x256xf32>
    %35 = vector.shape_cast %34 : vector<1x1x1x256xf32> to vector<1x1x256xf32>
    %36 = vector.broadcast %35 : vector<1x1x256xf32> to vector<4x4x256xf32>
    %37 = arith.mulf %33, %36 : vector<4x4x256xf32>
    %38 = arith.addf %32, %37 : vector<4x4x256xf32>
    %39 = vector.extract_strided_slice %2 {offsets = [2, 0, 0], sizes = [4, 4, 256], strides = [1, 1, 1]} : vector<6x6x256xf32> to vector<4x4x256xf32>
    %40 = vector.extract_strided_slice %3 {offsets = [6, 0, 0, 0], sizes = [1, 1, 1, 256], strides = [1, 1, 1, 1]} : vector<9x1x1x256xf32> to vector<1x1x1x256xf32>
    %41 = vector.shape_cast %40 : vector<1x1x1x256xf32> to vector<1x1x256xf32>
    %42 = vector.broadcast %41 : vector<1x1x256xf32> to vector<4x4x256xf32>
    %43 = arith.mulf %39, %42 : vector<4x4x256xf32>
    %44 = arith.addf %38, %43 : vector<4x4x256xf32>
    %45 = vector.extract_strided_slice %2 {offsets = [2, 1, 0], sizes = [4, 4, 256], strides = [1, 1, 1]} : vector<6x6x256xf32> to vector<4x4x256xf32>
    %46 = vector.extract_strided_slice %3 {offsets = [7, 0, 0, 0], sizes = [1, 1, 1, 256], strides = [1, 1, 1, 1]} : vector<9x1x1x256xf32> to vector<1x1x1x256xf32>
    %47 = vector.shape_cast %46 : vector<1x1x1x256xf32> to vector<1x1x256xf32>
    %48 = vector.broadcast %47 : vector<1x1x256xf32> to vector<4x4x256xf32>
    %49 = arith.mulf %45, %48 : vector<4x4x256xf32>
    %50 = arith.addf %44, %49 : vector<4x4x256xf32>
    %51 = vector.extract_strided_slice %2 {offsets = [2, 2, 0], sizes = [4, 4, 256], strides = [1, 1, 1]} : vector<6x6x256xf32> to vector<4x4x256xf32>
    %52 = vector.extract_strided_slice %3 {offsets = [8, 0, 0, 0], sizes = [1, 1, 1, 256], strides = [1, 1, 1, 1]} : vector<9x1x1x256xf32> to vector<1x1x1x256xf32>
    %53 = vector.shape_cast %52 : vector<1x1x1x256xf32> to vector<1x1x256xf32>
    %54 = vector.broadcast %53 : vector<1x1x256xf32> to vector<4x4x256xf32>
    %55 = arith.mulf %51, %54 : vector<4x4x256xf32>
    %56 = arith.addf %50, %55 : vector<4x4x256xf32>
    %c0_7 = arith.constant 0 : index
    %c0_8 = arith.constant 0 : index
    %c0_9 = arith.constant 0 : index
    %57 = vector.load %arg3[%c0_7, %c0_8, %c0_9] : memref<1x1x256xf32, #tpu.memory_space<vmem>>, vector<1x1x256xf32>
    %58 = vector.broadcast %57 : vector<1x1x256xf32> to vector<4x4x256xf32>
    %59 = arith.addf %56, %58 : vector<4x4x256xf32>
    %cst = arith.constant 0.000000e+00 : f32
    %60 = vector.broadcast %cst : f32 to vector<4x4x256xf32>
    %61 = arith.subf %60, %59 : vector<4x4x256xf32>
    %62 = math.exp %61 : vector<4x4x256xf32>
    %cst_10 = arith.constant 1.000000e+00 : f32
    %63 = vector.broadcast %cst_10 : f32 to vector<4x4x256xf32>
    %64 = arith.addf %63, %62 : vector<4x4x256xf32>
    %65 = tpu.reciprocal %64 {approx = true} : vector<4x4x256xf32> -> vector<4x4x256xf32>
    %66 = arith.mulf %59, %65 : vector<4x4x256xf32>
    %67 = arith.truncf %66 : vector<4x4x256xf32> to vector<4x4x256xbf16>
    %c0_11 = arith.constant 0 : index
    %c0_12 = arith.constant 0 : index
    %c0_13 = arith.constant 0 : index
    %c0_14 = arith.constant 0 : index
    %68 = vector.load %arg8[%c0_11, %c0_12, %c0_13, %c0_14] : memref<1x4x4x256xbf16, #tpu.memory_space<vmem>>, vector<1x4x4x256xbf16>
    %69 = vector.shape_cast %68 : vector<1x4x4x256xbf16> to vector<4x4x256xbf16>
    %70 = vector.shape_cast %67 : vector<4x4x256xbf16> to vector<1x4x4x256xbf16>
    tpu.vector_store %arg8[%c0_11, %c0_12, %c0_13, %c0_14], %70 {strides = array<i32>} : memref<1x4x4x256xbf16, #tpu.memory_space<vmem>>, vector<1x4x4x256xbf16>,
    %cst_15 = arith.constant dense<0.000000e+00> : vector<4x256xf32>
    %71 = vector.multi_reduction <add>, %66, %cst_15 [0] : vector<4x4x256xf32> to vector<4x256xf32>
    %cst_16 = arith.constant dense<0.000000e+00> : vector<256xf32>
    %72 = vector.multi_reduction <add>, %71, %cst_16 [0] : vector<4x256xf32> to vector<256xf32>
    %73 = vector.shape_cast %72 : vector<256xf32> to vector<1x256xf32>
    %cst_17 = arith.constant 6.250000e-02 : f32
    %74 = vector.broadcast %cst_17 : f32 to vector<1x256xf32>
    %75 = arith.mulf %73, %74 : vector<1x256xf32>
    %c0_18 = arith.constant 0 : index
    %c0_19 = arith.constant 0 : index
    %76 = vector.load %arg4[%c0_18, %c0_19] : memref<256x128xf32, #tpu.memory_space<vmem>>, vector<256x128xf32>
    %cst_20 = arith.constant dense<0.000000e+00> : vector<1x128xf32>
    %77 = tpu.matmul %75, %76, %cst_20 {dimension_numbers = #tpu.dot_dimension_numbers<[1], [0], [0], [1], [0, 0, 1, 1], [], []>} : vector<1x256xf32>, vector<256x128xf32>, vector<1x128xf32> -> vector<1x128xf32>
    %c0_21 = arith.constant 0 : index
    %c0_22 = arith.constant 0 : index
    %78 = vector.load %arg5[%c0_21, %c0_22] : memref<1x128xf32, #tpu.memory_space<vmem>>, vector<1x128xf32>
    %79 = arith.addf %77, %78 : vector<1x128xf32>
    %cst_23 = arith.constant 0.000000e+00 : f32
    %80 = vector.broadcast %cst_23 : f32 to vector<1x128xf32>
    %81 = arith.subf %80, %79 : vector<1x128xf32>
    %82 = math.exp %81 : vector<1x128xf32>
    %cst_24 = arith.constant 1.000000e+00 : f32
    %83 = vector.broadcast %cst_24 : f32 to vector<1x128xf32>
    %84 = arith.addf %83, %82 : vector<1x128xf32>
    %85 = tpu.reciprocal %84 {approx = true} : vector<1x128xf32> -> vector<1x128xf32>
    %86 = arith.mulf %79, %85 : vector<1x128xf32>
    %c0_25 = arith.constant 0 : index
    %c0_26 = arith.constant 0 : index
    %87 = vector.load %arg6[%c0_25, %c0_26] : memref<128x256xf32, #tpu.memory_space<vmem>>, vector<128x256xf32>
    %cst_27 = arith.constant dense<0.000000e+00> : vector<1x256xf32>
    %88 = tpu.matmul %86, %87, %cst_27 {dimension_numbers = #tpu.dot_dimension_numbers<[1], [0], [0], [1], [0, 0, 1, 1], [], []>} : vector<1x128xf32>, vector<128x256xf32>, vector<1x256xf32> -> vector<1x256xf32>
    %c0_28 = arith.constant 0 : index
    %c0_29 = arith.constant 0 : index
    %89 = vector.load %arg7[%c0_28, %c0_29] : memref<1x256xf32, #tpu.memory_space<vmem>>, vector<1x256xf32>
    %90 = arith.addf %88, %89 : vector<1x256xf32>
    %cst_30 = arith.constant 0.000000e+00 : f32
    %91 = vector.broadcast %cst_30 : f32 to vector<1x256xf32>
    %92 = arith.subf %91, %90 : vector<1x256xf32>
    %93 = math.exp %92 : vector<1x256xf32>
    %cst_31 = arith.constant 1.000000e+00 : f32
    %94 = vector.broadcast %cst_31 : f32 to vector<1x256xf32>
    %95 = arith.addf %94, %93 : vector<1x256xf32>
    %cst_32 = arith.constant 1.000000e+00 : f32
    %96 = vector.broadcast %cst_32 : f32 to vector<1x256xf32>
    %97 = arith.divf %96, %95 : vector<1x256xf32>
    %c0_33 = arith.constant 0 : index
    %c0_34 = arith.constant 0 : index
    %c0_35 = arith.constant 0 : index
    %98 = vector.load %arg9[%c0_33, %c0_34, %c0_35] : memref<1x1x256xf32, #tpu.memory_space<vmem>>, vector<1x1x256xf32>
    %99 = vector.shape_cast %98 : vector<1x1x256xf32> to vector<1x256xf32>
    %100 = vector.shape_cast %97 : vector<1x256xf32> to vector<1x1x256xf32>
    tpu.vector_store %arg9[%c0_33, %c0_34, %c0_35], %100 {strides = array<i32>} : memref<1x1x256xf32, #tpu.memory_space<vmem>>, vector<1x1x256xf32>,
    return
  }
  func.func @transform_0(%arg0: i32) -> (i32, i32, i32, i32) {
    %c0_i32 = arith.constant 0 : i32
    %c0_i32_0 = arith.constant 0 : i32
    %c0_i32_1 = arith.constant 0 : i32
    %c0_i32_2 = arith.constant 0 : i32
    return %arg0, %c0_i32, %c0_i32_0, %c0_i32_1 : i32, i32, i32, i32
  }
  func.func @transform_1(%arg0: i32) -> (i32, i32, i32, i32) {
    %c0_i32 = arith.constant 0 : i32
    %c0_i32_0 = arith.constant 0 : i32
    %c0_i32_1 = arith.constant 0 : i32
    %c0_i32_2 = arith.constant 0 : i32
    %c0_i32_3 = arith.constant 0 : i32
    return %c0_i32, %c0_i32_0, %c0_i32_1, %c0_i32_2 : i32, i32, i32, i32
  }
  func.func @transform_2(%arg0: i32) -> (i32, i32, i32) {
    %c0_i32 = arith.constant 0 : i32
    %c0_i32_0 = arith.constant 0 : i32
    %c0_i32_1 = arith.constant 0 : i32
    %c0_i32_2 = arith.constant 0 : i32
    return %c0_i32, %c0_i32_0, %c0_i32_1 : i32, i32, i32
  }
  func.func @transform_3(%arg0: i32) -> (i32, i32) {
    %c0_i32 = arith.constant 0 : i32
    %c0_i32_0 = arith.constant 0 : i32
    %c0_i32_1 = arith.constant 0 : i32
    return %c0_i32, %c0_i32_0 : i32, i32
  }
  func.func @transform_4(%arg0: i32) -> (i32, i32) {
    %c0_i32 = arith.constant 0 : i32
    %c0_i32_0 = arith.constant 0 : i32
    %c0_i32_1 = arith.constant 0 : i32
    return %c0_i32, %c0_i32_0 : i32, i32
  }
  func.func @transform_5(%arg0: i32) -> (i32, i32) {
    %c0_i32 = arith.constant 0 : i32
    %c0_i32_0 = arith.constant 0 : i32
    %c0_i32_1 = arith.constant 0 : i32
    return %c0_i32, %c0_i32_0 : i32, i32
  }
  func.func @transform_6(%arg0: i32) -> (i32, i32) {
    %c0_i32 = arith.constant 0 : i32
    %c0_i32_0 = arith.constant 0 : i32
    %c0_i32_1 = arith.constant 0 : i32
    return %c0_i32, %c0_i32_0 : i32, i32
  }
  func.func @transform_7(%arg0: i32) -> (i32, i32, i32, i32) {
    %c0_i32 = arith.constant 0 : i32
    %c0_i32_0 = arith.constant 0 : i32
    %c0_i32_1 = arith.constant 0 : i32
    %c0_i32_2 = arith.constant 0 : i32
    return %arg0, %c0_i32, %c0_i32_0, %c0_i32_1 : i32, i32, i32, i32
  }
  func.func @transform_8(%arg0: i32) -> (i32, i32, i32) {
    %c0_i32 = arith.constant 0 : i32
    %c0_i32_0 = arith.constant 0 : i32
    %c0_i32_1 = arith.constant 0 : i32
    return %arg0, %c0_i32, %c0_i32_0 : i32, i32, i32
  }
}

module attributes {stable_mosaic.version = 11 : i64} {
  func.func @_proj_gate_res_kernel(%arg0: i32, %arg1: i32, %arg2: memref<1x16x256xbf16, #tpu.memory_space<vmem>>, %arg3: memref<1x1x256xf32, #tpu.memory_space<vmem>>, %arg4: memref<256x128xbf16, #tpu.memory_space<vmem>>, %arg5: memref<1x128xf32, #tpu.memory_space<vmem>>, %arg6: memref<1x16x128xbf16, #tpu.memory_space<vmem>>, %arg7: memref<1x16x128xbf16, #tpu.memory_space<vmem>>) attributes {dimension_semantics = [#tpu.dimension_semantics<parallel>, #tpu.dimension_semantics<parallel>], iteration_bounds = array<i64: 2, 1>, scalar_prefetch = 0 : i64, scratch_operands = 0 : i64, tpu.core_type = #tpu.core_type<tc>, window_params = [{transform_indices = @transform_0, window_bounds = array<i64: 1, 16, 256>}, {transform_indices = @transform_1, window_bounds = array<i64: 1, 1, 256>}, {pipeline_mode = #tpu.pipeline_mode<synchronous>, transform_indices = @transform_2, window_bounds = array<i64: 256, 128>}, {pipeline_mode = #tpu.pipeline_mode<synchronous>, transform_indices = @transform_3, window_bounds = array<i64: 1, 128>}, {transform_indices = @transform_4, window_bounds = array<i64: 1, 16, 128>}, {transform_indices = @transform_5, window_bounds = array<i64: 1, 16, 128>}]} {
    %c0 = arith.constant 0 : index
    %c0_0 = arith.constant 0 : index
    %c0_1 = arith.constant 0 : index
    %0 = vector.load %arg2[%c0, %c0_0, %c0_1] : memref<1x16x256xbf16, #tpu.memory_space<vmem>>, vector<1x16x256xbf16>
    %1 = vector.shape_cast %0 : vector<1x16x256xbf16> to vector<16x256xbf16>
    %2 = arith.extf %1 : vector<16x256xbf16> to vector<16x256xf32>
    %c0_2 = arith.constant 0 : index
    %c0_3 = arith.constant 0 : index
    %c0_4 = arith.constant 0 : index
    %3 = vector.load %arg3[%c0_2, %c0_3, %c0_4] : memref<1x1x256xf32, #tpu.memory_space<vmem>>, vector<1x1x256xf32>
    %4 = vector.shape_cast %3 : vector<1x1x256xf32> to vector<1x256xf32>
    %5 = vector.broadcast %4 : vector<1x256xf32> to vector<16x256xf32>
    %6 = arith.mulf %2, %5 : vector<16x256xf32>
    %7 = arith.truncf %6 : vector<16x256xf32> to vector<16x256xbf16>
    %c0_5 = arith.constant 0 : index
    %c0_6 = arith.constant 0 : index
    %8 = vector.load %arg4[%c0_5, %c0_6] : memref<256x128xbf16, #tpu.memory_space<vmem>>, vector<256x128xbf16>
    %cst = arith.constant dense<0.000000e+00> : vector<16x128xf32>
    %9 = tpu.matmul %7, %8, %cst {dimension_numbers = #tpu.dot_dimension_numbers<[1], [0], [0], [1], [0, 0, 1, 1], [], []>} : vector<16x256xbf16>, vector<256x128xbf16>, vector<16x128xf32> -> vector<16x128xf32>
    %c0_7 = arith.constant 0 : index
    %c0_8 = arith.constant 0 : index
    %10 = vector.load %arg5[%c0_7, %c0_8] : memref<1x128xf32, #tpu.memory_space<vmem>>, vector<1x128xf32>
    %11 = vector.broadcast %10 : vector<1x128xf32> to vector<16x128xf32>
    %12 = arith.addf %9, %11 : vector<16x128xf32>
    %c0_9 = arith.constant 0 : index
    %c0_10 = arith.constant 0 : index
    %c0_11 = arith.constant 0 : index
    %13 = vector.load %arg6[%c0_9, %c0_10, %c0_11] : memref<1x16x128xbf16, #tpu.memory_space<vmem>>, vector<1x16x128xbf16>
    %14 = vector.shape_cast %13 : vector<1x16x128xbf16> to vector<16x128xbf16>
    %15 = arith.extf %14 : vector<16x128xbf16> to vector<16x128xf32>
    %16 = arith.addf %12, %15 : vector<16x128xf32>
    %17 = arith.truncf %16 : vector<16x128xf32> to vector<16x128xbf16>
    %c0_12 = arith.constant 0 : index
    %c0_13 = arith.constant 0 : index
    %c0_14 = arith.constant 0 : index
    %18 = vector.load %arg7[%c0_12, %c0_13, %c0_14] : memref<1x16x128xbf16, #tpu.memory_space<vmem>>, vector<1x16x128xbf16>
    %19 = vector.shape_cast %18 : vector<1x16x128xbf16> to vector<16x128xbf16>
    %20 = vector.shape_cast %17 : vector<16x128xbf16> to vector<1x16x128xbf16>
    tpu.vector_store %arg7[%c0_12, %c0_13, %c0_14], %20 {strides = array<i32>} : memref<1x16x128xbf16, #tpu.memory_space<vmem>>, vector<1x16x128xbf16>,
    return
  }
  func.func @transform_0(%arg0: i32, %arg1: i32) -> (i32, i32, i32) {
    %c0_i32 = arith.constant 0 : i32
    %c0_i32_0 = arith.constant 0 : i32
    return %arg0, %arg1, %c0_i32 : i32, i32, i32
  }
  func.func @transform_1(%arg0: i32, %arg1: i32) -> (i32, i32, i32) {
    %c0_i32 = arith.constant 0 : i32
    %c0_i32_0 = arith.constant 0 : i32
    %c0_i32_1 = arith.constant 0 : i32
    return %arg0, %c0_i32, %c0_i32_0 : i32, i32, i32
  }
  func.func @transform_2(%arg0: i32, %arg1: i32) -> (i32, i32) {
    %c0_i32 = arith.constant 0 : i32
    %c0_i32_0 = arith.constant 0 : i32
    %c0_i32_1 = arith.constant 0 : i32
    return %c0_i32, %c0_i32_0 : i32, i32
  }
  func.func @transform_3(%arg0: i32, %arg1: i32) -> (i32, i32) {
    %c0_i32 = arith.constant 0 : i32
    %c0_i32_0 = arith.constant 0 : i32
    %c0_i32_1 = arith.constant 0 : i32
    return %c0_i32, %c0_i32_0 : i32, i32
  }
  func.func @transform_4(%arg0: i32, %arg1: i32) -> (i32, i32, i32) {
    %c0_i32 = arith.constant 0 : i32
    %c0_i32_0 = arith.constant 0 : i32
    return %arg0, %arg1, %c0_i32 : i32, i32, i32
  }
  func.func @transform_5(%arg0: i32, %arg1: i32) -> (i32, i32, i32) {
    %c0_i32 = arith.constant 0 : i32
    %c0_i32_0 = arith.constant 0 : i32
    return %arg0, %arg1, %c0_i32 : i32, i32, i32
  }
}

module attributes {stable_mosaic.version = 11 : i64} {
  func.func @_mm_bias_act_kernel(%arg0: i32, %arg1: memref<16x128xbf16, #tpu.memory_space<vmem>>, %arg2: memref<128x128xbf16, #tpu.memory_space<vmem>>, %arg3: memref<1x128xf32, #tpu.memory_space<vmem>>, %arg4: memref<16x128xbf16, #tpu.memory_space<vmem>>) attributes {dimension_semantics = [#tpu.dimension_semantics<parallel>], iteration_bounds = array<i64: 2>, scalar_prefetch = 0 : i64, scratch_operands = 0 : i64, tpu.core_type = #tpu.core_type<tc>, window_params = [{transform_indices = @transform_0, window_bounds = array<i64: 16, 128>}, {pipeline_mode = #tpu.pipeline_mode<synchronous>, transform_indices = @transform_1, window_bounds = array<i64: 128, 128>}, {pipeline_mode = #tpu.pipeline_mode<synchronous>, transform_indices = @transform_2, window_bounds = array<i64: 1, 128>}, {transform_indices = @transform_3, window_bounds = array<i64: 16, 128>}]} {
    %c0 = arith.constant 0 : index
    %c0_0 = arith.constant 0 : index
    %0 = vector.load %arg1[%c0, %c0_0] : memref<16x128xbf16, #tpu.memory_space<vmem>>, vector<16x128xbf16>
    %c0_1 = arith.constant 0 : index
    %c0_2 = arith.constant 0 : index
    %1 = vector.load %arg2[%c0_1, %c0_2] : memref<128x128xbf16, #tpu.memory_space<vmem>>, vector<128x128xbf16>
    %cst = arith.constant dense<0.000000e+00> : vector<16x128xf32>
    %2 = tpu.matmul %0, %1, %cst {dimension_numbers = #tpu.dot_dimension_numbers<[1], [0], [0], [1], [0, 0, 1, 1], [], []>} : vector<16x128xbf16>, vector<128x128xbf16>, vector<16x128xf32> -> vector<16x128xf32>
    %c0_3 = arith.constant 0 : index
    %c0_4 = arith.constant 0 : index
    %3 = vector.load %arg3[%c0_3, %c0_4] : memref<1x128xf32, #tpu.memory_space<vmem>>, vector<1x128xf32>
    %4 = vector.broadcast %3 : vector<1x128xf32> to vector<16x128xf32>
    %5 = arith.addf %2, %4 : vector<16x128xf32>
    %cst_5 = arith.constant 0.000000e+00 : f32
    %6 = vector.broadcast %cst_5 : f32 to vector<16x128xf32>
    %7 = arith.subf %6, %5 : vector<16x128xf32>
    %8 = math.exp %7 : vector<16x128xf32>
    %cst_6 = arith.constant 1.000000e+00 : f32
    %9 = vector.broadcast %cst_6 : f32 to vector<16x128xf32>
    %10 = arith.addf %9, %8 : vector<16x128xf32>
    %11 = tpu.reciprocal %10 {approx = true} : vector<16x128xf32> -> vector<16x128xf32>
    %12 = arith.mulf %5, %11 : vector<16x128xf32>
    %13 = arith.truncf %12 : vector<16x128xf32> to vector<16x128xbf16>
    %c0_7 = arith.constant 0 : index
    %c0_8 = arith.constant 0 : index
    %14 = vector.load %arg4[%c0_7, %c0_8] : memref<16x128xbf16, #tpu.memory_space<vmem>>, vector<16x128xbf16>
    tpu.vector_store %arg4[%c0_7, %c0_8], %13 {strides = array<i32>} : memref<16x128xbf16, #tpu.memory_space<vmem>>, vector<16x128xbf16>,
    return
  }
  func.func @transform_0(%arg0: i32) -> (i32, i32) {
    %c0_i32 = arith.constant 0 : i32
    %c0_i32_0 = arith.constant 0 : i32
    return %arg0, %c0_i32 : i32, i32
  }
  func.func @transform_1(%arg0: i32) -> (i32, i32) {
    %c0_i32 = arith.constant 0 : i32
    %c0_i32_0 = arith.constant 0 : i32
    %c0_i32_1 = arith.constant 0 : i32
    return %c0_i32, %c0_i32_0 : i32, i32
  }
  func.func @transform_2(%arg0: i32) -> (i32, i32) {
    %c0_i32 = arith.constant 0 : i32
    %c0_i32_0 = arith.constant 0 : i32
    %c0_i32_1 = arith.constant 0 : i32
    return %c0_i32, %c0_i32_0 : i32, i32
  }
  func.func @transform_3(%arg0: i32) -> (i32, i32) {
    %c0_i32 = arith.constant 0 : i32
    %c0_i32_0 = arith.constant 0 : i32
    return %arg0, %c0_i32 : i32, i32
  }
}

module attributes {stable_mosaic.version = 11 : i64} {
  func.func @_gap_fc_kernel(%arg0: i32, %arg1: memref<2x16x128xbf16, #tpu.memory_space<vmem>>, %arg2: memref<128x128xf32, #tpu.memory_space<vmem>>, %arg3: memref<1x128xf32, #tpu.memory_space<vmem>>, %arg4: memref<2x128xf32, #tpu.memory_space<vmem>>, %arg5: memref<2x128xf32, #tpu.memory_space<vmem>>) attributes {dimension_semantics = [#tpu.dimension_semantics<arbitrary>], iteration_bounds = array<i64: 1>, scalar_prefetch = 0 : i64, scratch_operands = 1 : i64, tpu.core_type = #tpu.core_type<tc>, window_params = [{transform_indices = @transform_0, window_bounds = array<i64: 2, 16, 128>}, {pipeline_mode = #tpu.pipeline_mode<synchronous>, transform_indices = @transform_1, window_bounds = array<i64: 128, 128>}, {pipeline_mode = #tpu.pipeline_mode<synchronous>, transform_indices = @transform_2, window_bounds = array<i64: 1, 128>}, {pipeline_mode = #tpu.pipeline_mode<synchronous>, transform_indices = @transform_3, window_bounds = array<i64: 2, 128>}]} {
    %c0_i32 = arith.constant 0 : i32
    %0 = arith.cmpi eq, %arg0, %c0_i32 : i32
    %1 = arith.extui %0 : i1 to i32
    %c0_i32_0 = arith.constant 0 : i32
    %2 = arith.cmpi ne, %1, %c0_i32_0 : i32
    scf.if %2 {
      %cst_9 = arith.constant 0.000000e+00 : f32
      %12 = vector.broadcast %cst_9 : f32 to vector<2x128xf32>
      %c0_10 = arith.constant 0 : index
      %c0_11 = arith.constant 0 : index
      %13 = vector.load %arg5[%c0_10, %c0_11] : memref<2x128xf32, #tpu.memory_space<vmem>>, vector<2x128xf32>
      tpu.vector_store %arg5[%c0_10, %c0_11], %12 {strides = array<i32>} : memref<2x128xf32, #tpu.memory_space<vmem>>, vector<2x128xf32>,
    } else {
    }
    %c0 = arith.constant 0 : index
    %c0_1 = arith.constant 0 : index
    %3 = vector.load %arg5[%c0, %c0_1] : memref<2x128xf32, #tpu.memory_space<vmem>>, vector<2x128xf32>
    %c0_2 = arith.constant 0 : index
    %c0_3 = arith.constant 0 : index
    %c0_4 = arith.constant 0 : index
    %4 = vector.load %arg1[%c0_2, %c0_3, %c0_4] : memref<2x16x128xbf16, #tpu.memory_space<vmem>>, vector<2x16x128xbf16>
    %5 = arith.extf %4 : vector<2x16x128xbf16> to vector<2x16x128xf32>
    %cst = arith.constant dense<0.000000e+00> : vector<2x128xf32>
    %6 = vector.multi_reduction <add>, %5, %cst [1] : vector<2x16x128xf32> to vector<2x128xf32>
    %7 = arith.addf %3, %6 : vector<2x128xf32>
    %c0_5 = arith.constant 0 : index
    %c0_6 = arith.constant 0 : index
    %8 = vector.load %arg5[%c0_5, %c0_6] : memref<2x128xf32, #tpu.memory_space<vmem>>, vector<2x128xf32>
    tpu.vector_store %arg5[%c0_5, %c0_6], %7 {strides = array<i32>} : memref<2x128xf32, #tpu.memory_space<vmem>>, vector<2x128xf32>,
    %c0_i32_7 = arith.constant 0 : i32
    %9 = arith.cmpi eq, %arg0, %c0_i32_7 : i32
    %10 = arith.extui %9 : i1 to i32
    %c0_i32_8 = arith.constant 0 : i32
    %11 = arith.cmpi ne, %10, %c0_i32_8 : i32
    scf.if %11 {
      %c0_9 = arith.constant 0 : index
      %c0_10 = arith.constant 0 : index
      %12 = vector.load %arg5[%c0_9, %c0_10] : memref<2x128xf32, #tpu.memory_space<vmem>>, vector<2x128xf32>
      %cst_11 = arith.constant 6.250000e-02 : f32
      %13 = vector.broadcast %cst_11 : f32 to vector<2x128xf32>
      %14 = arith.mulf %12, %13 : vector<2x128xf32>
      %c0_12 = arith.constant 0 : index
      %c0_13 = arith.constant 0 : index
      %15 = vector.load %arg2[%c0_12, %c0_13] : memref<128x128xf32, #tpu.memory_space<vmem>>, vector<128x128xf32>
      %cst_14 = arith.constant dense<0.000000e+00> : vector<2x128xf32>
      %16 = tpu.matmul %14, %15, %cst_14 {dimension_numbers = #tpu.dot_dimension_numbers<[1], [0], [0], [1], [0, 0, 1, 1], [], []>} : vector<2x128xf32>, vector<128x128xf32>, vector<2x128xf32> -> vector<2x128xf32>
      %c0_15 = arith.constant 0 : index
      %c0_16 = arith.constant 0 : index
      %17 = vector.load %arg3[%c0_15, %c0_16] : memref<1x128xf32, #tpu.memory_space<vmem>>, vector<1x128xf32>
      %18 = vector.broadcast %17 : vector<1x128xf32> to vector<2x128xf32>
      %19 = arith.addf %16, %18 : vector<2x128xf32>
      %c0_17 = arith.constant 0 : index
      %c0_18 = arith.constant 0 : index
      %20 = vector.load %arg4[%c0_17, %c0_18] : memref<2x128xf32, #tpu.memory_space<vmem>>, vector<2x128xf32>
      tpu.vector_store %arg4[%c0_17, %c0_18], %19 {strides = array<i32>} : memref<2x128xf32, #tpu.memory_space<vmem>>, vector<2x128xf32>,
    } else {
    }
    return
  }
  func.func @transform_0(%arg0: i32) -> (i32, i32, i32) {
    %c0_i32 = arith.constant 0 : i32
    %c0_i32_0 = arith.constant 0 : i32
    %c0_i32_1 = arith.constant 0 : i32
    return %c0_i32, %arg0, %c0_i32_0 : i32, i32, i32
  }
  func.func @transform_1(%arg0: i32) -> (i32, i32) {
    %c0_i32 = arith.constant 0 : i32
    %c0_i32_0 = arith.constant 0 : i32
    %c0_i32_1 = arith.constant 0 : i32
    return %c0_i32, %c0_i32_0 : i32, i32
  }
  func.func @transform_2(%arg0: i32) -> (i32, i32) {
    %c0_i32 = arith.constant 0 : i32
    %c0_i32_0 = arith.constant 0 : i32
    %c0_i32_1 = arith.constant 0 : i32
    return %c0_i32, %c0_i32_0 : i32, i32
  }
  func.func @transform_3(%arg0: i32) -> (i32, i32) {
    %c0_i32 = arith.constant 0 : i32
    %c0_i32_0 = arith.constant 0 : i32
    %c0_i32_1 = arith.constant 0 : i32
    return %c0_i32, %c0_i32_0 : i32, i32
  }
}

</mosaic_0001>

<bundles_post_ra>
// kernel: cnn_encoder_forward.11
= control target key start
LH: loop header
LB: loop body
LE: loop exit
PB: predicated region body
PF: predicated region fallthrough
CT: control target
= control target key end

     0   :  { %s682_s12 = smov 0   ;;  %s759_s0 = inlined_call_operand.vmem [shape: bf16[128,128], index: 0, kind: input, shape index: {}]   ;;  %s760_s1 = inlined_call_operand.vmem [shape: bf16[128,128], index: 1, kind: input, shape index: {}]   ;;  %s761_s2 = inlined_call_operand.vmem [shape: f32[1,128], index: 2, kind: input, shape index: {}]   ;;  %s762_s3 = inlined_call_operand.vmem [shape: bf16[128,128], index: 3, kind: output, shape index: {}]  }
   0x1 LB: > { %s487_s13 = sadd.s32 4294967295, %s660_s12   ;;  %p491_p0 = scmp.ge.s32.totalorder %s660_s12, 1  ;;  %s660_s12 = sphi %s682_s12, %s13_s12  }
   0x2   : > { %p138_p1 = scmp.lt.s32.totalorder %s660_s12, 3 }
   0x4   : > { %p139_p2 = pnand %p491_p0, %p138_p1 }
   0x5   : > { %v610_v0 = vld [vmem:[%s760_s1] sm:$0xff] (!%p139_p2)   ;;  %s492_s16 = sshll.u32 (!%p139_p2), %s487_s13, 3  ;;  %v611_v1 = vld [vmem:[%s760_s1 + $0x8] sm:$0xff] (!%p139_p2)   ;;  %v612_v2 = vld [vmem:[%s760_s1 + $0x10] sm:$0xff] (!%p139_p2)  }
   0x6   : > { %142 = sbr.rel (%p139_p2) target bundleno = 292 (0x124), region = 32  ;;  %p163_p3 = scmp.lt.s32.totalorder (!%p139_p2), %s492_s16, 15  ;;  %562 = vmatprep.subr.bf16.mxu0 (!%p139_p2), %v610_v0  ;;  %586 = vmatprep.subr.bf16.mxu1 (!%p139_p2), %v610_v0  ;;  %v613_v3 = vld [vmem:[%s760_s1 + $0x18] sm:$0xff] (!%p139_p2)   ;;  %v614_v6 = vld [vmem:[%s760_s1 + $0x20] sm:$0xff] (!%p139_p2)   ;;  %v615_v7 = vld [vmem:[%s760_s1 + $0x28] sm:$0xff] (!%p139_p2)  }
   0x7   : > { %563 = vmatpush3.bf16.msra.mxu0 (!%p139_p2), %v610_v0  ;;  %594 = vmatpush3.bf16.msra.mxu1 (!%p139_p2), %v610_v0  ;;  %v616_v8 = vld [vmem:[%s760_s1 + $0x30] sm:$0xff] (!%p139_p2)   ;;  %v617_v9 = vld [vmem:[%s760_s1 + $0x38] sm:$0xff] (!%p139_p2)   ;;  %v496_v12 = vld [vmem:[%s761_s2] ss:$0 sm:$0xff] (!%p139_p2) }
   0x8   : > { %564 = vmatprep.subr.bf16.mxu0 (!%p139_p2), %v611_v1  ;;  %587 = vmatprep.subr.bf16.mxu1 (!%p139_p2), %v611_v1 }
   0xb   : > { %565 = vmatpush3.bf16.msra.mxu0 (!%p139_p2), %v611_v1  ;;  %595 = vmatpush3.bf16.msra.mxu1 (!%p139_p2), %v611_v1 }
   0xc   : > { %566 = vmatprep.subr.bf16.mxu0 (!%p139_p2), %v612_v2  ;;  %588 = vmatprep.subr.bf16.mxu1 (!%p139_p2), %v612_v2 }
   0xd   : > { %s764_s16 = smov (!%p163_p3, %s492_s16), 15 }
   0xe   : > { %s493_s21 = sshll.u32 %s764_s16, 2 }
   0xf   : > { %s707_s24 = scalar_lea.vmem %s759_s0, %s493_s21  ;;  %567 = vmatpush3.bf16.msra.mxu0 %v612_v2  ;;  %596 = vmatpush3.bf16.msra.mxu1 %v612_v2  ;;  %s172_s13 = scalar_lea.vmem %s762_s3, %s493_s21 }
  0x10   : > { %v618_v4 = vld [vmem:[%s707_s24] sm:$0xff]   ;;  %v619_v5 = vld [vmem:[%s707_s24 + $0x10] sm:$0xff]   ;;  %568 = vmatprep.subr.bf16.mxu0 %v613_v3  ;;  %589 = vmatprep.subr.bf16.mxu1 %v613_v3  ;;  %v620_v10 = vld [vmem:[%s707_s24 + $0x8] sm:$0xff]  }
  0x11   : > { %578 = vmatprep.mubr.bf16.mxu0 %v618_v4  ;;  %582 = vmatprep.mubr.bf16.mxu1 %v619_v5  ;;  %v621_v11 = vld [vmem:[%s707_s24 + $0x18] sm:$0xff]  }
  0x13   : > { %569 = vmatpush3.bf16.msra.mxu0 %v613_v3  ;;  %597 = vmatpush3.bf16.msra.mxu1 %v613_v3 }
  0x14   : > { %570 = vmatprep.subr.bf16.mxu0 %v614_v6  ;;  %590 = vmatprep.subr.bf16.mxu1 %v614_v6 }
  0x17   : > { %571 = vmatpush3.bf16.msra.mxu0 %v614_v6  ;;  %598 = vmatpush3.bf16.msra.mxu1 %v614_v6 }
  0x18   : > { %572 = vmatprep.subr.bf16.mxu0 %v615_v7  ;;  %591 = vmatprep.subr.bf16.mxu1 %v615_v7 }
  0x1b   : > { %573 = vmatpush3.bf16.msra.mxu0 %v615_v7  ;;  %599 = vmatpush3.bf16.msra.mxu1 %v615_v7 }
  0x1c   : > { %574 = vmatprep.subr.bf16.mxu0 %v616_v8  ;;  %592 = vmatprep.subr.bf16.mxu1 %v616_v8 }
  0x1f   : > { %575 = vmatpush3.bf16.msra.mxu0 %v616_v8  ;;  %600 = vmatpush3.bf16.msra.mxu1 %v616_v8 }
  0x20   : > { %576 = vmatprep.subr.bf16.mxu0 %v617_v9  ;;  %593 = vmatprep.subr.bf16.mxu1 %v617_v9 }
  0x23   : > { %577 = vmatpush3.bf16.msra.mxu0 %v617_v9  ;;  %601 = vmatpush3.bf16.msra.mxu1 %v617_v9 }
  0x26   : > { %579 = vmatmul.mubr.bf16.vlgmr.msra.gmra.mrb[0].mxu0 %v620_v10  ;;  %583 = vmatmul.mubr.bf16.vlgmr.msra.gmra.mrb[0].mxu1 %v621_v11 }
  0xf9   : > { %v580_v13 = vpop.f32.mrb[0].mxu0  ;;  %v584_v14 = vpop.f32.mrb[0].mxu1 }
  0xfa   : > { %v731_v15 = vadd.f32 %v580_v13, %v496_v12  ;;  %v733_v16 = vadd.f32 %v584_v14, %v496_v12  ;;  %v312_v17 = vpop.f32.mrb[1].mxu0  ;;  %v328_v18 = vpop.f32.mrb[1].mxu1 }
  0xfb   : > { %v735_v19 = vadd.f32 %v496_v12, %v312_v17  ;;  %v737_v20 = vadd.f32 %v496_v12, %v328_v18  ;;  %v581_v21 = vpop.f32.mrb[2].mxu0  ;;  %v585_v22 = vpop.f32.mrb[2].mxu1 }
  0xfc   : > { %v345_v23 = vsub.f32 0.0, %v731_v15  ;;  %v349_v24 = vsub.f32 0.0, %v733_v16  ;;  %v324_v25 = vadd.f32 %v581_v21, %v496_v12  ;;  %v340_v26 = vadd.f32 %v585_v22, %v496_v12  ;;  %v315_v27 = vpop.f32.mrb[3].mxu0  ;;  %v331_v28 = vpop.f32.mrb[3].mxu1 }
  0xfd   : > { %v343_v29 = vsub.f32 0.0, %v735_v19  ;;  %v347_v30 = vsub.f32 0.0, %v737_v20  ;;  %v316_v31 = vadd.f32 %v496_v12, %v315_v27  ;;  %v743_v32 = vadd.f32 %v496_v12, %v331_v28 }
  0xfe   : > { %v355_v33 = vmul.f32 1.442695, %v345_v23  ;;  %v363_v34 = vmul.f32 1.442695, %v349_v24  ;;  %v346_v35 = vsub.f32 0.0, %v324_v25  ;;  %v350_v36 = vsub.f32 0.0, %v340_v26 }
  0xff   : > { %v351_v37 = vmul.f32 1.442695, %v343_v29  ;;  %v359_v38 = vmul.f32 1.442695, %v347_v30  ;;  %v344_v39 = vsub.f32 0.0, %v316_v31  ;;  %v348_v40 = vsub.f32 0.0, %v743_v32 }
 0x100   : > { %622 = vpow2.f32 %v355_v33  ;;  %v357_v41 = vmul.f32 1.442695, %v346_v35  ;;  %v365_v42 = vmul.f32 1.442695, %v350_v36 }
 0x101   : > { %624 = vpow2.f32 %v363_v34  ;;  %v353_v43 = vmul.f32 1.442695, %v344_v39  ;;  %v361_v44 = vmul.f32 1.442695, %v348_v40 }
 0x102   : > { %626 = vpow2.f32 %v351_v37 }
 0x103   : > { %628 = vpow2.f32 %v359_v38 }
 0x104   : > { %630 = vpow2.f32 %v357_v41 }
 0x105   : > { %632 = vpow2.f32 %v365_v42 }
 0x106   : > { %634 = vpow2.f32 %v353_v43 }
 0x107   : > { %636 = vpow2.f32 %v361_v44 }
 0x10a   : > { %v623_v45 = vpop.eup %622 }
 0x10b   : > { %v625_v46 = vpop.eup %624  ;;  %v369_v47 = vadd.f32 1.0, %v623_v45 }
 0x10c   : > { %v627_v48 = vpop.eup %626  ;;  %v373_v49 = vadd.f32 1.0, %v625_v46 }
 0x10d   : > { %v629_v50 = vpop.eup %628  ;;  %638 = vrcp.f32 %v369_v47  ;;  %v367_v51 = vadd.f32 1.0, %v627_v48 }
 0x10e   : > { %v631_v52 = vpop.eup %630  ;;  %640 = vrcp.f32 %v373_v49  ;;  %v371_v53 = vadd.f32 1.0, %v629_v50 }
 0x10f   : > { %v633_v54 = vpop.eup %632  ;;  %642 = vrcp.f32 %v367_v51  ;;  %v370_v55 = vadd.f32 1.0, %v631_v52 }
 0x110   : > { %v635_v56 = vpop.eup %634  ;;  %644 = vrcp.f32 %v371_v53  ;;  %v374_v57 = vadd.f32 1.0, %v633_v54 }
 0x111   : > { %v637_v58 = vpop.eup %636  ;;  %646 = vrcp.f32 %v370_v55  ;;  %v368_v59 = vadd.f32 1.0, %v635_v56 }
 0x112   : > { %648 = vrcp.f32 %v374_v57  ;;  %v372_v60 = vadd.f32 1.0, %v637_v58 }
 0x113   : > { %650 = vrcp.f32 %v368_v59 }
 0x114   : > { %652 = vrcp.f32 %v372_v60 }
 0x117   : > { %v639_v61 = vpop.eup %638 }
 0x118   : > { %v641_v62 = vpop.eup %640  ;;  %v385_v3 = vmul.f32 %v639_v61, %v731_v15 }
 0x119   : > { %v643_v63 = vpop.eup %642  ;;  %v389_v6 = vmul.f32 %v641_v62, %v733_v16 }
 0x11a   : > { %v645_v0 = vpop.eup %644  ;;  %v383_v9 = vmul.f32 %v643_v63, %v735_v19 }
 0x11b   : > { %v647_v1 = vpop.eup %646  ;;  %v387_v12 = vmul.f32 %v645_v0, %v737_v20 }
 0x11c   : > { %v649_v2 = vpop.eup %648  ;;  %v386_v4 = vmul.f32 %v647_v1, %v324_v25 }
 0x11d   : > { %v651_v5 = vpop.eup %650  ;;  %v390_v7 = vmul.f32 %v649_v2, %v340_v26 }
 0x11e   : > { %v653_v8 = vpop.eup %652  ;;  %v535_v10 = vpack.c.bf16 %v386_v4, %v385_v3  ;;  %v384_v11 = vmul.f32 %v651_v5, %v316_v31 }
 0x11f   : > { %v545_v13 = vpack.c.bf16 %v390_v7, %v389_v6  ;;  %v388_v14 = vmul.f32 %v653_v8, %v743_v32 }
 0x120   : > { %547 = vst [vmem:[%s172_s13 + $0x8] sm:$0xff] %v535_v10   ;;  %v530_v15 = vpack.c.bf16 %v384_v11, %v383_v9 }
 0x121   : > { %549 = vst [vmem:[%s172_s13 + $0x18] sm:$0xff] %v545_v13   ;;  %v540_v16 = vpack.c.bf16 %v388_v14, %v387_v12 }
 0x122   : > { %531 = vst [vmem:[%s172_s13] sm:$0xff] %v530_v15  }
 0x123   : > { %548 = vst [vmem:[%s172_s13 + $0x10] sm:$0xff] %v540_v16  }
 0x124 PF: > { %s13_s12 = sadd.s32 1, %s660_s12  }
 0x125   : > { %p10_p4 = scmp.ge.s32.totalorder %s13_s12, 4  }
 0x127   :  { %12 = sbr.rel (!%p10_p4) target bundleno = 1 (0x1), region = 62 }

// kernel: cnn_encoder_forward.13
= control target key start
LH: loop header
LB: loop body
LE: loop exit
PB: predicated region body
PF: predicated region fallthrough
CT: control target
= control target key end

     0   :  { %s706_s15 = smov 0   ;;  %s708_s16 = smov 0   ;;  %s794_s0 = inlined_call_operand.vmem [shape: bf16[2,64,128], index: 0, kind: input, shape index: {}]   ;;  %s795_s1 = inlined_call_operand.vmem [shape: f32[2,1,128], index: 1, kind: input, shape index: {}]   ;;  %s796_s2 = inlined_call_operand.vmem [shape: bf16[128,128], index: 2, kind: input, shape index: {}]   ;;  %s797_s3 = inlined_call_operand.vmem [shape: f32[1,128], index: 3, kind: input, shape index: {}]   ;;  %s798_s4 = inlined_call_operand.vmem [shape: bf16[2,64,128], index: 4, kind: output, shape index: {}]  }
   0x1   :  { %s710_s17 = smov 0   ;;  %s712_s18 = smov 0  }
   0x2   :  { %s714_s19 = smov 0  }
   0x3 LB: > { %s23_s20 = sadd.s32 1, %s671_s17  ;;  %s26_s21 = sadd.s32 1, %s675_s18  ;;  %s679_s19 = sphi %s714_s19, %s14_s19   ;;  %s675_s18 = sphi %s712_s18, %s802_s18   ;;  %s671_s17 = sphi %s710_s17, %s801_s17   ;;  %s667_s16 = sphi %s708_s16, %s800_s16   ;;  %s663_s15 = sphi %s706_s15, %s799_s15  }
   0x4   : > { %p24_p0 = scmp.ge.s32.totalorder %s23_s20, 2  ;;  %p516_p1 = scmp.ge.s32.totalorder %s679_s19, 1 }
   0x5   : > { %p191_p2 = scmp.lt.s32.totalorder %s679_s19, 5 }
   0x6   : > { %s804_s20 = smov (%p24_p0, %s23_s20), 0  ;;  %s806_s21 = smov (!%p24_p0, %s26_s21), %s675_s18 }
   0x7   : > { %p192_p3 = pnand %p516_p1, %p191_p2  ;;  %p28_p4 = scmp.ge.s32.totalorder %s806_s21, 2 }
   0x8   : > { %v633_v0 = vld [vmem:[%s796_s2] sm:$0xff] (!%p192_p3)   ;;  %s517_s24 = sshll.u32 (!%p192_p3), %s663_s15, 2  ;;  %v634_v1 = vld [vmem:[%s796_s2 + $0x8] sm:$0xff] (!%p192_p3)   ;;  %p229_p5 = scmp.lt.s32.totalorder (!%p192_p3), %s667_s16, 1  ;;  %v635_v2 = vld [vmem:[%s796_s2 + $0x10] sm:$0xff] (!%p192_p3)  }
   0x9   : > { %s808_s21 = smov (%p28_p4, %s806_s21), 0  ;;  %195 = sbr.rel (%p192_p3) target bundleno = 262 (0x106), region = 36 }
   0xa   : > { %573 = vmatprep.subr.bf16.mxu0 (!%p192_p3), %v633_v0  ;;  %p231_p6 = scmp.lt.s32.totalorder (!%p192_p3), %s517_s24, 7  ;;  %v636_v3 = vld [vmem:[%s796_s2 + $0x18] sm:$0xff] (!%p192_p3)   ;;  %v637_v8 = vld [vmem:[%s796_s2 + $0x20] sm:$0xff] (!%p192_p3)   ;;  %v638_v12 = vld [vmem:[%s796_s2 + $0x28] sm:$0xff] (!%p192_p3)  }
   0xb   : > { %574 = vmatpush3.bf16.msra.mxu0 (!%p192_p3), %v633_v0  ;;  %v639_v14 = vld [vmem:[%s796_s2 + $0x30] sm:$0xff] (!%p192_p3)   ;;  %v640_v17 = vld [vmem:[%s796_s2 + $0x38] sm:$0xff] (!%p192_p3)   ;;  %v524_v22 = vld [vmem:[%s797_s3] ss:$0 sm:$0xff] (!%p192_p3) }
   0xc   : > { %575 = vmatprep.subr.bf16.mxu0 (!%p192_p3), %v634_v1 }
   0xf   : > { %576 = vmatpush3.bf16.msra.mxu0 (!%p192_p3), %v634_v1 }
  0x10   : > { %s810_s16 = smov (!%p229_p5, %s667_s16), 1  ;;  %s812_s24 = smov (!%p231_p6, %s517_s24), 7  ;;  %577 = vmatprep.subr.bf16.mxu0 %v635_v2 }
  0x11   : > { %s518_s29 = sshll.u32 %s810_s16, 3  ;;  %s240_s7 = scalar_lea.vmem %s795_s1, %s810_s16 }
  0x12   : > { %s745_s30 = sadd.s32 %s518_s29, %s812_s24  ;;  %v523_v5 = vld [vmem:[%s240_s7] ss:$0 sm:$0xff] }
  0x13   : > { %s519_s8 = sshll.u32 %s745_s30, 2  ;;  %578 = vmatpush3.bf16.msra.mxu0 %v635_v2 }
  0x14   : > { %s236_s13 = scalar_lea.vmem %s794_s0, %s519_s8  ;;  %579 = vmatprep.subr.bf16.mxu0 %v636_v3  ;;  %s249_s6 = scalar_lea.vmem %s798_s4, %s519_s8 }
  0x15   : > { %v544_v4 = vld [vmem:[%s236_s13] sm:$0xff]   ;;  %v561_v13 = vld [vmem:[%s236_s13 + $0x8] sm:$0xff]  }
  0x16   : > { %v545_v6 = vunpack.c.l.bf16 %v544_v4  ;;  %v546_v7 = vunpack.c.h.bf16 %v544_v4  ;;  %v549_v15 = vunpack.c.l.bf16 %v561_v13  ;;  %v550_v16 = vunpack.c.h.bf16 %v561_v13 }
  0x17   : > { %580 = vmatpush3.bf16.msra.mxu0 %v636_v3 }
  0x18   : > { %v267_v9 = vmul.f32 %v545_v6, %v523_v5  ;;  %v268_v10 = vmul.f32 %v546_v7, %v523_v5  ;;  %581 = vmatprep.subr.bf16.mxu0 %v637_v8  ;;  %v269_v18 = vmul.f32 %v549_v15, %v523_v5  ;;  %v270_v19 = vmul.f32 %v550_v16, %v523_v5 }
  0x1a   : > { %v271_v11 = vpack.c.bf16 %v268_v10, %v267_v9  ;;  %v272_v20 = vpack.c.bf16 %v270_v19, %v269_v18 }
  0x1b   : > { %582 = vmatpush3.bf16.msra.mxu0 %v637_v8 }
  0x1c   : > { %589 = vmatprep.mubr.bf16.mxu0 %v271_v11  ;;  %583 = vmatprep.subr.bf16.mxu0 %v638_v12 }
  0x1f   : > { %584 = vmatpush3.bf16.msra.mxu0 %v638_v12 }
  0x20   : > { %585 = vmatprep.subr.bf16.mxu0 %v639_v14 }
  0x23   : > { %586 = vmatpush3.bf16.msra.mxu0 %v639_v14 }
  0x24   : > { %587 = vmatprep.subr.bf16.mxu0 %v640_v17 }
  0x27   : > { %588 = vmatpush3.bf16.msra.mxu0 %v640_v17 }
  0x2a   : > { %590 = vmatmul.mubr.bf16.vlgmr.msra.gmra.mrb[0].mxu0 %v272_v20 }
  0xfd   : > { %v591_v21 = vpop.f32.mrb[0].mxu0 }
  0xfe   : > { %v378_v23 = vpop.f32.mrb[1].mxu0  ;;  %v387_v25 = vadd.f32 %v591_v21, %v524_v22 }
  0xff   : > { %v592_v24 = vpop.f32.mrb[2].mxu0  ;;  %v379_v28 = vadd.f32 %v524_v22, %v378_v23 }
 0x100   : > { %v390_v26 = vadd.f32 %v592_v24, %v524_v22  ;;  %v381_v27 = vpop.f32.mrb[3].mxu0 }
 0x101   : > { %v382_v29 = vadd.f32 %v524_v22, %v381_v27 }
 0x102   : > { %v559_v30 = vpack.c.bf16 %v390_v26, %v387_v25 }
 0x103   : > { %v554_v31 = vpack.c.bf16 %v382_v29, %v379_v28 }
 0x104   : > { %562 = vst [vmem:[%s249_s6 + $0x8] sm:$0xff] %v559_v30  }
 0x105   : > { %555 = vst [vmem:[%s249_s6] sm:$0xff] %v554_v31  }
 0x106 PF: > { %s14_s19 = sadd.s32 1, %s679_s19   ;;  %s799_s15 = smov %s671_s17 }
 0x107   : > { %p11_p7 = scmp.ge.s32.totalorder %s14_s19, 6   ;;  %s800_s16 = smov %s675_s18 }
 0x108   : > { %s801_s17 = smov %s804_s20  ;;  %s802_s18 = smov %s808_s21 }
 0x109   :  { %13 = sbr.rel (!%p11_p7) target bundleno = 3 (0x3), region = 69 }

// kernel: cnn_encoder_forward.12
= control target key start
LH: loop header
LB: loop body
LE: loop exit
PB: predicated region body
PF: predicated region fallthrough
CT: control target
= control target key end

     0   :  { %s1556_s27 = smov 0   ;;  %s2022_s0 = inlined_call_operand.vmem [shape: bf16[2,10,10,128], index: 0, kind: input, shape index: {}]   ;;  %s2023_s1 = inlined_call_operand.vmem [shape: f32[9,1,1,128], index: 1, kind: input, shape index: {}]   ;;  %s2024_s2 = inlined_call_operand.vmem [shape: f32[1,1,128], index: 2, kind: input, shape index: {}]   ;;  %s2025_s3 = inlined_call_operand.vmem [shape: f32[128,128], index: 3, kind: input, shape index: {}]   ;;  %s2026_s4 = inlined_call_operand.vmem [shape: f32[1,128], index: 4, kind: input, shape index: {}]   ;;  %s2027_s5 = inlined_call_operand.vmem [shape: f32[128,128], index: 5, kind: input, shape index: {}]   ;;  %s2028_s6 = inlined_call_operand.vmem [shape: f32[1,128], index: 6, kind: input, shape index: {}]   ;;  %s2029_s7 = inlined_call_operand.vmem [shape: bf16[2,8,8,128], index: 7, kind: output, shape index: {0}]   ;;  %s2030_s8 = inlined_call_operand.vmem [shape: f32[2,1,128], index: 8, kind: output, shape index: {1}]  }
   0x1 LB: > { %s1252_s28 = sadd.s32 4294967295, %s1506_s27   ;;  %p1256_p0 = scmp.ge.s32.totalorder %s1506_s27, 1  ;;  %s1506_s27 = sphi %s1556_s27, %s19_s27  }
   0x2   : > { %p265_p1 = scmp.lt.s32.totalorder %s1506_s27, 3 }
   0x4   : > { %p266_p2 = pnand %p1256_p0, %p265_p1 }
   0x6   : > { %269 = sbr.rel (%p266_p2) target bundleno = 657 (0x291), region = 48 }
   0xd   : > { %v985_v0 = vld [vmem:[%s2025_s3] sm:$0xff]  ;;  %v986_v1 = vld [vmem:[%s2025_s3 + $0x8] sm:$0xff]  ;;  %v987_v2 = vld [vmem:[%s2025_s3 + $0x10] sm:$0xff]  ;;  %v1508_v3 = vmov 0.0|0.0   ;;  %vm1509_vm0 = vmmov 0   ;;  %v1510_v6 = vmov 0.0  }
   0xe   : > { %1400 = vmatprep.subr.bf16.mxu0 %v1508_v3  ;;  %v1401_v4 = vpack.c.bf16 %v986_v1, %v985_v0  ;;  %v988_v5 = vld [vmem:[%s2025_s3 + $0x18] sm:$0xff]  ;;  %1362 = vmatprep.mubr.msk.f32.mxu0 %vm1509_vm0, %v1510_v6  ;;  %p302_p3 = scmp.lt.s32.totalorder %s1252_s28, 1  ;;  %v989_v7 = vld [vmem:[%s2025_s3 + $0x20] sm:$0xff]  ;;  %v990_v8 = vld [vmem:[%s2025_s3 + $0x28] sm:$0xff]  ;;  %vm416_vm1 = vcmask 1046528   ;;  %vm495_vm2 = vcmask 1045504  }
   0xf   : > { %v1586_v9 = vld [vmem:[%s2025_s3 + $0x30] sm:$0xff]  ;;  %1424 = vmatprep.subr.bf16.mxu1 %v1508_v3  ;;  %1397 = vmatprep.mubr.msk.f32.mxu1 %vm1509_vm0, %v1510_v6  ;;  %v1404_v10 = vpack.c.bf16 %v988_v5, %v987_v2  ;;  %v1592_v11 = vld [vmem:[%s2025_s3 + $0x38] sm:$0xff]  ;;  %v1597_v12 = vld [vmem:[%s2025_s3 + $0x40] sm:$0xff]  ;;  %v1407_v20 = vpack.c.bf16 %v990_v8, %v989_v7 }
  0x10   : > { %1402 = vmatpush3.bf16.msra.mxu0 %v1401_v4  ;;  %v1602_v13 = vld [vmem:[%s2025_s3 + $0x48] sm:$0xff]  ;;  %s2043_s28 = smov (!%p302_p3, %s1252_s28), 1  ;;  %v1610_v14 = vld [vmem:[%s2025_s3 + $0x50] sm:$0xff]  ;;  %v1615_v15 = vld [vmem:[%s2025_s3 + $0x58] sm:$0xff]  ;;  %v1410_v21 = vpack.c.bf16 %v1592_v11, %v1586_v9 }
  0x11   : > { %1403 = vmatprep.subr.bf16.mxu0 %v1508_v3  ;;  %v1620_v16 = vld [vmem:[%s2025_s3 + $0x60] sm:$0xff]  ;;  %v1625_v17 = vld [vmem:[%s2025_s3 + $0x68] sm:$0xff]  ;;  %v1630_v18 = vld [vmem:[%s2025_s3 + $0x70] sm:$0xff]  ;;  %s1448_s19 = smul.u32 80, %s2043_s28  ;;  %v1413_v22 = vpack.c.bf16 %v1602_v13, %v1597_v12  ;;  %s1272_s23 = sshll.u32 %s2043_s28, 5 }
  0x12   : > { %v1635_v19 = vld [vmem:[%s2025_s3 + $0x78] sm:$0xff]  ;;  %v1260_v36 = vld [vmem:[%s2023_s1] ss:$0 sm:$0xff]  ;;  %v1261_v62 = vld [vmem:[%s2023_s1 + $0x1] ss:$0 sm:$0xff]  ;;  %s311_s26 = scalar_lea.vmem %s2029_s7, %s1272_s23  ;;  %s314_s25 = scalar_lea.vmem %s2030_s8, %s2043_s28 }
  0x13   : > { %s1643_s22 = scalar_lea.vmem %s2022_s0, %s1448_s19 }
  0x14   : > { %1405 = vmatpush3.bf16.msra.mxu0 %v1404_v10  ;;  %v315_v26 = vld [vmem:[%s1643_s22] ss:$8 sps:$4 sm:$0xff]   ;;  %v1656_v27 = vld [vmem:[%s1643_s22 + $0x4] sm:$0x1]  ;;  %v318_v28 = vld [vmem:[%s1643_s22 + $0xc] sm:$0x1] }
  0x15   : > { %1406 = vmatprep.subr.bf16.mxu0 %v1508_v3  ;;  %v319_v29 = vld [vmem:[%s1643_s22 + $0x10] ss:$8 sps:$4 sm:$0xff]   ;;  %v320_v30 = vld [vmem:[%s1643_s22 + $0x14] sm:$0x1]  ;;  %v322_v31 = vld [vmem:[%s1643_s22 + $0x1c] sm:$0x1]  ;;  %v1662_v32 = vunpack.c.l.bf16 %v315_v26  ;;  %v2031_v33 = vunpack.c.l.bf16 %v1656_v27  ;;  %v1665_v34 = vunpack.c.h.bf16 %v315_v26  ;;  %v1667_v35 = vunpack.c.l.bf16 %v318_v28 }
  0x16   : > { %v323_v37 = vld [vmem:[%s1643_s22 + $0x20] ss:$8 sps:$4 sm:$0xff]   ;;  %v324_v38 = vld [vmem:[%s1643_s22 + $0x24] sm:$0x1]  ;;  %v326_v39 = vld [vmem:[%s1643_s22 + $0x2c] sm:$0x1]  ;;  %v1675_v40 = vunpack.c.l.bf16 %v319_v29  ;;  %v1677_v41 = vunpack.c.l.bf16 %v320_v30  ;;  %v1679_v42 = vunpack.c.h.bf16 %v319_v29  ;;  %v1681_v43 = vunpack.c.l.bf16 %v322_v31 }
  0x17   : > { %v327_v44 = vld [vmem:[%s1643_s22 + $0x30] ss:$8 sps:$4 sm:$0xff]   ;;  %v328_v45 = vld [vmem:[%s1643_s22 + $0x34] sm:$0x1]  ;;  %v330_v46 = vld [vmem:[%s1643_s22 + $0x3c] sm:$0x1]  ;;  %v1686_v47 = vunpack.c.l.bf16 %v323_v37  ;;  %v1688_v48 = vunpack.c.l.bf16 %v324_v38  ;;  %v1690_v49 = vunpack.c.h.bf16 %v323_v37  ;;  %v1692_v50 = vunpack.c.l.bf16 %v326_v39 }
  0x18   : > { %1408 = vmatpush3.bf16.msra.mxu0 %v1407_v20  ;;  %v331_v51 = vld [vmem:[%s1643_s22 + $0x40] ss:$8 sps:$4 sm:$0xff]   ;;  %v332_v52 = vld [vmem:[%s1643_s22 + $0x44] sm:$0x1]  ;;  %v1698_v53 = vld [vmem:[%s1643_s22 + $0x4c] sm:$0x1]  ;;  %v1700_v54 = vunpack.c.l.bf16 %v327_v44  ;;  %v1702_v55 = vunpack.c.l.bf16 %v328_v45  ;;  %v1704_v56 = vunpack.c.h.bf16 %v327_v44  ;;  %v1706_v57 = vunpack.c.l.bf16 %v330_v46 }
  0x19   : > { %1409 = vmatprep.subr.bf16.mxu0 %v1508_v3  ;;  %2034 = vst [vmem:[#allocation2_spill] sm:$0xff] %v1698_v53  ;;  %v1708_v58 = vunpack.c.l.bf16 %v331_v51  ;;  %v1710_v59 = vunpack.c.l.bf16 %v332_v52  ;;  %v1712_v60 = vunpack.c.h.bf16 %v331_v51  ;;  %v370_v63 = vmul.f32 %v1260_v36, %v1662_v32 }
  0x1a   : > { %v371_v0 = vmul.f32 %v1260_v36, %v1665_v34  ;;  %v372_v1 = vmul.f32 %v1260_v36, %v1675_v40  ;;  %v373_v2 = vmul.f32 %v1260_v36, %v1679_v42  ;;  %v374_v4 = vmul.f32 %v1260_v36, %v1686_v47 }
  0x1b   : > { %v375_v5 = vmul.f32 %v1260_v36, %v1690_v49  ;;  %v376_v6 = vmul.f32 %v1260_v36, %v1700_v54  ;;  %v377_v7 = vmul.f32 %v1260_v36, %v1704_v56  ;;  %v384_v8 = vmul.f32 %v1261_v62, %v1662_v32 }
  0x1c   : > { %1411 = vmatpush3.bf16.msra.mxu0 %v1410_v21  ;;  %v385_v9 = vmul.f32 %v1261_v62, %v2031_v33  ;;  %v386_v10 = vmul.f32 %v1261_v62, %v1665_v34  ;;  %v387_v11 = vmul.f32 %v1261_v62, %v1667_v35  ;;  %v388_v20 = vmul.f32 %v1261_v62, %v1675_v40 }
  0x1d   : > { %1412 = vmatprep.subr.bf16.mxu0 %v1508_v3  ;;  %v389_v21 = vmul.f32 %v1261_v62, %v1677_v41  ;;  %v390_v26 = vmul.f32 %v1261_v62, %v1679_v42  ;;  %v391_v28 = vmul.f32 %v1261_v62, %v1681_v43  ;;  %v392_v29 = vmul.f32 %v1261_v62, %v1686_v47 }
  0x1e   : > { %v393_v30 = vmul.f32 %v1261_v62, %v1688_v48  ;;  %v394_v31 = vmul.f32 %v1261_v62, %v1690_v49  ;;  %v395_v36 = vmul.f32 %v1261_v62, %v1692_v50  ;;  %v396_v37 = vmul.f32 %v1261_v62, %v1700_v54 }
  0x1f   : > { %v397_v38 = vmul.f32 %v1261_v62, %v1702_v55  ;;  %v398_v39 = vmul.f32 %v1261_v62, %v1704_v56  ;;  %v399_v44 = vmul.f32 %v1261_v62, %v1706_v57  ;;  %v417_v45 = vrot.slane %v384_v8, 1 }
  0x20   : > { %1414 = vmatpush3.bf16.msra.mxu0 %v1413_v22  ;;  %v418_v46 = vrot.slane %v385_v9, 1  ;;  %v420_v51 = vrot.slane %v386_v10, 1  ;;  %v421_v52 = vrot.slane %v387_v11, 1  ;;  %v423_v61 = vrot.slane %v388_v20, 1  ;;  %v1262_v11 = vld [vmem:[%s2023_s1 + $0x2] ss:$0 sm:$0xff] }
  0x21   : > { %1415 = vmatprep.subr.bf16.mxu0 %v1508_v3  ;;  %v424_v25 = vrot.slane %v389_v21, 1  ;;  %v426_v33 = vrot.slane %v390_v26, 1  ;;  %v427_v24 = vrot.slane %v391_v28, 1  ;;  %v429_v22 = vrot.slane %v392_v29, 1 }
  0x22   : > { %v419_v12 = vsel %vm416_vm1, %v417_v45, %v418_v46  ;;  %v422_v13 = vsel %vm416_vm1, %v420_v51, %v421_v52  ;;  %v430_v23 = vrot.slane %v393_v30, 1  ;;  %v2035_v53 = vpack.c.bf16 %v1615_v15, %v1610_v14 }
  0x23   : > { %v425_v62 = vsel %vm416_vm1, %v423_v61, %v424_v25  ;;  %v428_v8 = vsel %vm416_vm1, %v426_v33, %v427_v24  ;;  %v432_v9 = vrot.slane %v394_v31, 1  ;;  %v433_v10 = vrot.slane %v395_v36, 1 }
  0x24   : > { %1417 = vmatpush3.bf16.msra.mxu0 %v2035_v53  ;;  %v431_v20 = vsel %vm416_vm1, %v429_v22, %v430_v23  ;;  %v435_v21 = vrot.slane %v396_v37, 1  ;;  %v436_v26 = vrot.slane %v397_v38, 1  ;;  %v438_v28 = vrot.slane %v398_v39, 1 }
  0x25   : > { %1418 = vmatprep.subr.bf16.mxu0 %v1508_v3  ;;  %v434_v14 = vsel %vm416_vm1, %v432_v9, %v433_v10  ;;  %v439_v15 = vrot.slane %v399_v44, 1  ;;  %v449_v25 = vadd.f32 %v419_v12, %v370_v63  ;;  %v450_v53 = vadd.f32 %v422_v13, %v371_v0 }
  0x26   : > { %v437_v24 = vsel %vm416_vm1, %v435_v21, %v436_v26  ;;  %v451_v33 = vadd.f32 %v425_v62, %v372_v1  ;;  %v452_v61 = vadd.f32 %v428_v8, %v373_v2  ;;  %v453_v29 = vadd.f32 %v431_v20, %v374_v4 }
  0x27   : > { %v2036_v30 = vpack.c.bf16 %v1625_v17, %v1620_v16  ;;  %v440_v31 = vsel %vm416_vm1, %v438_v28, %v439_v15  ;;  %v454_v23 = vadd.f32 %v434_v14, %v375_v5  ;;  %v455_v36 = vadd.f32 %v437_v24, %v376_v6  ;;  %v1263_v15 = vld [vmem:[%s2023_s1 + $0x3] ss:$0 sm:$0xff] }
  0x28   : > { %v463_v37 = vmul.f32 %v1262_v11, %v1662_v32  ;;  %v456_v38 = vadd.f32 %v440_v31, %v377_v7  ;;  %v2037_v63 = vunpack.c.l.bf16 %v1656_v27  ;;  %v465_v1 = vmul.f32 %v1262_v11, %v1665_v34 }
  0x29   : > { %1420 = vmatpush3.bf16.msra.mxu0 %v2036_v30  ;;  %v466_v2 = vmul.f32 %v1262_v11, %v1667_v35  ;;  %v467_v4 = vmul.f32 %v1262_v11, %v1675_v40  ;;  %v468_v16 = vmul.f32 %v1262_v11, %v1677_v41  ;;  %v469_v17 = vmul.f32 %v1262_v11, %v1679_v42 }
  0x2a   : > { %1421 = vmatprep.subr.bf16.mxu0 %v1508_v3  ;;  %v464_v0 = vmul.f32 %v1262_v11, %v2037_v63  ;;  %v470_v5 = vmul.f32 %v1262_v11, %v1681_v43  ;;  %v471_v32 = vmul.f32 %v1262_v11, %v1686_v47  ;;  %v472_v6 = vmul.f32 %v1262_v11, %v1688_v48 }
  0x2b   : > { %v473_v7 = vmul.f32 %v1262_v11, %v1690_v49  ;;  %v474_v27 = vmul.f32 %v1262_v11, %v1692_v50  ;;  %v2038_v39 = vpack.c.bf16 %v1635_v19, %v1630_v18  ;;  %v475_v44 = vmul.f32 %v1262_v11, %v1700_v54 }
  0x2c   : > { %v476_v45 = vmul.f32 %v1262_v11, %v1702_v55  ;;  %v477_v46 = vmul.f32 %v1262_v11, %v1704_v56  ;;  %v478_v51 = vmul.f32 %v1262_v11, %v1706_v57  ;;  %v496_v52 = vrot.slane %v463_v37, 2 }
  0x2d   : > { %1423 = vmatpush3.bf16.msra.mxu0 %v2038_v39  ;;  %v497_v12 = vrot.slane %v464_v0, 2  ;;  %v499_v13 = vrot.slane %v465_v1, 2  ;;  %v500_v22 = vrot.slane %v466_v2, 2  ;;  %v502_v62 = vrot.slane %v467_v4, 2 }
  0x2e   : > { %v503_v8 = vrot.slane %v468_v16, 2  ;;  %v505_v9 = vrot.slane %v469_v17, 2  ;;  %v506_v10 = vrot.slane %v470_v5, 2  ;;  %v508_v19 = vrot.slane %v471_v32, 2 }
  0x2f   : > { %v498_v20 = vsel %vm495_vm2, %v496_v52, %v497_v12  ;;  %v501_v18 = vsel %vm495_vm2, %v499_v13, %v500_v22  ;;  %v509_v21 = vrot.slane %v472_v6, 2  ;;  %v511_v14 = vrot.slane %v473_v7, 2 }
  0x30   : > { %v504_v26 = vsel %vm495_vm2, %v502_v62, %v503_v8  ;;  %v507_v28 = vsel %vm495_vm2, %v505_v9, %v506_v10  ;;  %v512_v11 = vrot.slane %v474_v27, 2  ;;  %v514_v30 = vrot.slane %v475_v44, 2 }
  0x31   : > { %v510_v24 = vsel %vm495_vm2, %v508_v19, %v509_v21  ;;  %v515_v31 = vrot.slane %v476_v45, 2  ;;  %v517_v37 = vrot.slane %v477_v46, 2  ;;  %v518_v0 = vrot.slane %v478_v51, 2 }
  0x32   : > { %v513_v63 = vsel %vm495_vm2, %v511_v14, %v512_v11  ;;  %v528_v1 = vadd.f32 %v498_v20, %v449_v25  ;;  %v529_v2 = vadd.f32 %v501_v18, %v450_v53  ;;  %v530_v16 = vadd.f32 %v504_v26, %v451_v33  ;;  %v1264_v25 = vld [vmem:[%s2023_s1 + $0x4] ss:$0 sm:$0xff] }
  0x33   : > { %v516_v4 = vsel %vm495_vm2, %v514_v30, %v515_v31  ;;  %v531_v17 = vadd.f32 %v507_v28, %v452_v61  ;;  %v532_v5 = vadd.f32 %v510_v24, %v453_v29  ;;  %v519_v32 = vsel %vm495_vm2, %v517_v37, %v518_v0 }
  0x34   : > { %v533_v6 = vadd.f32 %v513_v63, %v454_v23  ;;  %v534_v7 = vadd.f32 %v516_v4, %v455_v36  ;;  %v542_v27 = vmul.f32 %v1263_v15, %v1665_v34  ;;  %v535_v39 = vadd.f32 %v519_v32, %v456_v38 }
  0x35   : > { %v543_v44 = vmul.f32 %v1263_v15, %v1675_v40  ;;  %v544_v45 = vmul.f32 %v1263_v15, %v1679_v42  ;;  %v545_v46 = vmul.f32 %v1263_v15, %v1686_v47  ;;  %v546_v53 = vmul.f32 %v1263_v15, %v1690_v49 }
  0x36   : > { %v547_v33 = vmul.f32 %v1263_v15, %v1700_v54  ;;  %v548_v61 = vmul.f32 %v1263_v15, %v1704_v56  ;;  %v549_v29 = vmul.f32 %v1263_v15, %v1708_v58  ;;  %v550_v23 = vadd.f32 %v542_v27, %v528_v1 }
  0x37   : > { %v551_v36 = vadd.f32 %v543_v44, %v529_v2  ;;  %v552_v38 = vadd.f32 %v544_v45, %v530_v16  ;;  %v553_v51 = vadd.f32 %v545_v46, %v531_v17  ;;  %v554_v52 = vadd.f32 %v546_v53, %v532_v5  ;;  %v1265_v46 = vld [vmem:[%s2023_s1 + $0x5] ss:$0 sm:$0xff] }
  0x38   : > { %v555_v12 = vadd.f32 %v547_v33, %v533_v6  ;;  %v556_v13 = vadd.f32 %v548_v61, %v534_v7  ;;  %v557_v22 = vadd.f32 %v549_v29, %v535_v39  ;;  %v564_v62 = vmul.f32 %v1264_v25, %v1665_v34 }
  0x39   : > { %v565_v8 = vmul.f32 %v1264_v25, %v1667_v35  ;;  %v566_v9 = vmul.f32 %v1264_v25, %v1675_v40  ;;  %v567_v10 = vmul.f32 %v1264_v25, %v1677_v41  ;;  %v568_v20 = vmul.f32 %v1264_v25, %v1679_v42 }
  0x3a   : > { %v569_v18 = vmul.f32 %v1264_v25, %v1681_v43  ;;  %v570_v19 = vmul.f32 %v1264_v25, %v1686_v47  ;;  %v571_v21 = vmul.f32 %v1264_v25, %v1688_v48  ;;  %v572_v26 = vmul.f32 %v1264_v25, %v1690_v49 }
  0x3b   : > { %v573_v28 = vmul.f32 %v1264_v25, %v1692_v50  ;;  %v574_v14 = vmul.f32 %v1264_v25, %v1700_v54  ;;  %v575_v11 = vmul.f32 %v1264_v25, %v1702_v55  ;;  %v576_v15 = vmul.f32 %v1264_v25, %v1704_v56 }
  0x3c   : > { %v577_v24 = vmul.f32 %v1264_v25, %v1706_v57  ;;  %v578_v30 = vmul.f32 %v1264_v25, %v1708_v58  ;;  %v579_v31 = vmul.f32 %v1264_v25, %v1710_v59  ;;  %v596_v37 = vrot.slane %v564_v62, 1 }
  0x3d   : > { %v597_v63 = vrot.slane %v565_v8, 1  ;;  %v599_v0 = vrot.slane %v566_v9, 1  ;;  %v600_v1 = vrot.slane %v567_v10, 1  ;;  %v602_v2 = vrot.slane %v568_v20, 1 }
  0x3e   : > { %v603_v4 = vrot.slane %v569_v18, 1  ;;  %v605_v16 = vrot.slane %v570_v19, 1  ;;  %v606_v17 = vrot.slane %v571_v21, 1  ;;  %v608_v6 = vrot.slane %v572_v26, 1 }
  0x3f   : > { %v598_v5 = vsel %vm416_vm1, %v596_v37, %v597_v63  ;;  %v601_v32 = vsel %vm416_vm1, %v599_v0, %v600_v1  ;;  %v609_v7 = vrot.slane %v573_v28, 1  ;;  %v611_v44 = vrot.slane %v574_v14, 1 }
  0x40   : > { %v604_v27 = vsel %vm416_vm1, %v602_v2, %v603_v4  ;;  %v607_v39 = vsel %vm416_vm1, %v605_v16, %v606_v17  ;;  %v612_v45 = vrot.slane %v575_v11, 1  ;;  %v614_v53 = vrot.slane %v576_v15, 1 }
  0x41   : > { %v610_v25 = vsel %vm416_vm1, %v608_v6, %v609_v7  ;;  %v615_v33 = vrot.slane %v577_v24, 1  ;;  %v617_v61 = vrot.slane %v578_v30, 1  ;;  %v618_v62 = vrot.slane %v579_v31, 1 }
  0x42   : > { %v613_v29 = vsel %vm416_vm1, %v611_v44, %v612_v45  ;;  %v628_v8 = vadd.f32 %v598_v5, %v550_v23  ;;  %v629_v9 = vadd.f32 %v601_v32, %v551_v36  ;;  %v630_v20 = vadd.f32 %v604_v27, %v552_v38 }
  0x43   : > { %v616_v10 = vsel %vm416_vm1, %v614_v53, %v615_v33  ;;  %v631_v18 = vadd.f32 %v607_v39, %v553_v51  ;;  %v632_v19 = vadd.f32 %v610_v25, %v554_v52  ;;  %v619_v21 = vsel %vm416_vm1, %v617_v61, %v618_v62  ;;  %v1266_v25 = vld [vmem:[%s2023_s1 + $0x6] ss:$0 sm:$0xff] }
  0x44   : > { %v633_v26 = vadd.f32 %v613_v29, %v555_v12  ;;  %v634_v28 = vadd.f32 %v616_v10, %v556_v13  ;;  %v642_v14 = vmul.f32 %v1265_v46, %v1665_v34  ;;  %v635_v11 = vadd.f32 %v619_v21, %v557_v22 }
  0x45   : > { %v643_v15 = vmul.f32 %v1265_v46, %v1667_v35  ;;  %v644_v24 = vmul.f32 %v1265_v46, %v1675_v40  ;;  %v645_v30 = vmul.f32 %v1265_v46, %v1677_v41  ;;  %v646_v23 = vmul.f32 %v1265_v46, %v1679_v42 }
  0x46   : > { %v647_v36 = vmul.f32 %v1265_v46, %v1681_v43  ;;  %v648_v38 = vmul.f32 %v1265_v46, %v1686_v47  ;;  %v649_v51 = vmul.f32 %v1265_v46, %v1688_v48  ;;  %v650_v52 = vmul.f32 %v1265_v46, %v1690_v49 }
  0x47   : > { %v651_v12 = vmul.f32 %v1265_v46, %v1692_v50  ;;  %v652_v34 = vmul.f32 %v1265_v46, %v1700_v54  ;;  %v653_v35 = vmul.f32 %v1265_v46, %v1702_v55  ;;  %v654_v13 = vmul.f32 %v1265_v46, %v1704_v56 }
  0x48   : > { %v655_v22 = vmul.f32 %v1265_v46, %v1706_v57  ;;  %v656_v31 = vmul.f32 %v1265_v46, %v1708_v58  ;;  %v657_v37 = vmul.f32 %v1265_v46, %v1710_v59  ;;  %v674_v63 = vrot.slane %v642_v14, 2 }
  0x49   : > { %v675_v0 = vrot.slane %v643_v15, 2  ;;  %v677_v1 = vrot.slane %v644_v24, 2  ;;  %v678_v2 = vrot.slane %v645_v30, 2  ;;  %v680_v4 = vrot.slane %v646_v23, 2 }
  0x4a   : > { %v681_v16 = vrot.slane %v647_v36, 2  ;;  %v683_v17 = vrot.slane %v648_v38, 2  ;;  %v684_v5 = vrot.slane %v649_v51, 2  ;;  %v686_v7 = vrot.slane %v650_v52, 2 }
  0x4b   : > { %v676_v32 = vsel %vm495_vm2, %v674_v63, %v675_v0  ;;  %v679_v6 = vsel %vm495_vm2, %v677_v1, %v678_v2  ;;  %v687_v27 = vrot.slane %v651_v12, 2  ;;  %v689_v45 = vrot.slane %v652_v34, 2 }
  0x4c   : > { %v682_v39 = vsel %vm495_vm2, %v680_v4, %v681_v16  ;;  %v685_v44 = vsel %vm495_vm2, %v683_v17, %v684_v5  ;;  %v690_v46 = vrot.slane %v653_v35, 2  ;;  %v692_v33 = vrot.slane %v654_v13, 2 }
  0x4d   : > { %v688_v53 = vsel %vm495_vm2, %v686_v7, %v687_v27  ;;  %v693_v61 = vrot.slane %v655_v22, 2  ;;  %v695_v29 = vrot.slane %v656_v31, 2  ;;  %v696_v10 = vrot.slane %v657_v37, 2 }
  0x4e   : > { %v691_v62 = vsel %vm495_vm2, %v689_v45, %v690_v46  ;;  %v706_v21 = vadd.f32 %v676_v32, %v628_v8  ;;  %v707_v14 = vadd.f32 %v679_v6, %v629_v9  ;;  %v708_v24 = vadd.f32 %v682_v39, %v630_v20  ;;  %v1267_v8 = vld [vmem:[%s2023_s1 + $0x7] ss:$0 sm:$0xff] }
  0x4f   : > { %v694_v15 = vsel %vm495_vm2, %v692_v33, %v693_v61  ;;  %v709_v30 = vadd.f32 %v685_v44, %v631_v18  ;;  %v710_v23 = vadd.f32 %v688_v53, %v632_v19  ;;  %v697_v36 = vsel %vm495_vm2, %v695_v29, %v696_v10  ;;  %v2039_v53 = vld [vmem:[#allocation2_spill] sm:$0xff] }
  0x50   : > { %v711_v38 = vadd.f32 %v691_v62, %v633_v26  ;;  %v712_v51 = vadd.f32 %v694_v15, %v634_v28  ;;  %v720_v52 = vmul.f32 %v1266_v25, %v1675_v40  ;;  %v713_v12 = vadd.f32 %v697_v36, %v635_v11 }
  0x51   : > { %v721_v34 = vmul.f32 %v1266_v25, %v1679_v42  ;;  %v722_v35 = vmul.f32 %v1266_v25, %v1686_v47  ;;  %v723_v13 = vmul.f32 %v1266_v25, %v1690_v49  ;;  %v724_v9 = vmul.f32 %v1266_v25, %v1700_v54 }
  0x52   : > { %v725_v20 = vmul.f32 %v1266_v25, %v1704_v56  ;;  %v726_v18 = vmul.f32 %v1266_v25, %v1708_v58  ;;  %v727_v19 = vmul.f32 %v1266_v25, %v1712_v60  ;;  %v728_v26 = vadd.f32 %v720_v52, %v706_v21 }
  0x53   : > { %v729_v28 = vadd.f32 %v721_v34, %v707_v14  ;;  %v730_v11 = vadd.f32 %v722_v35, %v708_v24  ;;  %v731_v22 = vadd.f32 %v723_v13, %v709_v30  ;;  %v732_v31 = vadd.f32 %v724_v9, %v710_v23  ;;  %v1268_v13 = vld [vmem:[%s2023_s1 + $0x8] ss:$0 sm:$0xff] }
  0x54   : > { %v733_v37 = vadd.f32 %v725_v20, %v711_v38  ;;  %v734_v63 = vadd.f32 %v726_v18, %v712_v51  ;;  %v735_v0 = vadd.f32 %v727_v19, %v713_v12  ;;  %v742_v1 = vmul.f32 %v1267_v8, %v1675_v40 }
  0x55   : > { %v743_v2 = vmul.f32 %v1267_v8, %v1677_v41  ;;  %v744_v4 = vmul.f32 %v1267_v8, %v1679_v42  ;;  %v745_v16 = vmul.f32 %v1267_v8, %v1681_v43  ;;  %v746_v17 = vmul.f32 %v1267_v8, %v1686_v47 }
  0x56   : > { %v747_v5 = vmul.f32 %v1267_v8, %v1688_v48  ;;  %v748_v32 = vmul.f32 %v1267_v8, %v1690_v49  ;;  %v749_v6 = vmul.f32 %v1267_v8, %v1692_v50  ;;  %v750_v7 = vmul.f32 %v1267_v8, %v1700_v54 }
  0x57   : > { %v751_v27 = vmul.f32 %v1267_v8, %v1702_v55  ;;  %v752_v39 = vmul.f32 %v1267_v8, %v1704_v56  ;;  %v753_v44 = vmul.f32 %v1267_v8, %v1706_v57  ;;  %v754_v45 = vmul.f32 %v1267_v8, %v1708_v58 }
  0x58   : > { %v755_v46 = vmul.f32 %v1267_v8, %v1710_v59  ;;  %v756_v25 = vmul.f32 %v1267_v8, %v1712_v60  ;;  %v2040_v33 = vunpack.c.l.bf16 %v2039_v53  ;;  %v774_v29 = vrot.slane %v742_v1, 1 }
  0x59   : > { %v775_v62 = vrot.slane %v743_v2, 1  ;;  %v777_v10 = vrot.slane %v744_v4, 1  ;;  %v778_v21 = vrot.slane %v745_v16, 1  ;;  %v780_v14 = vrot.slane %v746_v17, 1 }
  0x5a   : > { %v757_v61 = vmul.f32 %v1267_v8, %v2040_v33  ;;  %v781_v15 = vrot.slane %v747_v5, 1  ;;  %v783_v24 = vrot.slane %v748_v32, 1  ;;  %v784_v30 = vrot.slane %v749_v6, 1 }
  0x5b   : > { %v776_v23 = vsel %vm416_vm1, %v774_v29, %v775_v62  ;;  %v779_v36 = vsel %vm416_vm1, %v777_v10, %v778_v21  ;;  %v786_v38 = vrot.slane %v750_v7, 1  ;;  %v787_v51 = vrot.slane %v751_v27, 1 }
  0x5c   : > { %v782_v52 = vsel %vm416_vm1, %v780_v14, %v781_v15  ;;  %v785_v12 = vsel %vm416_vm1, %v783_v24, %v784_v30  ;;  %v789_v34 = vrot.slane %v752_v39, 1  ;;  %v790_v35 = vrot.slane %v753_v44, 1  ;;  %v1269_v30 = vld [vmem:[%s2024_s2] ss:$0 sm:$0xff] }
  0x5d   : > { %v788_v8 = vsel %vm416_vm1, %v786_v38, %v787_v51  ;;  %v792_v9 = vrot.slane %v754_v45, 1  ;;  %v793_v20 = vrot.slane %v755_v46, 1  ;;  %v795_v18 = vrot.slane %v756_v25, 1 }
  0x5e   : > { %v791_v19 = vsel %vm416_vm1, %v789_v34, %v790_v35  ;;  %v796_v1 = vrot.slane %v757_v61, 1  ;;  %v806_v2 = vadd.f32 %v776_v23, %v728_v26  ;;  %v807_v4 = vadd.f32 %v779_v36, %v729_v28 }
  0x5f   : > { %v794_v16 = vsel %vm416_vm1, %v792_v9, %v793_v20  ;;  %v808_v17 = vadd.f32 %v782_v52, %v730_v11  ;;  %v809_v5 = vadd.f32 %v785_v12, %v731_v22  ;;  %v810_v32 = vadd.f32 %v788_v8, %v732_v31 }
  0x60   : > { %v797_v6 = vsel %vm416_vm1, %v795_v18, %v796_v1  ;;  %v811_v7 = vadd.f32 %v791_v19, %v733_v37  ;;  %v812_v27 = vadd.f32 %v794_v16, %v734_v63  ;;  %v820_v39 = vmul.f32 %v1268_v13, %v1675_v40 }
  0x61   : > { %v813_v44 = vadd.f32 %v797_v6, %v735_v0  ;;  %v821_v45 = vmul.f32 %v1268_v13, %v1677_v41  ;;  %v822_v46 = vmul.f32 %v1268_v13, %v1679_v42  ;;  %v823_v25 = vmul.f32 %v1268_v13, %v1681_v43 }
  0x62   : > { %v824_v26 = vmul.f32 %v1268_v13, %v1686_v47  ;;  %v825_v28 = vmul.f32 %v1268_v13, %v1688_v48  ;;  %v826_v11 = vmul.f32 %v1268_v13, %v1690_v49  ;;  %v827_v22 = vmul.f32 %v1268_v13, %v1692_v50 }
  0x63   : > { %v828_v31 = vmul.f32 %v1268_v13, %v1700_v54  ;;  %v829_v37 = vmul.f32 %v1268_v13, %v1702_v55  ;;  %v830_v40 = vmul.f32 %v1268_v13, %v1704_v56  ;;  %v831_v41 = vmul.f32 %v1268_v13, %v1706_v57 }
  0x64   : > { %v832_v42 = vmul.f32 %v1268_v13, %v1708_v58  ;;  %v833_v43 = vmul.f32 %v1268_v13, %v1710_v59  ;;  %v834_v47 = vmul.f32 %v1268_v13, %v1712_v60  ;;  %v2041_v48 = vmov %v2040_v33 }
  0x65   : > { %v835_v63 = vmul.f32 %v1268_v13, %v2041_v48  ;;  %v852_v49 = vrot.slane %v820_v39, 2  ;;  %v853_v0 = vrot.slane %v821_v45, 2  ;;  %v855_v50 = vrot.slane %v822_v46, 2 }
  0x66   : > { %v856_v33 = vrot.slane %v823_v25, 2  ;;  %v858_v54 = vrot.slane %v824_v26, 2  ;;  %v859_v61 = vrot.slane %v825_v28, 2  ;;  %v861_v55 = vrot.slane %v826_v11, 2 }
  0x67   : > { %v862_v29 = vrot.slane %v827_v22, 2  ;;  %v854_v56 = vsel %vm495_vm2, %v852_v49, %v853_v0  ;;  %v864_v58 = vrot.slane %v828_v31, 2  ;;  %v865_v62 = vrot.slane %v829_v37, 2 }
  0x68   : > { %v857_v57 = vsel %vm495_vm2, %v855_v50, %v856_v33  ;;  %v860_v59 = vsel %vm495_vm2, %v858_v54, %v859_v61  ;;  %v867_v53 = vrot.slane %v830_v40, 2  ;;  %v868_v10 = vrot.slane %v831_v41, 2 }
  0x69   : > { %v863_v60 = vsel %vm495_vm2, %v861_v55, %v862_v29  ;;  %v866_v21 = vsel %vm495_vm2, %v864_v58, %v865_v62  ;;  %v870_v14 = vrot.slane %v832_v42, 2  ;;  %v871_v15 = vrot.slane %v833_v43, 2 }
  0x6a   : > { %v873_v24 = vrot.slane %v834_v47, 2  ;;  %v869_v23 = vsel %vm495_vm2, %v867_v53, %v868_v10  ;;  %v874_v36 = vrot.slane %v835_v63, 2  ;;  %v884_v38 = vadd.f32 %v854_v56, %v806_v2 }
  0x6b   : > { %v885_v51 = vadd.f32 %v857_v57, %v807_v4  ;;  %v872_v52 = vsel %vm495_vm2, %v870_v14, %v871_v15  ;;  %v886_v12 = vadd.f32 %v860_v59, %v808_v17  ;;  %v887_v34 = vadd.f32 %v863_v60, %v809_v5 }
  0x6c   : > { %v888_v35 = vadd.f32 %v866_v21, %v810_v32  ;;  %v875_v13 = vsel %vm495_vm2, %v873_v24, %v874_v36  ;;  %v889_v8 = vadd.f32 %v869_v23, %v811_v7  ;;  %v890_v9 = vadd.f32 %v872_v52, %v812_v27 }
  0x6d   : > { %v899_v20 = vadd.f32 %v1269_v30, %v884_v38  ;;  %v891_v18 = vadd.f32 %v875_v13, %v813_v44  ;;  %v900_v19 = vadd.f32 %v1269_v30, %v885_v51  ;;  %v901_v1 = vadd.f32 %v1269_v30, %v886_v12 }
  0x6e   : > { %v1930_v16 = vadd.f32 %v1269_v30, %v887_v34  ;;  %v1932_v6 = vadd.f32 %v1269_v30, %v888_v35  ;;  %v1934_v39 = vadd.f32 %v1269_v30, %v889_v8  ;;  %v1936_v2 = vadd.f32 %v1269_v30, %v890_v9 }
  0x6f   : > { %v907_v4 = vsub.f32 0.0, %v899_v20  ;;  %v1938_v17 = vadd.f32 %v1269_v30, %v891_v18  ;;  %v908_v5 = vsub.f32 0.0, %v900_v19  ;;  %v909_v32 = vsub.f32 0.0, %v901_v1 }
  0x70   : > { %v910_v7 = vsub.f32 0.0, %v1930_v16  ;;  %v911_v27 = vsub.f32 0.0, %v1932_v6  ;;  %v912_v44 = vsub.f32 0.0, %v1934_v39  ;;  %v913_v45 = vsub.f32 0.0, %v1936_v2 }
  0x71   : > { %v915_v46 = vmul.f32 1.442695, %v907_v4  ;;  %v914_v25 = vsub.f32 0.0, %v1938_v17  ;;  %v917_v26 = vmul.f32 1.442695, %v908_v5 }
  0x72   : > { %v919_v28 = vmul.f32 1.442695, %v909_v32  ;;  %v921_v11 = vmul.f32 1.442695, %v910_v7  ;;  %v923_v22 = vmul.f32 1.442695, %v911_v27 }
  0x73   : > { %1460 = vpow2.f32 %v915_v46  ;;  %v925_v31 = vmul.f32 1.442695, %v912_v44  ;;  %v927_v37 = vmul.f32 1.442695, %v913_v45  ;;  %v929_v40 = vmul.f32 1.442695, %v914_v25 }
  0x74   : > { %1462 = vpow2.f32 %v917_v26  ;;  %v1080_v45 = vld [vmem:[%s2027_s5 + $0x10] sm:$0xff]  ;;  %v1081_v46 = vld [vmem:[%s2027_s5 + $0x18] sm:$0xff]  ;;  %v1082_v26 = vld [vmem:[%s2027_s5 + $0x20] sm:$0xff] }
  0x75   : > { %1464 = vpow2.f32 %v919_v28  ;;  %v1428_v25 = vpack.c.bf16 %v1081_v46, %v1080_v45  ;;  %v1083_v28 = vld [vmem:[%s2027_s5 + $0x28] sm:$0xff] }
  0x76   : > { %1466 = vpow2.f32 %v921_v11  ;;  %v1431_v11 = vpack.c.bf16 %v1083_v28, %v1082_v26 }
  0x77   : > { %1468 = vpow2.f32 %v923_v22  ;;  %v1084_v22 = vld [vmem:[%s2027_s5 + $0x30] sm:$0xff] }
  0x78   : > { %1470 = vpow2.f32 %v925_v31  ;;  %v1085_v31 = vld [vmem:[%s2027_s5 + $0x38] sm:$0xff] }
  0x79   : > { %1472 = vpow2.f32 %v927_v37  ;;  %v1434_v37 = vpack.c.bf16 %v1085_v31, %v1084_v22 }
  0x7a   : > { %1474 = vpow2.f32 %v929_v40  ;;  %v1086_v40 = vld [vmem:[%s2027_s5 + $0x40] sm:$0xff] }
  0x7d   : > { %v1461_v41 = vpop.eup %1460 }
  0x7e   : > { %v1463_v42 = vpop.eup %1462  ;;  %v931_v43 = vadd.f32 1.0, %v1461_v41  ;;  %v1087_v41 = vld [vmem:[%s2027_s5 + $0x48] sm:$0xff] }
  0x7f   : > { %v1465_v47 = vpop.eup %1464  ;;  %v932_v48 = vadd.f32 1.0, %v1463_v42  ;;  %v1437_v42 = vpack.c.bf16 %v1087_v41, %v1086_v40 }
  0x80   : > { %v1467_v63 = vpop.eup %1466  ;;  %v933_v49 = vadd.f32 1.0, %v1465_v47  ;;  %1476 = vrcp.f32 %v931_v43  ;;  %v1088_v43 = vld [vmem:[%s2027_s5 + $0x50] sm:$0xff]  ;;  %v1089_v47 = vld [vmem:[%s2027_s5 + $0x58] sm:$0xff] }
  0x81   : > { %v1469_v0 = vpop.eup %1468  ;;  %v934_v50 = vadd.f32 1.0, %v1467_v63  ;;  %1478 = vrcp.f32 %v932_v48  ;;  %v1440_v48 = vpack.c.bf16 %v1089_v47, %v1088_v43  ;;  %v1090_v63 = vld [vmem:[%s2027_s5 + $0x60] sm:$0xff] }
  0x82   : > { %v1471_v33 = vpop.eup %1470  ;;  %v935_v54 = vadd.f32 1.0, %v1469_v0  ;;  %1480 = vrcp.f32 %v933_v49  ;;  %v1091_v49 = vld [vmem:[%s2027_s5 + $0x68] sm:$0xff] }
  0x83   : > { %v1473_v61 = vpop.eup %1472  ;;  %v936_v55 = vadd.f32 1.0, %v1471_v33  ;;  %1482 = vrcp.f32 %v934_v50  ;;  %v1443_v0 = vpack.c.bf16 %v1091_v49, %v1090_v63  ;;  %v1092_v50 = vld [vmem:[%s2027_s5 + $0x70] sm:$0xff]  ;;  %v1093_v33 = vld [vmem:[%s2027_s5 + $0x78] sm:$0xff] }
  0x84   : > { %v1475_v29 = vpop.eup %1474  ;;  %v937_v56 = vadd.f32 1.0, %v1473_v61  ;;  %1484 = vrcp.f32 %v935_v54  ;;  %v1446_v54 = vpack.c.bf16 %v1093_v33, %v1092_v50  ;;  %v1001_v61 = vld [vmem:[%s2026_s4] sm:$0x1] }
  0x85   : > { %v938_v57 = vadd.f32 1.0, %v1475_v29  ;;  %1486 = vrcp.f32 %v936_v55 }
  0x86   : > { %1488 = vrcp.f32 %v937_v56 }
  0x87   : > { %1490 = vrcp.f32 %v938_v57 }
  0x8a   : > { %v1477_v58 = vpop.eup %1476 }
  0x8b   : > { %v1479_v62 = vpop.eup %1478  ;;  %v947_v59 = vmul.f32 %v1477_v58, %v899_v20 }
  0x8c   : > { %v1481_v60 = vpop.eup %1480  ;;  %v948_v53 = vmul.f32 %v1479_v62, %v900_v19 }
  0x8d   : > { %v1483_v10 = vpop.eup %1482  ;;  %v949_v21 = vmul.f32 %v1481_v60, %v901_v1 }
  0x8e   : > { %v1485_v14 = vpop.eup %1484  ;;  %v950_v15 = vmul.f32 %v1483_v10, %v1930_v16  ;;  %v1276_v24 = vpack.c.bf16 %v948_v53, %v947_v59  ;;  %v971_v30 = vadd.f32 %v948_v53, %v947_v59  ;;  %v1094_v53 = vld [vmem:[%s2028_s6] sm:$0x1] }
  0x8f   : > { %v1487_v23 = vpop.eup %1486  ;;  %v951_v38 = vmul.f32 %v1485_v14, %v1932_v6 }
  0x90   : > { %v1489_v36 = vpop.eup %1488  ;;  %v952_v51 = vmul.f32 %v1487_v23, %v1934_v39  ;;  %1277 = vst [vmem:[%s311_s26] sm:$0xff] %v1276_v24   ;;  %v1281_v52 = vpack.c.bf16 %v950_v15, %v949_v21  ;;  %v972_v12 = vadd.f32 %v971_v30, %v949_v21 }
  0x91   : > { %v1491_v34 = vpop.eup %1490  ;;  %v953_v35 = vmul.f32 %v1489_v36, %v1936_v2  ;;  %v1078_v2 = vld [vmem:[%s2027_s5] sm:$0xff] }
  0x92   : > { %v954_v13 = vmul.f32 %v1491_v34, %v1938_v17  ;;  %1293 = vst [vmem:[%s311_s26 + $0x8] sm:$0xff] %v1281_v52   ;;  %v1286_v8 = vpack.c.bf16 %v952_v51, %v951_v38  ;;  %v973_v9 = vadd.f32 %v972_v12, %v950_v15  ;;  %v1079_v17 = vld [vmem:[%s2027_s5 + $0x8] sm:$0xff] }
  0x93   : > { %v1425_v44 = vpack.c.bf16 %v1079_v17, %v1078_v2 }
  0x94   : > { %1294 = vst [vmem:[%s311_s26 + $0x10] sm:$0xff] %v1286_v8   ;;  %v1291_v20 = vpack.c.bf16 %v954_v13, %v953_v35  ;;  %v974_v18 = vadd.f32 %v973_v9, %v951_v38 }
  0x95   : > { %1426 = vmatpush3.bf16.msra.mxu1 %v1425_v44 }
  0x96   : > { %1295 = vst [vmem:[%s311_s26 + $0x18] sm:$0xff] %v1291_v20   ;;  %v975_v19 = vadd.f32 %v974_v18, %v952_v51  ;;  %1427 = vmatprep.subr.bf16.mxu1 %v1508_v3 }
  0x98   : > { %v976_v1 = vadd.f32 %v975_v19, %v953_v35 }
  0x99   : > { %1429 = vmatpush3.bf16.msra.mxu1 %v1428_v25 }
  0x9a   : > { %v977_v16 = vadd.f32 %v976_v1, %v954_v13  ;;  %1430 = vmatprep.subr.bf16.mxu1 %v1508_v3 }
  0x9c   : > { %v978_v6 = vrot.slane %v977_v16, 4 }
  0x9d   : > { %1432 = vmatpush3.bf16.msra.mxu1 %v1431_v11 }
  0x9e   : > { %v979_v39 = vadd.f32 %v978_v6, %v977_v16  ;;  %1433 = vmatprep.subr.bf16.mxu1 %v1508_v3 }
  0xa0   : > { %v980_v4 = vrot.slane %v979_v39, 2 }
  0xa1   : > { %1435 = vmatpush3.bf16.msra.mxu1 %v1434_v37 }
  0xa2   : > { %v981_v5 = vadd.f32 %v980_v4, %v979_v39  ;;  %1436 = vmatprep.subr.bf16.mxu1 %v1508_v3 }
  0xa4   : > { %v982_v32 = vrot.slane %v981_v5, 1 }
  0xa5   : > { %1438 = vmatpush3.bf16.msra.mxu1 %v1437_v42 }
  0xa6   : > { %v983_v7 = vadd.f32 %v982_v32, %v981_v5  ;;  %1439 = vmatprep.subr.bf16.mxu1 %v1508_v3 }
  0xa8   : > { %v984_v27 = vmul.f32 0.015625, %v983_v7 }
  0xa9   : > { %1441 = vmatpush3.bf16.msra.mxu1 %v1440_v48 }
  0xaa   : > { %1363 = vmatmul.mubr.f32.vlgmr.msra.gmra.mrb[0].mxu0 %v984_v27  ;;  %1442 = vmatprep.subr.bf16.mxu1 %v1508_v3 }
  0xad   : > { %1444 = vmatpush3.bf16.msra.mxu1 %v1443_v0 }
  0xae   : > { %1445 = vmatprep.subr.bf16.mxu1 %v1508_v3 }
  0xb1   : > { %1447 = vmatpush3.bf16.msra.mxu1 %v1446_v54 }
 0x17d   : > { %v1068_v55 = vpop.f32.mrb[0].mxu0 }
 0x17e   : > { %v1069_v29 = vadd.f32 %v1068_v55, %v1001_v61  ;;  %v1364_v56 = vpop.f32.mrb[1].mxu0 }
 0x180   : > { %v1072_v57 = vsub.f32 0.0, %v1069_v29 }
 0x182   : > { %v1073_v58 = vmul.f32 1.442695, %v1072_v57 }
 0x184   : > { %1492 = vpow2.f32 %v1073_v58 }
 0x18e   : > { %v1493_v3 = vpop.eup %1492 }
 0x18f   : > { %v1075_v62 = vadd.f32 1.0, %v1493_v3 }
 0x191   : > { %1494 = vrcp.f32 %v1075_v62 }
 0x19b   : > { %v1495_v59 = vpop.eup %1494 }
 0x19c   : > { %v1077_v60 = vmul.f32 %v1495_v59, %v1069_v29 }
 0x19e   : > { %1398 = vmatmul.mubr.f32.vlgmr.msra.gmra.mrb[0].mxu1 %v1077_v60 }
 0x271   : > { %v1161_v10 = vpop.f32.mrb[0].mxu1 }
 0x272   : > { %v1162_v21 = vadd.f32 %v1161_v10, %v1094_v53  ;;  %v1399_v14 = vpop.f32.mrb[1].mxu1 }
 0x274   : > { %v1165_v15 = vsub.f32 0.0, %v1162_v21 }
 0x276   : > { %v1166_v24 = vmul.f32 1.442695, %v1165_v15 }
 0x278   : > { %1496 = vpow2.f32 %v1166_v24 }
 0x282   : > { %v1497_v30 = vpop.eup %1496 }
 0x283   : > { %v1168_v23 = vadd.f32 1.0, %v1497_v30 }
 0x285   : > { %1498 = vrcp.f32 %v1168_v23 }
 0x28f   : > { %v1499_v36 = vpop.eup %1498 }
 0x290   : > { %1171 = vst [vmem:[%s314_s25] sm:$0x1] %v1499_v36 }
 0x291 PF: > { %s19_s27 = sadd.s32 1, %s1506_s27  }
 0x292   : > { %p16_p4 = scmp.ge.s32.totalorder %s19_s27, 4  }
 0x294   :  { %18 = sbr.rel (!%p16_p4) target bundleno = 1 (0x1), region = 90 }

// kernel: cnn_encoder_forward.15
= control target key start
LH: loop header
LB: loop body
LE: loop exit
PB: predicated region body
PF: predicated region fallthrough
CT: control target
= control target key end

     0   :  { %s1109_s27 = smov 0   ;;  %s1406_s0 = inlined_call_operand.vmem [shape: bf16[2,20,5,128], index: 0, kind: input, shape index: {}]   ;;  %s1407_s1 = inlined_call_operand.vmem [shape: f32[9,1,1,128], index: 1, kind: input, shape index: {}]   ;;  %s1408_s2 = inlined_call_operand.vmem [shape: f32[1,1,128], index: 2, kind: input, shape index: {}]   ;;  %s1409_s3 = inlined_call_operand.vmem [shape: f32[128,128], index: 3, kind: input, shape index: {}]   ;;  %s1410_s4 = inlined_call_operand.vmem [shape: f32[1,128], index: 4, kind: input, shape index: {}]   ;;  %s1411_s5 = inlined_call_operand.vmem [shape: f32[128,128], index: 5, kind: input, shape index: {}]   ;;  %s1412_s6 = inlined_call_operand.vmem [shape: f32[1,128], index: 6, kind: input, shape index: {}]   ;;  %s1413_s7 = inlined_call_operand.vmem [shape: bf16[2,4,4,128], index: 7, kind: output, shape index: {0}]   ;;  %s1414_s8 = inlined_call_operand.vmem [shape: f32[2,1,128], index: 8, kind: output, shape index: {1}]  }
   0x1 LB: > { %s844_s28 = sadd.s32 4294967295, %s1059_s27   ;;  %p848_p0 = scmp.ge.s32.totalorder %s1059_s27, 1  ;;  %s1059_s27 = sphi %s1109_s27, %s19_s27  }
   0x2   : > { %p265_p1 = scmp.lt.s32.totalorder %s1059_s27, 3 }
   0x4   : > { %p266_p2 = pnand %p848_p0, %p265_p1 }
   0x5   : > { %v577_v0 = vld [vmem:[%s1409_s3] sm:$0xff] (!%p266_p2)  ;;  %v578_v1 = vld [vmem:[%s1409_s3 + $0x8] sm:$0xff] (!%p266_p2)  ;;  %v579_v2 = vld [vmem:[%s1409_s3 + $0x10] sm:$0xff] (!%p266_p2)  ;;  %v1061_v3 = vmov (!%p266_p2), 0.0|0.0   ;;  %vm1062_vm0 = vmmov (!%p266_p2), 0   ;;  %v1063_v6 = vmov (!%p266_p2), 0.0  }
   0x6   : > { %269 = sbr.rel (%p266_p2) target bundleno = 587 (0x24b), region = 48  ;;  %969 = vmatprep.subr.bf16.mxu0 (!%p266_p2), %v1061_v3  ;;  %v970_v4 = vpack.c.bf16 (!%p266_p2), %v578_v1, %v577_v0  ;;  %v580_v5 = vld [vmem:[%s1409_s3 + $0x18] sm:$0xff] (!%p266_p2)  ;;  %931 = vmatprep.mubr.msk.f32.mxu0 (!%p266_p2), %vm1062_vm0, %v1063_v6  ;;  %p302_p3 = scmp.lt.s32.totalorder (!%p266_p2), %s844_s28, 1  ;;  %v581_v8 = vld [vmem:[%s1409_s3 + $0x20] sm:$0xff] (!%p266_p2)  ;;  %v582_v9 = vld [vmem:[%s1409_s3 + $0x28] sm:$0xff] (!%p266_p2)  ;;  %vm561_vm1 = vcmask (!%p266_p2), 1043456  }
   0x7   : > { %993 = vmatprep.subr.bf16.mxu1 (!%p266_p2), %v1061_v3  ;;  %966 = vmatprep.mubr.msk.f32.mxu1 (!%p266_p2), %vm1062_vm0, %v1063_v6  ;;  %v973_v7 = vpack.c.bf16 (!%p266_p2), %v580_v5, %v579_v2  ;;  %v1143_v10 = vld [vmem:[%s1409_s3 + $0x30] sm:$0xff] (!%p266_p2)  ;;  %v1148_v11 = vld [vmem:[%s1409_s3 + $0x38] sm:$0xff] (!%p266_p2)  ;;  %v1153_v12 = vld [vmem:[%s1409_s3 + $0x40] sm:$0xff] (!%p266_p2)  ;;  %v976_v18 = vpack.c.bf16 (!%p266_p2), %v582_v9, %v581_v8 }
   0x8   : > { %971 = vmatpush3.bf16.msra.mxu0 (!%p266_p2), %v970_v4  ;;  %v1158_v13 = vld [vmem:[%s1409_s3 + $0x48] sm:$0xff] (!%p266_p2)  ;;  %v1163_v14 = vld [vmem:[%s1409_s3 + $0x50] sm:$0xff] (!%p266_p2)  ;;  %v1168_v15 = vld [vmem:[%s1409_s3 + $0x58] sm:$0xff] (!%p266_p2)  ;;  %v979_v22 = vpack.c.bf16 (!%p266_p2), %v1148_v11, %v1143_v10 }
   0x9   : > { %972 = vmatprep.subr.bf16.mxu0 (!%p266_p2), %v1061_v3  ;;  %v1174_v16 = vld [vmem:[%s1409_s3 + $0x60] sm:$0xff] (!%p266_p2)  ;;  %v1179_v17 = vld [vmem:[%s1409_s3 + $0x68] sm:$0xff] (!%p266_p2)  ;;  %v1184_v19 = vld [vmem:[%s1409_s3 + $0x70] sm:$0xff] (!%p266_p2)  ;;  %v982_v23 = vpack.c.bf16 (!%p266_p2), %v1158_v13, %v1153_v12  ;;  %v985_v24 = vpack.c.bf16 (!%p266_p2), %v1168_v15, %v1163_v14 }
   0xa   : > { %v1189_v20 = vld [vmem:[%s1409_s3 + $0x78] sm:$0xff] (!%p266_p2)  ;;  %v852_v21 = vld [vmem:[%s1407_s1] ss:$0 sm:$0xff] (!%p266_p2)  ;;  %v988_v28 = vpack.c.bf16 (!%p266_p2), %v1179_v17, %v1174_v16  ;;  %v853_v42 = vld [vmem:[%s1407_s1 + $0x1] ss:$0 sm:$0xff] (!%p266_p2) }
   0xb   : > { %v991_v35 = vpack.c.bf16 (!%p266_p2), %v1189_v20, %v1184_v19  ;;  %v854_v49 = vld [vmem:[%s1407_s1 + $0x2] ss:$0 sm:$0xff] (!%p266_p2)  ;;  %v855_v10 = vld [vmem:[%s1407_s1 + $0x3] ss:$0 sm:$0xff] (!%p266_p2) }
   0xc   : > { %974 = vmatpush3.bf16.msra.mxu0 (!%p266_p2), %v973_v7 }
   0xd   : > { %s1416_s28 = smov (!%p302_p3, %s844_s28), 1  ;;  %975 = vmatprep.subr.bf16.mxu0 %v1061_v3 }
   0xe   : > { %s1017_s11 = smul.u32 80, %s1416_s28  ;;  %s864_s23 = sshll.u32 %s1416_s28, 3 }
   0xf   : > { %s311_s26 = scalar_lea.vmem %s1413_s7, %s864_s23  ;;  %s314_s25 = scalar_lea.vmem %s1414_s8, %s1416_s28 }
  0x10   : > { %s1194_s22 = scalar_lea.vmem %s1406_s0, %s1017_s11  ;;  %977 = vmatpush3.bf16.msra.mxu0 %v976_v18 }
  0x11   : > { %v315_v25 = vld [vmem:[%s1194_s22] sm:$0x7]  ;;  %v316_v26 = vld [vmem:[%s1194_s22 + $0x4] sm:$0x7]  ;;  %v317_v27 = vld [vmem:[%s1194_s22 + $0x8] sm:$0x7]  ;;  %978 = vmatprep.subr.bf16.mxu0 %v1061_v3 }
  0x12   : > { %v318_v29 = vld [vmem:[%s1194_s22 + $0xc] sm:$0x7]  ;;  %v1213_v30 = vld [vmem:[%s1194_s22 + $0x10] sm:$0x7]  ;;  %v320_v31 = vld [vmem:[%s1194_s22 + $0x14] sm:$0x7]  ;;  %v333_v32 = vunpack.c.l.bf16 %v315_v25  ;;  %v1216_v33 = vunpack.c.l.bf16 %v316_v26  ;;  %v1218_v34 = vunpack.c.l.bf16 %v317_v27 }
  0x13   : > { %v1223_v36 = vld [vmem:[%s1194_s22 + $0x18] sm:$0x7]  ;;  %v1226_v37 = vld [vmem:[%s1194_s22 + $0x1c] sm:$0x7]  ;;  %v1229_v38 = vld [vmem:[%s1194_s22 + $0x20] sm:$0x7]  ;;  %v1231_v39 = vunpack.c.l.bf16 %v318_v29  ;;  %v337_v40 = vunpack.c.l.bf16 %v1213_v30  ;;  %v338_v41 = vunpack.c.l.bf16 %v320_v31 }
  0x14   : > { %v1238_v43 = vld [vmem:[%s1194_s22 + $0x24] sm:$0x7]  ;;  %v1241_v44 = vld [vmem:[%s1194_s22 + $0x28] sm:$0x7]  ;;  %v1244_v45 = vld [vmem:[%s1194_s22 + $0x2c] sm:$0x7]  ;;  %v339_v46 = vunpack.c.l.bf16 %v1223_v36  ;;  %v340_v47 = vunpack.c.l.bf16 %v1226_v37  ;;  %v341_v48 = vunpack.c.l.bf16 %v1229_v38  ;;  %v366_v50 = vmul.f32 %v852_v21, %v333_v32  ;;  %980 = vmatpush3.bf16.msra.mxu0 %v979_v22 }
  0x15   : > { %v327_v51 = vld [vmem:[%s1194_s22 + $0x30] sm:$0x7]  ;;  %v328_v52 = vld [vmem:[%s1194_s22 + $0x34] sm:$0x7]  ;;  %v329_v53 = vld [vmem:[%s1194_s22 + $0x3c] sm:$0x7]  ;;  %v342_v54 = vunpack.c.l.bf16 %v1238_v43  ;;  %v343_v55 = vunpack.c.l.bf16 %v1241_v44  ;;  %v344_v56 = vunpack.c.l.bf16 %v1244_v45  ;;  %v367_v57 = vmul.f32 %v852_v21, %v1216_v33  ;;  %981 = vmatprep.subr.bf16.mxu0 %v1061_v3 }
  0x16   : > { %v330_v58 = vld [vmem:[%s1194_s22 + $0x40] sm:$0x7]  ;;  %v331_v59 = vld [vmem:[%s1194_s22 + $0x44] sm:$0x7]  ;;  %v332_v60 = vld [vmem:[%s1194_s22 + $0x48] sm:$0x7]  ;;  %v345_v61 = vunpack.c.l.bf16 %v327_v51  ;;  %v346_v62 = vunpack.c.l.bf16 %v328_v52  ;;  %v347_v63 = vunpack.c.l.bf16 %v329_v53  ;;  %v368_v0 = vmul.f32 %v852_v21, %v1218_v34 }
  0x17   : > { %v348_v1 = vunpack.c.l.bf16 %v330_v58  ;;  %v349_v2 = vunpack.c.l.bf16 %v331_v59  ;;  %v350_v4 = vunpack.c.l.bf16 %v332_v60  ;;  %v369_v5 = vmul.f32 %v852_v21, %v1231_v39  ;;  %v856_v31 = vld [vmem:[%s1407_s1 + $0x4] ss:$0 sm:$0xff] }
  0x18   : > { %v376_v6 = vmul.f32 %v853_v42, %v338_v41  ;;  %v377_v7 = vmul.f32 %v853_v42, %v339_v46  ;;  %v378_v8 = vmul.f32 %v853_v42, %v340_v47  ;;  %v379_v9 = vmul.f32 %v853_v42, %v341_v48  ;;  %983 = vmatpush3.bf16.msra.mxu0 %v982_v23 }
  0x19   : > { %v390_v11 = vmul.f32 %v854_v49, %v333_v32  ;;  %v391_v18 = vmul.f32 %v854_v49, %v1216_v33  ;;  %v392_v21 = vmul.f32 %v854_v49, %v1218_v34  ;;  %v393_v22 = vmul.f32 %v854_v49, %v1231_v39  ;;  %984 = vmatprep.subr.bf16.mxu0 %v1061_v3 }
  0x1a   : > { %v380_v25 = vadd.f32 %v376_v6, %v366_v50  ;;  %v381_v26 = vadd.f32 %v377_v7, %v367_v57  ;;  %v382_v27 = vadd.f32 %v378_v8, %v368_v0  ;;  %v383_v29 = vadd.f32 %v379_v9, %v369_v5  ;;  %v857_v50 = vld [vmem:[%s1407_s1 + $0x5] ss:$0 sm:$0xff]  ;;  %v858_v8 = vld [vmem:[%s1407_s1 + $0x6] ss:$0 sm:$0xff] }
  0x1b   : > { %v398_v41 = vrot.slane %v390_v11, 1  ;;  %v399_v42 = vrot.slane %v391_v18, 1  ;;  %v400_v44 = vrot.slane %v392_v21, 1  ;;  %v401_v45 = vrot.slane %v393_v22, 1  ;;  %v859_v21 = vld [vmem:[%s1407_s1 + $0x7] ss:$0 sm:$0xff] }
  0x1c   : > { %v416_v32 = vmul.f32 %v855_v10, %v343_v55  ;;  %v417_v51 = vmul.f32 %v855_v10, %v344_v56  ;;  %v418_v52 = vmul.f32 %v855_v10, %v345_v61  ;;  %v419_v49 = vmul.f32 %v855_v10, %v346_v62  ;;  %986 = vmatpush3.bf16.msra.mxu0 %v985_v24 }
  0x1d   : > { %v406_v53 = vadd.f32 %v398_v41, %v380_v25  ;;  %v407_v57 = vadd.f32 %v399_v42, %v381_v26  ;;  %v408_v58 = vadd.f32 %v400_v44, %v382_v27  ;;  %v409_v59 = vadd.f32 %v401_v45, %v383_v29  ;;  %987 = vmatprep.subr.bf16.mxu0 %v1061_v3 }
  0x1e   : > { %v430_v60 = vmul.f32 %v856_v31, %v347_v63  ;;  %v431_v0 = vmul.f32 %v856_v31, %v348_v1  ;;  %v432_v5 = vmul.f32 %v856_v31, %v349_v2  ;;  %v433_v6 = vmul.f32 %v856_v31, %v350_v4 }
  0x1f   : > { %v420_v12 = vadd.f32 %v416_v32, %v406_v53  ;;  %v421_v13 = vadd.f32 %v417_v51, %v407_v57  ;;  %v422_v23 = vadd.f32 %v418_v52, %v408_v58  ;;  %v423_v7 = vadd.f32 %v419_v49, %v409_v59 }
  0x20   : > { %v444_v9 = vmul.f32 %v857_v50, %v343_v55  ;;  %v445_v10 = vmul.f32 %v857_v50, %v344_v56  ;;  %v446_v11 = vmul.f32 %v857_v50, %v345_v61  ;;  %v447_v18 = vmul.f32 %v857_v50, %v346_v62  ;;  %989 = vmatpush3.bf16.msra.mxu0 %v988_v28  ;;  %v860_v62 = vld [vmem:[%s1407_s1 + $0x8] ss:$0 sm:$0xff] }
  0x21   : > { %v434_v63 = vadd.f32 %v430_v60, %v420_v12  ;;  %v435_v1 = vadd.f32 %v431_v0, %v421_v13  ;;  %v436_v2 = vadd.f32 %v432_v5, %v422_v23  ;;  %v437_v4 = vadd.f32 %v433_v6, %v423_v7  ;;  %990 = vmatprep.subr.bf16.mxu0 %v1061_v3 }
  0x22   : > { %v452_v14 = vrot.slane %v444_v9, 1  ;;  %v453_v15 = vrot.slane %v445_v10, 1  ;;  %v454_v24 = vrot.slane %v446_v11, 1  ;;  %v455_v22 = vrot.slane %v447_v18, 1 }
  0x23   : > { %v470_v25 = vmul.f32 %v858_v8, %v1216_v33  ;;  %v471_v55 = vmul.f32 %v858_v8, %v1218_v34  ;;  %v472_v56 = vmul.f32 %v858_v8, %v1231_v39  ;;  %v473_v61 = vmul.f32 %v858_v8, %v337_v40 }
  0x24   : > { %v460_v26 = vadd.f32 %v452_v14, %v434_v63  ;;  %v461_v27 = vadd.f32 %v453_v15, %v435_v1  ;;  %v462_v29 = vadd.f32 %v454_v24, %v436_v2  ;;  %v463_v31 = vadd.f32 %v455_v22, %v437_v4  ;;  %992 = vmatpush3.bf16.msra.mxu0 %v991_v35 }
  0x25   : > { %v484_v41 = vmul.f32 %v859_v21, %v339_v46  ;;  %v485_v42 = vmul.f32 %v859_v21, %v340_v47  ;;  %v486_v16 = vmul.f32 %v859_v21, %v341_v48  ;;  %v487_v17 = vmul.f32 %v859_v21, %v342_v54 }
  0x26   : > { %v474_v28 = vadd.f32 %v470_v25, %v460_v26  ;;  %v475_v44 = vadd.f32 %v471_v55, %v461_v27  ;;  %v476_v45 = vadd.f32 %v472_v56, %v462_v29  ;;  %v477_v32 = vadd.f32 %v473_v61, %v463_v31 }
  0x27   : > { %v498_v51 = vmul.f32 %v860_v62, %v1216_v33  ;;  %v499_v52 = vmul.f32 %v860_v62, %v1218_v34  ;;  %v500_v36 = vmul.f32 %v860_v62, %v1231_v39  ;;  %v501_v37 = vmul.f32 %v860_v62, %v337_v40  ;;  %v861_v33 = vld [vmem:[%s1408_s2] ss:$0 sm:$0xff] }
  0x28   : > { %v488_v38 = vadd.f32 %v484_v41, %v474_v28  ;;  %v489_v43 = vadd.f32 %v485_v42, %v475_v44  ;;  %v490_v46 = vadd.f32 %v486_v16, %v476_v45  ;;  %v491_v47 = vadd.f32 %v487_v17, %v477_v32 }
  0x29   : > { %v506_v48 = vrot.slane %v498_v51, 1  ;;  %v507_v54 = vrot.slane %v499_v52, 1  ;;  %v508_v49 = vrot.slane %v500_v36, 1  ;;  %v509_v50 = vrot.slane %v501_v37, 1  ;;  %v670_v52 = vld [vmem:[%s1411_s5] sm:$0xff]  ;;  %v671_v36 = vld [vmem:[%s1411_s5 + $0x8] sm:$0xff] }
  0x2a   : > { %v994_v37 = vpack.c.bf16 %v671_v36, %v670_v52 }
  0x2b   : > { %v514_v34 = vadd.f32 %v506_v48, %v488_v38  ;;  %v515_v39 = vadd.f32 %v507_v54, %v489_v43  ;;  %v516_v30 = vadd.f32 %v508_v49, %v490_v46  ;;  %v517_v40 = vadd.f32 %v509_v50, %v491_v47  ;;  %v672_v38 = vld [vmem:[%s1411_s5 + $0x10] sm:$0xff]  ;;  %v673_v43 = vld [vmem:[%s1411_s5 + $0x18] sm:$0xff]  ;;  %v674_v47 = vld [vmem:[%s1411_s5 + $0x20] sm:$0xff] }
  0x2c   : > { %995 = vmatpush3.bf16.msra.mxu1 %v994_v37  ;;  %v997_v46 = vpack.c.bf16 %v673_v43, %v672_v38  ;;  %v675_v48 = vld [vmem:[%s1411_s5 + $0x28] sm:$0xff]  ;;  %v676_v49 = vld [vmem:[%s1411_s5 + $0x30] sm:$0xff]  ;;  %v677_v50 = vld [vmem:[%s1411_s5 + $0x38] sm:$0xff] }
  0x2d   : > { %v525_v53 = vadd.f32 %v861_v33, %v514_v34  ;;  %v526_v57 = vadd.f32 %v861_v33, %v515_v39  ;;  %v527_v19 = vadd.f32 %v861_v33, %v516_v30  ;;  %v528_v20 = vadd.f32 %v861_v33, %v517_v40  ;;  %996 = vmatprep.subr.bf16.mxu1 %v1061_v3  ;;  %v678_v34 = vld [vmem:[%s1411_s5 + $0x40] sm:$0xff]  ;;  %v679_v39 = vld [vmem:[%s1411_s5 + $0x48] sm:$0xff]  ;;  %v680_v40 = vld [vmem:[%s1411_s5 + $0x50] sm:$0xff] }
  0x2e   : > { %v1000_v54 = vpack.c.bf16 %v675_v48, %v674_v47  ;;  %v1003_v33 = vpack.c.bf16 %v677_v50, %v676_v49  ;;  %v1006_v30 = vpack.c.bf16 %v679_v39, %v678_v34 }
  0x2f   : > { %v529_v35 = vsub.f32 0.0, %v525_v53  ;;  %v530_v58 = vsub.f32 0.0, %v526_v57  ;;  %v531_v59 = vsub.f32 0.0, %v527_v19  ;;  %v532_v60 = vsub.f32 0.0, %v528_v20 }
  0x30   : > { %998 = vmatpush3.bf16.msra.mxu1 %v997_v46 }
  0x31   : > { %v533_v0 = vmul.f32 1.442695, %v529_v35  ;;  %v535_v5 = vmul.f32 1.442695, %v530_v58  ;;  %v537_v6 = vmul.f32 1.442695, %v531_v59  ;;  %999 = vmatprep.subr.bf16.mxu1 %v1061_v3 }
  0x32   : > { %v539_v12 = vmul.f32 1.442695, %v532_v60  ;;  %v684_v58 = vld [vmem:[%s1411_s5 + $0x70] sm:$0xff]  ;;  %v685_v59 = vld [vmem:[%s1411_s5 + $0x78] sm:$0xff] }
  0x33   : > { %1029 = vpow2.f32 %v533_v0  ;;  %v1015_v60 = vpack.c.bf16 %v685_v59, %v684_v58  ;;  %v593_v0 = vld [vmem:[%s1410_s4] sm:$0x1] }
  0x34   : > { %1031 = vpow2.f32 %v535_v5  ;;  %1001 = vmatpush3.bf16.msra.mxu1 %v1000_v54 }
  0x35   : > { %1033 = vpow2.f32 %v537_v6  ;;  %1002 = vmatprep.subr.bf16.mxu1 %v1061_v3 }
  0x36   : > { %1035 = vpow2.f32 %v539_v12 }
  0x38   : > { %1004 = vmatpush3.bf16.msra.mxu1 %v1003_v33 }
  0x39   : > { %1005 = vmatprep.subr.bf16.mxu1 %v1061_v3 }
  0x3c   : > { %1007 = vmatpush3.bf16.msra.mxu1 %v1006_v30 }
  0x3d   : > { %v1030_v13 = vpop.eup %1029  ;;  %1008 = vmatprep.subr.bf16.mxu1 %v1061_v3 }
  0x3e   : > { %v1032_v23 = vpop.eup %1031  ;;  %v541_v7 = vadd.f32 1.0, %v1030_v13 }
  0x3f   : > { %v1034_v8 = vpop.eup %1033  ;;  %v542_v9 = vadd.f32 1.0, %v1032_v23 }
  0x40   : > { %v1036_v10 = vpop.eup %1035  ;;  %v543_v11 = vadd.f32 1.0, %v1034_v8  ;;  %1037 = vrcp.f32 %v541_v7 }
  0x41   : > { %v544_v18 = vadd.f32 1.0, %v1036_v10  ;;  %1039 = vrcp.f32 %v542_v9  ;;  %v686_v10 = vld [vmem:[%s1412_s6] sm:$0x1] }
  0x42   : > { %1041 = vrcp.f32 %v543_v11 }
  0x43   : > { %1043 = vrcp.f32 %v544_v18 }
  0x4a   : > { %v1038_v63 = vpop.eup %1037 }
  0x4b   : > { %v1040_v1 = vpop.eup %1039  ;;  %v549_v2 = vmul.f32 %v1038_v63, %v525_v53  ;;  %v681_v53 = vld [vmem:[%s1411_s5 + $0x58] sm:$0xff] }
  0x4c   : > { %v1042_v4 = vpop.eup %1041  ;;  %v550_v21 = vmul.f32 %v1040_v1, %v526_v57  ;;  %v1009_v57 = vpack.c.bf16 %v681_v53, %v680_v40 }
  0x4d   : > { %v1044_v14 = vpop.eup %1043  ;;  %v551_v15 = vmul.f32 %v1042_v4, %v527_v19  ;;  %v553_v24 = vpack.c.bf16 %v549_v2, %v549_v2  ;;  %v562_v22 = vsel %vm561_vm1, %v549_v2, 0.0  ;;  %v682_v19 = vld [vmem:[%s1411_s5 + $0x60] sm:$0xff] }
  0x4e   : > { %v552_v25 = vmul.f32 %v1044_v14, %v528_v20  ;;  %v554_v55 = vpack.c.bf16 %v550_v21, %v550_v21  ;;  %v563_v56 = vsel %vm561_vm1, %v550_v21, 0.0  ;;  %1010 = vmatpush3.bf16.msra.mxu1 %v1009_v57  ;;  %v683_v20 = vld [vmem:[%s1411_s5 + $0x68] sm:$0xff] }
  0x4f   : > { %v555_v61 = vpack.c.bf16 %v551_v15, %v551_v15  ;;  %557 = vst [vmem:[%s311_s26] sm:$0x3] %v553_v24  ;;  %v564_v62 = vadd.f32 %v563_v56, %v562_v22  ;;  %v565_v26 = vsel %vm561_vm1, %v551_v15, 0.0  ;;  %1011 = vmatprep.subr.bf16.mxu1 %v1061_v3  ;;  %v1012_v35 = vpack.c.bf16 %v683_v20, %v682_v19 }
  0x50   : > { %v556_v27 = vpack.c.bf16 %v552_v25, %v552_v25  ;;  %558 = vst [vmem:[%s311_s26 + $0x2] sm:$0x3] %v554_v55  ;;  %v567_v29 = vsel %vm561_vm1, %v552_v25, 0.0 }
  0x51   : > { %559 = vst [vmem:[%s311_s26 + $0x4] sm:$0x3] %v555_v61  ;;  %v566_v31 = vadd.f32 %v565_v26, %v564_v62 }
  0x52   : > { %560 = vst [vmem:[%s311_s26 + $0x6] sm:$0x3] %v556_v27  ;;  %1013 = vmatpush3.bf16.msra.mxu1 %v1012_v35 }
  0x53   : > { %v568_v41 = vadd.f32 %v567_v29, %v566_v31  ;;  %1014 = vmatprep.subr.bf16.mxu1 %v1061_v3 }
  0x55   : > { %v569_v42 = vsel %vm561_vm1, %v568_v41, 0.0 }
  0x56   : > { %v570_v16 = vrot.slane %v569_v42, 4  ;;  %1016 = vmatpush3.bf16.msra.mxu1 %v1015_v60 }
  0x58   : > { %v571_v17 = vadd.f32 %v570_v16, %v569_v42 }
  0x5a   : > { %v572_v28 = vrot.slane %v571_v17, 2 }
  0x5c   : > { %v573_v44 = vadd.f32 %v572_v28, %v571_v17 }
  0x5e   : > { %v574_v45 = vrot.slane %v573_v44, 1 }
  0x60   : > { %v575_v32 = vadd.f32 %v574_v45, %v573_v44 }
  0x62   : > { %v576_v51 = vmul.f32 0.0625, %v575_v32 }
  0x64   : > { %932 = vmatmul.mubr.f32.vlgmr.msra.gmra.mrb[0].mxu0 %v576_v51 }
 0x137   : > { %v660_v5 = vpop.f32.mrb[0].mxu0 }
 0x138   : > { %v661_v6 = vadd.f32 %v660_v5, %v593_v0  ;;  %v933_v12 = vpop.f32.mrb[1].mxu0 }
 0x13a   : > { %v664_v13 = vsub.f32 0.0, %v661_v6 }
 0x13c   : > { %v665_v23 = vmul.f32 1.442695, %v664_v13 }
 0x13e   : > { %1045 = vpow2.f32 %v665_v23 }
 0x148   : > { %v1046_v3 = vpop.eup %1045 }
 0x149   : > { %v667_v7 = vadd.f32 1.0, %v1046_v3 }
 0x14b   : > { %1047 = vrcp.f32 %v667_v7 }
 0x155   : > { %v1048_v8 = vpop.eup %1047 }
 0x156   : > { %v669_v9 = vmul.f32 %v1048_v8, %v661_v6 }
 0x158   : > { %967 = vmatmul.mubr.f32.vlgmr.msra.gmra.mrb[0].mxu1 %v669_v9 }
 0x22b   : > { %v753_v11 = vpop.f32.mrb[0].mxu1 }
 0x22c   : > { %v754_v18 = vadd.f32 %v753_v11, %v686_v10  ;;  %v968_v63 = vpop.f32.mrb[1].mxu1 }
 0x22e   : > { %v757_v1 = vsub.f32 0.0, %v754_v18 }
 0x230   : > { %v758_v2 = vmul.f32 1.442695, %v757_v1 }
 0x232   : > { %1049 = vpow2.f32 %v758_v2 }
 0x23c   : > { %v1050_v4 = vpop.eup %1049 }
 0x23d   : > { %v760_v21 = vadd.f32 1.0, %v1050_v4 }
 0x23f   : > { %1051 = vrcp.f32 %v760_v21 }
 0x249   : > { %v1052_v14 = vpop.eup %1051 }
 0x24a   : > { %763 = vst [vmem:[%s314_s25] sm:$0x1] %v1052_v14 }
 0x24b PF: > { %s19_s27 = sadd.s32 1, %s1059_s27  }
 0x24c   : > { %p16_p4 = scmp.ge.s32.totalorder %s19_s27, 4  }
 0x24e   :  { %18 = sbr.rel (!%p16_p4) target bundleno = 1 (0x1), region = 90 }

// kernel: cnn_encoder_forward.16
= control target key start
LH: loop header
LB: loop body
LE: loop exit
PB: predicated region body
PF: predicated region fallthrough
CT: control target
= control target key end

     0   :  { %s634_s15 = smov 0   ;;  %s636_s16 = smov 0   ;;  %s705_s0 = inlined_call_operand.vmem [shape: bf16[2,16,128], index: 0, kind: input, shape index: {}]   ;;  %s706_s1 = inlined_call_operand.vmem [shape: f32[2,1,128], index: 1, kind: input, shape index: {}]   ;;  %s707_s2 = inlined_call_operand.vmem [shape: bf16[128,128], index: 2, kind: input, shape index: {}]   ;;  %s708_s3 = inlined_call_operand.vmem [shape: f32[1,128], index: 3, kind: input, shape index: {}]   ;;  %s709_s4 = inlined_call_operand.vmem [shape: bf16[2,16,128], index: 4, kind: output, shape index: {}]  }
   0x1   :  { %s638_s17 = smov 0  }
   0x2 LB: > { %s26_s18 = sadd.s32 1, %s601_s16  ;;  %p488_p0 = scmp.ge.s32.totalorder %s605_s17, 1  ;;  %s605_s17 = sphi %s638_s17, %s14_s17   ;;  %s601_s16 = sphi %s636_s16, %s711_s16   ;;  %s597_s15 = sphi %s634_s15, %s710_s15  }
   0x3   : > { %p28_p1 = scmp.ge.s32.totalorder %s26_s18, 2  ;;  %p191_p2 = scmp.lt.s32.totalorder %s605_s17, 3 }
   0x5   : > { %s713_s18 = smov (%p28_p1, %s26_s18), 0  ;;  %p192_p3 = pnand %p488_p0, %p191_p2 }
   0x6   : > { %v575_v0 = vld [vmem:[%s707_s2] sm:$0xff] (!%p192_p3)   ;;  %v607_v1 = vmov (!%p192_p3), 0.0   ;;  %v576_v2 = vld [vmem:[%s707_s2 + $0x8] sm:$0xff] (!%p192_p3)   ;;  %vm608_vm0 = vmmov (!%p192_p3), 0   ;;  %p229_p4 = scmp.lt.s32.totalorder (!%p192_p3), %s597_s15, 1  ;;  %v577_v3 = vld [vmem:[%s707_s2 + $0x10] sm:$0xff] (!%p192_p3)  }
   0x7   : > { %195 = sbr.rel (%p192_p3) target bundleno = 258 (0x102), region = 36  ;;  %529 = vmatprep.subr.bf16.mxu0 (!%p192_p3), %v607_v1  ;;  %545 = vmatprep.mubr.msk.bf16.mxu0 (!%p192_p3), %vm608_vm0, %v607_v1  ;;  %v578_v4 = vld [vmem:[%s707_s2 + $0x18] sm:$0xff] (!%p192_p3)   ;;  %v579_v5 = vld [vmem:[%s707_s2 + $0x20] sm:$0xff] (!%p192_p3)   ;;  %v580_v6 = vld [vmem:[%s707_s2 + $0x28] sm:$0xff] (!%p192_p3)  }
   0x8   : > { %530 = vmatpush3.bf16.msra.mxu0 (!%p192_p3), %v575_v0  ;;  %v581_v10 = vld [vmem:[%s707_s2 + $0x30] sm:$0xff] (!%p192_p3)   ;;  %v582_v14 = vld [vmem:[%s707_s2 + $0x38] sm:$0xff] (!%p192_p3)   ;;  %v494_v16 = vld [vmem:[%s708_s3] ss:$0 sm:$0xff] (!%p192_p3) }
   0x9   : > { %531 = vmatprep.subr.bf16.mxu0 (!%p192_p3), %v607_v1 }
   0xc   : > { %532 = vmatpush3.bf16.msra.mxu0 (!%p192_p3), %v576_v2 }
   0xd   : > { %533 = vmatprep.subr.bf16.mxu0 (!%p192_p3), %v607_v1 }
   0xe   : > { %s715_s15 = smov (!%p229_p4, %s597_s15), 1 }
   0xf   : > { %s507_s27 = sshll.u32 %s715_s15, 3  ;;  %s240_s11 = scalar_lea.vmem %s706_s1, %s715_s15 }
  0x10   : > { %534 = vmatpush3.bf16.msra.mxu0 %v577_v3  ;;  %s236_s6 = scalar_lea.vmem %s705_s0, %s507_s27  ;;  %v493_v11 = vld [vmem:[%s240_s11] ss:$0 sm:$0xff]  ;;  %s249_s24 = scalar_lea.vmem %s709_s4, %s507_s27 }
  0x11   : > { %535 = vmatprep.subr.bf16.mxu0 %v607_v1  ;;  %v512_v7 = vld [vmem:[%s236_s6] sm:$0xff]  }
  0x12   : > { %v513_v8 = vunpack.c.l.bf16 %v512_v7  ;;  %v514_v9 = vunpack.c.h.bf16 %v512_v7 }
  0x14   : > { %536 = vmatpush3.bf16.msra.mxu0 %v578_v4  ;;  %v263_v12 = vmul.f32 %v513_v8, %v493_v11  ;;  %v264_v13 = vmul.f32 %v514_v9, %v493_v11 }
  0x15   : > { %537 = vmatprep.subr.bf16.mxu0 %v607_v1 }
  0x16   : > { %v265_v15 = vpack.c.bf16 %v264_v13, %v263_v12 }
  0x18   : > { %538 = vmatpush3.bf16.msra.mxu0 %v579_v5 }
  0x19   : > { %539 = vmatprep.subr.bf16.mxu0 %v607_v1 }
  0x1c   : > { %540 = vmatpush3.bf16.msra.mxu0 %v580_v6 }
  0x1d   : > { %541 = vmatprep.subr.bf16.mxu0 %v607_v1 }
  0x20   : > { %542 = vmatpush3.bf16.msra.mxu0 %v581_v10 }
  0x21   : > { %543 = vmatprep.subr.bf16.mxu0 %v607_v1 }
  0x24   : > { %544 = vmatpush3.bf16.msra.mxu0 %v582_v14 }
  0x27   : > { %546 = vmatmul.mubr.bf16.vlgmr.msra.gmra.mrb[0].mxu0 %v265_v15 }
  0xfa   : > { %v371_v17 = vpop.f32.mrb[0].mxu0 }
  0xfb   : > { %v547_v18 = vpop.f32.mrb[1].mxu0  ;;  %v372_v20 = vadd.f32 %v494_v16, %v371_v17 }
  0xfc   : > { %v374_v19 = vpop.f32.mrb[2].mxu0 }
  0xfd   : > { %v375_v21 = vadd.f32 %v494_v16, %v374_v19  ;;  %v548_v22 = vpop.f32.mrb[3].mxu0 }
  0xff   : > { %v518_v23 = vpack.c.bf16 %v375_v21, %v372_v20 }
 0x101   : > { %519 = vst [vmem:[%s249_s24] sm:$0xff] %v518_v23  }
 0x102 PF: > { %s14_s17 = sadd.s32 1, %s605_s17   ;;  %s710_s15 = smov %s601_s16 }
 0x103   : > { %p11_p5 = scmp.ge.s32.totalorder %s14_s17, 4   ;;  %s711_s16 = smov %s713_s18 }
 0x105   :  { %13 = sbr.rel (!%p11_p5) target bundleno = 2 (0x2), region = 69 }

// kernel: cnn_encoder_forward.17
= control target key start
LH: loop header
LB: loop body
LE: loop exit
PB: predicated region body
PF: predicated region fallthrough
CT: control target
= control target key end

     0   :  { %s545_s12 = smov 0   ;;  %s617_s0 = inlined_call_operand.vmem [shape: bf16[32,128], index: 0, kind: input, shape index: {}]   ;;  %s618_s1 = inlined_call_operand.vmem [shape: bf16[128,256], index: 1, kind: input, shape index: {}]   ;;  %s619_s2 = inlined_call_operand.vmem [shape: f32[1,256], index: 2, kind: input, shape index: {}]   ;;  %s620_s3 = inlined_call_operand.vmem [shape: bf16[32,256], index: 3, kind: output, shape index: {}]  }
   0x1 LB: > { %s432_s13 = sadd.s32 4294967295, %s522_s12   ;;  %p436_p0 = scmp.ge.s32.totalorder %s522_s12, 1  ;;  %s522_s12 = sphi %s545_s12, %s13_s12  }
   0x2   : > { %p138_p1 = scmp.lt.s32.totalorder %s522_s12, 3 }
   0x4   : > { %p139_p2 = pnand %p436_p0, %p138_p1 }
   0x5   : > { %v475_v0 = vld [vmem:[%s618_s1 + $0x4] ss:$8 sps:$4 sm:$0xff] (!%p139_p2)   ;;  %s437_s16 = sshll.u32 (!%p139_p2), %s432_s13, 1  ;;  %v477_v1 = vld [vmem:[%s618_s1] ss:$8 sps:$4 sm:$0xff] (!%p139_p2)   ;;  %v524_v2 = vmov (!%p139_p2), 0   ;;  %v197_v18 = vlaneseq (!%p139_p2) }
   0x6   : > { %142 = sbr.rel (%p139_p2) target bundleno = 288 (0x120), region = 32  ;;  %325 = vmatprep.mubr.bf16.mxu0 (!%p139_p2), %v524_v2  ;;  %p164_p3 = scmp.lt.s32.totalorder (!%p139_p2), %s437_s16, 3  ;;  %293 = vmatprep.subr.bf16.mxu0 (!%p139_p2), %v475_v0  ;;  %v478_v3 = vld [vmem:[%s618_s1 + $0x14] ss:$8 sps:$4 sm:$0xff] (!%p139_p2)   ;;  %v480_v4 = vld [vmem:[%s618_s1 + $0x10] ss:$8 sps:$4 sm:$0xff] (!%p139_p2)  }
   0x7   : > { %294 = vmatpush1.bf16.msra.mxu0 (!%p139_p2), %v477_v1  ;;  %v481_v5 = vld [vmem:[%s618_s1 + $0x24] ss:$8 sps:$4 sm:$0xff] (!%p139_p2)   ;;  %v483_v6 = vld [vmem:[%s618_s1 + $0x20] ss:$8 sps:$4 sm:$0xff] (!%p139_p2)   ;;  %v484_v7 = vld [vmem:[%s618_s1 + $0x34] ss:$8 sps:$4 sm:$0xff] (!%p139_p2)  }
   0x8   : > { %295 = vmatprep.subr.bf16.mxu0 (!%p139_p2), %v478_v3  ;;  %v486_v8 = vld [vmem:[%s618_s1 + $0x30] ss:$8 sps:$4 sm:$0xff] (!%p139_p2)   ;;  %v487_v9 = vld [vmem:[%s618_s1 + $0x44] ss:$8 sps:$4 sm:$0xff] (!%p139_p2)   ;;  %v489_v10 = vld [vmem:[%s618_s1 + $0x40] ss:$8 sps:$4 sm:$0xff] (!%p139_p2)  }
   0x9   : > { %v490_v11 = vld [vmem:[%s618_s1 + $0x54] ss:$8 sps:$4 sm:$0xff] (!%p139_p2)   ;;  %v492_v12 = vld [vmem:[%s618_s1 + $0x50] ss:$8 sps:$4 sm:$0xff] (!%p139_p2)   ;;  %v493_v13 = vld [vmem:[%s618_s1 + $0x64] ss:$8 sps:$4 sm:$0xff] (!%p139_p2)  }
   0xa   : > { %v495_v14 = vld [vmem:[%s618_s1 + $0x60] ss:$8 sps:$4 sm:$0xff] (!%p139_p2)   ;;  %v496_v15 = vld [vmem:[%s618_s1 + $0x74] ss:$8 sps:$4 sm:$0xff] (!%p139_p2)   ;;  %v498_v16 = vld [vmem:[%s618_s1 + $0x70] ss:$8 sps:$4 sm:$0xff] (!%p139_p2)  }
   0xb   : > { %296 = vmatpush1.bf16.msra.mxu0 (!%p139_p2), %v480_v4  ;;  %v198_v19 = vshrl.u32 (!%p139_p2), %v197_v18, 7  ;;  %v195_v21 = vld [vmem:[%s619_s2] sm:$0x3] (!%p139_p2) }
   0xc   : > { %297 = vmatprep.subr.bf16.mxu0 (!%p139_p2), %v481_v5 }
   0xd   : > { %s622_s16 = smov (!%p164_p3, %s437_s16), 3  ;;  %v199_v20 = vsub.s32 0, %v198_v19  ;;  %v203_v22 = vsub.s32 1, %v198_v19 }
   0xe   : > { %s438_s25 = sshll.u32 %s622_s16, 2  ;;  %s463_s28 = sshll.u32 %s622_s16, 3 }
   0xf   : > { %s167_s5 = scalar_lea.vmem %s617_s0, %s438_s25  ;;  %298 = vmatpush1.bf16.msra.mxu0 %v483_v6  ;;  %v200_v23 = vrot.slane %v195_v21, %v199_v20  ;;  %v204_v24 = vrot.slane %v195_v21, %v203_v22  ;;  %s174_s4 = scalar_lea.vmem %s620_s3, %s463_s28 }
  0x10   : > { %299 = vmatprep.subr.bf16.mxu0 %v484_v7  ;;  %v499_v17 = vld [vmem:[%s167_s5] sm:$0xff]  }
  0x13   : > { %300 = vmatpush1.bf16.msra.mxu0 %v486_v8 }
  0x14   : > { %301 = vmatprep.subr.bf16.mxu0 %v487_v9 }
  0x17   : > { %302 = vmatpush1.bf16.msra.mxu0 %v489_v10 }
  0x18   : > { %303 = vmatprep.subr.bf16.mxu0 %v490_v11 }
  0x1b   : > { %304 = vmatpush1.bf16.msra.mxu0 %v492_v12 }
  0x1c   : > { %305 = vmatprep.subr.bf16.mxu0 %v493_v13 }
  0x1f   : > { %306 = vmatpush1.bf16.msra.mxu0 %v495_v14 }
  0x20   : > { %307 = vmatprep.subr.bf16.mxu0 %v496_v15 }
  0x23   : > { %308 = vmatpush1.bf16.msra.mxu0 %v498_v16 }
  0x26   : > { %326 = vmatmul.mubr.bf16.vlgmr.msra.gmra.mrb[0].mxu0 %v499_v17 }
  0xf9   : > { %v327_v25 = vpop.f32.mrb[0].mxu0 }
  0xfa   : > { %v328_v26 = vadd.f32 %v327_v25, %v200_v23  ;;  %v329_v27 = vpop.f32.mrb[1].mxu0 }
  0xfb   : > { %v330_v28 = vadd.f32 %v329_v27, %v204_v24  ;;  %v331_v29 = vpop.f32.mrb[2].mxu0 }
  0xfc   : > { %v336_v30 = vsub.f32 0.0, %v328_v26  ;;  %v332_v31 = vadd.f32 %v331_v29, %v200_v23  ;;  %v333_v32 = vpop.f32.mrb[3].mxu0 }
  0xfd   : > { %v337_v33 = vsub.f32 0.0, %v330_v28  ;;  %v334_v34 = vadd.f32 %v333_v32, %v204_v24 }
  0xfe   : > { %v340_v35 = vmul.f32 1.442695, %v336_v30  ;;  %v338_v36 = vsub.f32 0.0, %v332_v31 }
  0xff   : > { %v342_v37 = vmul.f32 1.442695, %v337_v33  ;;  %v339_v38 = vsub.f32 0.0, %v334_v34 }
 0x100   : > { %500 = vpow2.f32 %v340_v35  ;;  %v344_v39 = vmul.f32 1.442695, %v338_v36 }
 0x101   : > { %502 = vpow2.f32 %v342_v37  ;;  %v346_v40 = vmul.f32 1.442695, %v339_v38 }
 0x102   : > { %504 = vpow2.f32 %v344_v39 }
 0x103   : > { %506 = vpow2.f32 %v346_v40 }
 0x10a   : > { %v501_v41 = vpop.eup %500 }
 0x10b   : > { %v503_v42 = vpop.eup %502  ;;  %v348_v43 = vadd.f32 1.0, %v501_v41 }
 0x10c   : > { %v505_v44 = vpop.eup %504  ;;  %v349_v45 = vadd.f32 1.0, %v503_v42 }
 0x10d   : > { %v507_v46 = vpop.eup %506  ;;  %508 = vrcp.f32 %v348_v43  ;;  %v350_v47 = vadd.f32 1.0, %v505_v44 }
 0x10e   : > { %510 = vrcp.f32 %v349_v45  ;;  %v351_v48 = vadd.f32 1.0, %v507_v46 }
 0x10f   : > { %512 = vrcp.f32 %v350_v47 }
 0x110   : > { %514 = vrcp.f32 %v351_v48 }
 0x117   : > { %v509_v49 = vpop.eup %508 }
 0x118   : > { %v511_v50 = vpop.eup %510  ;;  %v356_v51 = vmul.f32 %v509_v49, %v328_v26 }
 0x119   : > { %v513_v52 = vpop.eup %512  ;;  %v357_v53 = vmul.f32 %v511_v50, %v330_v28 }
 0x11a   : > { %v515_v54 = vpop.eup %514  ;;  %v358_v55 = vmul.f32 %v513_v52, %v332_v31 }
 0x11b   : > { %v464_v56 = vpack.c.bf16 %v357_v53, %v356_v51  ;;  %v359_v57 = vmul.f32 %v515_v54, %v334_v34 }
 0x11d   : > { %372 = vst [vmem:[%s174_s4] sm:$0xff] %v464_v56  ;;  %v465_v58 = vpack.c.bf16 %v359_v57, %v358_v55 }
 0x11f   : > { %373 = vst [vmem:[%s174_s4 + $0x8] sm:$0xff] %v465_v58 }
 0x120 PF: > { %s13_s12 = sadd.s32 1, %s522_s12  }
 0x121   : > { %p10_p4 = scmp.ge.s32.totalorder %s13_s12, 4  }
 0x123   :  { %12 = sbr.rel (!%p10_p4) target bundleno = 1 (0x1), region = 62 }

// kernel: cnn_encoder_forward.19
= control target key start
LH: loop header
LB: loop body
LE: loop exit
PB: predicated region body
PF: predicated region fallthrough
CT: control target
= control target key end

     0   :  { %s820_s18 = smov 0   ;;  %s822_s19 = smov 0   ;;  %s915_s0 = inlined_call_operand.vmem [shape: bf16[2,16,256], index: 0, kind: input, shape index: {}]   ;;  %s916_s1 = inlined_call_operand.vmem [shape: f32[2,1,256], index: 1, kind: input, shape index: {}]   ;;  %s917_s2 = inlined_call_operand.vmem [shape: bf16[256,128], index: 2, kind: input, shape index: {}]   ;;  %s918_s3 = inlined_call_operand.vmem [shape: f32[1,128], index: 3, kind: input, shape index: {}]   ;;  %s919_s4 = inlined_call_operand.vmem [shape: bf16[2,16,128], index: 4, kind: input, shape index: {}]   ;;  %s920_s5 = inlined_call_operand.vmem [shape: bf16[2,16,128], index: 5, kind: output, shape index: {}]  }
   0x1   :  { %s824_s20 = smov 0  }
   0x2 LB: > { %s27_s21 = sadd.s32 1, %s784_s19  ;;  %p661_p0 = scmp.ge.s32.totalorder %s788_s20, 1  ;;  %s788_s20 = sphi %s824_s20, %s15_s20   ;;  %s784_s19 = sphi %s822_s19, %s922_s19   ;;  %s780_s18 = sphi %s820_s18, %s921_s18  }
   0x3   : > { %p29_p1 = scmp.ge.s32.totalorder %s27_s21, 2  ;;  %p235_p2 = scmp.lt.s32.totalorder %s788_s20, 3 }
   0x5   : > { %s924_s21 = smov (%p29_p1, %s27_s21), 0  ;;  %p236_p3 = pnand %p661_p0, %p235_p2 }
   0x6   : > { %v750_v0 = vld [vmem:[%s917_s2 + $0x40] sm:$0xff] (!%p236_p3)   ;;  %v752_v2 = vld [vmem:[%s917_s2 + $0x48] sm:$0xff] (!%p236_p3)   ;;  %p286_p4 = scmp.lt.s32.totalorder (!%p236_p3), %s780_s18, 1  ;;  %v754_v4 = vld [vmem:[%s917_s2 + $0x50] sm:$0xff] (!%p236_p3)   ;;  %v329_v5 = vlaneseq (!%p236_p3) }
   0x7   : > { %239 = sbr.rel (%p236_p3) target bundleno = 263 (0x107), region = 40  ;;  %v751_v1 = vld [vmem:[%s917_s2] sm:$0xff] (!%p236_p3)   ;;  %704 = vmatprep.subr.bf16.mxu0 (!%p236_p3), %v750_v0  ;;  %v753_v3 = vld [vmem:[%s917_s2 + $0x8] sm:$0xff] (!%p236_p3)   ;;  %v755_v6 = vld [vmem:[%s917_s2 + $0x10] sm:$0xff] (!%p236_p3)  }
   0x8   : > { %705 = vmatpush3.bf16.msra.mxu0 (!%p236_p3), %v751_v1  ;;  %v756_v7 = vld [vmem:[%s917_s2 + $0x58] sm:$0xff] (!%p236_p3)   ;;  %v330_v8 = vshrl.u32 (!%p236_p3), %v329_v5, 7  ;;  %v758_v10 = vld [vmem:[%s917_s2 + $0x60] sm:$0xff] (!%p236_p3)   ;;  %v760_v13 = vld [vmem:[%s917_s2 + $0x68] sm:$0xff] (!%p236_p3)  }
   0x9   : > { %706 = vmatprep.subr.bf16.mxu0 (!%p236_p3), %v752_v2  ;;  %v757_v9 = vld [vmem:[%s917_s2 + $0x18] sm:$0xff] (!%p236_p3)   ;;  %v759_v11 = vld [vmem:[%s917_s2 + $0x20] sm:$0xff] (!%p236_p3)   ;;  %v761_v21 = vld [vmem:[%s917_s2 + $0x28] sm:$0xff] (!%p236_p3)  }
   0xa   : > { %v335_v12 = vsub.s32 (!%p236_p3), 1, %v330_v8  ;;  %v331_v19 = vsub.s32 (!%p236_p3), 0, %v330_v8  ;;  %v762_v22 = vld [vmem:[%s917_s2 + $0x70] sm:$0xff] (!%p236_p3)   ;;  %v764_v30 = vld [vmem:[%s917_s2 + $0x78] sm:$0xff] (!%p236_p3)   ;;  %v669_v36 = vld [vmem:[%s918_s3] ss:$0 sm:$0xff] (!%p236_p3) }
   0xb   : > { %v763_v29 = vld [vmem:[%s917_s2 + $0x30] sm:$0xff] (!%p236_p3)   ;;  %v765_v33 = vld [vmem:[%s917_s2 + $0x38] sm:$0xff] (!%p236_p3)  }
   0xc   : > { %707 = vmatpush3.bf16.msra.mxu0 (!%p236_p3), %v753_v3 }
   0xd   : > { %708 = vmatprep.subr.bf16.mxu0 (!%p236_p3), %v754_v4 }
   0xe   : > { %s926_s18 = smov (!%p286_p4, %s780_s18), 1 }
   0xf   : > { %s690_s11 = sshll.u32 %s926_s18, 4  ;;  %s664_s12 = sshll.u32 %s926_s18, 1 }
  0x10   : > { %709 = vmatpush3.bf16.msra.mxu0 %v755_v6  ;;  %s294_s23 = scalar_lea.vmem %s915_s0, %s690_s11  ;;  %s299_s26 = scalar_lea.vmem %s916_s1, %s664_s12 }
  0x11   : > { %710 = vmatprep.subr.bf16.mxu0 %v756_v7  ;;  %v321_v14 = vld [vmem:[%s294_s23] sm:$0xff]  ;;  %v322_v15 = vld [vmem:[%s294_s23 + $0x8] sm:$0xff]  ;;  %s691_s16 = sshll.u32 %s926_s18, 3 }
  0x12   : > { %v327_v16 = vld [vmem:[%s299_s26] sm:$0x3]  ;;  %v324_v17 = vunpack.c.h.bf16 %v321_v14  ;;  %v326_v18 = vunpack.c.h.bf16 %v322_v15  ;;  %v323_v25 = vunpack.c.l.bf16 %v321_v14  ;;  %v325_v26 = vunpack.c.l.bf16 %v322_v15  ;;  %s308_s23 = scalar_lea.vmem %s919_s4, %s691_s16  ;;  %s318_s27 = scalar_lea.vmem %s920_s5, %s691_s16 }
  0x13   : > { %v336_v20 = vrot.slane %v327_v16, %v335_v12  ;;  %v332_v27 = vrot.slane %v327_v16, %v331_v19  ;;  %v696_v38 = vld [vmem:[%s308_s23] sm:$0xff]  }
  0x14   : > { %711 = vmatpush3.bf16.msra.mxu0 %v757_v9  ;;  %v697_v43 = vunpack.c.l.bf16 %v696_v38  ;;  %v698_v45 = vunpack.c.h.bf16 %v696_v38 }
  0x15   : > { %712 = vmatprep.subr.bf16.mxu0 %v758_v10  ;;  %v340_v23 = vmul.f32 %v336_v20, %v324_v17  ;;  %v342_v24 = vmul.f32 %v336_v20, %v326_v18  ;;  %v339_v31 = vmul.f32 %v332_v27, %v323_v25  ;;  %v341_v32 = vmul.f32 %v332_v27, %v325_v26 }
  0x17   : > { %v344_v28 = vpack.c.bf16 %v342_v24, %v340_v23  ;;  %v343_v34 = vpack.c.bf16 %v341_v32, %v339_v31 }
  0x18   : > { %713 = vmatpush3.bf16.msra.mxu0 %v759_v11 }
  0x19   : > { %714 = vmatprep.subr.bf16.mxu0 %v760_v13  ;;  %512 = vmatprep.mubr.bf16.mxu0 %v344_v28 }
  0x1c   : > { %715 = vmatpush3.bf16.msra.mxu0 %v761_v21 }
  0x1d   : > { %716 = vmatprep.subr.bf16.mxu0 %v762_v22 }
  0x20   : > { %717 = vmatpush3.bf16.msra.mxu0 %v763_v29 }
  0x21   : > { %718 = vmatprep.subr.bf16.mxu0 %v764_v30 }
  0x24   : > { %719 = vmatpush3.bf16.msra.mxu0 %v765_v33 }
  0x27   : > { %513 = vmatmul.mubr.bf16.vlgmr.msra.gmra.mrb[0].mxu0 %v343_v34 }
  0xfa   : > { %v720_v35 = vpop.f32.mrb[0].mxu0 }
  0xfb   : > { %v721_v37 = vpop.f32.mrb[1].mxu0 }
  0xfc   : > { %v722_v39 = vadd.f32 %v721_v37, %v720_v35  ;;  %v723_v40 = vpop.f32.mrb[2].mxu0 }
  0xfd   : > { %v724_v41 = vpop.f32.mrb[3].mxu0 }
  0xfe   : > { %v515_v42 = vadd.f32 %v722_v39, %v669_v36  ;;  %v725_v44 = vadd.f32 %v724_v41, %v723_v40 }
 0x100   : > { %v518_v46 = vadd.f32 %v725_v44, %v669_v36  ;;  %v525_v47 = vadd.f32 %v697_v43, %v515_v42 }
 0x102   : > { %v526_v48 = vadd.f32 %v698_v45, %v518_v46 }
 0x104   : > { %v702_v49 = vpack.c.bf16 %v526_v48, %v525_v47 }
 0x106   : > { %703 = vst [vmem:[%s318_s27] sm:$0xff] %v702_v49  }
 0x107 PF: > { %s15_s20 = sadd.s32 1, %s788_s20   ;;  %s921_s18 = smov %s784_s19 }
 0x108   : > { %p12_p5 = scmp.ge.s32.totalorder %s15_s20, 4   ;;  %s922_s19 = smov %s924_s21 }
 0x10a   :  { %14 = sbr.rel (!%p12_p5) target bundleno = 2 (0x2), region = 76 }

// kernel: cnn_encoder_forward.20
= control target key start
LH: loop header
LB: loop body
LE: loop exit
PB: predicated region body
PF: predicated region fallthrough
CT: control target
= control target key end

     0   :  { %s489_s12 = smov 0   ;;  %s540_s0 = inlined_call_operand.vmem [shape: bf16[32,128], index: 0, kind: input, shape index: {}]   ;;  %s541_s1 = inlined_call_operand.vmem [shape: bf16[128,128], index: 1, kind: input, shape index: {}]   ;;  %s542_s2 = inlined_call_operand.vmem [shape: f32[1,128], index: 2, kind: input, shape index: {}]   ;;  %s543_s3 = inlined_call_operand.vmem [shape: bf16[32,128], index: 3, kind: output, shape index: {}]  }
   0x1 LB: > { %s373_s13 = sadd.s32 4294967295, %s465_s12   ;;  %p377_p0 = scmp.ge.s32.totalorder %s465_s12, 1  ;;  %s465_s12 = sphi %s489_s12, %s13_s12  }
   0x2   : > { %p138_p1 = scmp.lt.s32.totalorder %s465_s12, 3 }
   0x4   : > { %p139_p2 = pnand %p377_p0, %p138_p1 }
   0x5   : > { %v442_v0 = vld [vmem:[%s541_s1] sm:$0xff] (!%p139_p2)   ;;  %v467_v1 = vmov (!%p139_p2), 0.0   ;;  %v443_v2 = vld [vmem:[%s541_s1 + $0x8] sm:$0xff] (!%p139_p2)   ;;  %vm468_vm0 = vmmov (!%p139_p2), 0   ;;  %s378_s18 = sshll.u32 (!%p139_p2), %s373_s13, 1  ;;  %v444_v3 = vld [vmem:[%s541_s1 + $0x10] sm:$0xff] (!%p139_p2)  }
   0x6   : > { %142 = sbr.rel (%p139_p2) target bundleno = 287 (0x11f), region = 32  ;;  %412 = vmatprep.subr.bf16.mxu0 (!%p139_p2), %v467_v1  ;;  %428 = vmatprep.mubr.msk.bf16.mxu0 (!%p139_p2), %vm468_vm0, %v467_v1  ;;  %p163_p3 = scmp.lt.s32.totalorder (!%p139_p2), %s378_s18, 3  ;;  %v445_v4 = vld [vmem:[%s541_s1 + $0x18] sm:$0xff] (!%p139_p2)   ;;  %v446_v5 = vld [vmem:[%s541_s1 + $0x20] sm:$0xff] (!%p139_p2)   ;;  %v447_v6 = vld [vmem:[%s541_s1 + $0x28] sm:$0xff] (!%p139_p2)  }
   0x7   : > { %413 = vmatpush3.bf16.msra.mxu0 (!%p139_p2), %v442_v0  ;;  %v448_v7 = vld [vmem:[%s541_s1 + $0x30] sm:$0xff] (!%p139_p2)   ;;  %v449_v8 = vld [vmem:[%s541_s1 + $0x38] sm:$0xff] (!%p139_p2)   ;;  %v382_v10 = vld [vmem:[%s542_s2] ss:$0 sm:$0xff] (!%p139_p2) }
   0x8   : > { %414 = vmatprep.subr.bf16.mxu0 (!%p139_p2), %v467_v1 }
   0xb   : > { %415 = vmatpush3.bf16.msra.mxu0 (!%p139_p2), %v443_v2 }
   0xc   : > { %416 = vmatprep.subr.bf16.mxu0 (!%p139_p2), %v467_v1 }
   0xd   : > { %s545_s18 = smov (!%p163_p3, %s378_s18), 3 }
   0xe   : > { %s379_s21 = sshll.u32 %s545_s18, 2 }
   0xf   : > { %s166_s24 = scalar_lea.vmem %s540_s0, %s379_s21  ;;  %417 = vmatpush3.bf16.msra.mxu0 %v444_v3  ;;  %s172_s13 = scalar_lea.vmem %s543_s3, %s379_s21 }
  0x10   : > { %418 = vmatprep.subr.bf16.mxu0 %v467_v1  ;;  %v450_v9 = vld [vmem:[%s166_s24] sm:$0xff]  }
  0x13   : > { %419 = vmatpush3.bf16.msra.mxu0 %v445_v4 }
  0x14   : > { %420 = vmatprep.subr.bf16.mxu0 %v467_v1 }
  0x17   : > { %421 = vmatpush3.bf16.msra.mxu0 %v446_v5 }
  0x18   : > { %422 = vmatprep.subr.bf16.mxu0 %v467_v1 }
  0x1b   : > { %423 = vmatpush3.bf16.msra.mxu0 %v447_v6 }
  0x1c   : > { %424 = vmatprep.subr.bf16.mxu0 %v467_v1 }
  0x1f   : > { %425 = vmatpush3.bf16.msra.mxu0 %v448_v7 }
  0x20   : > { %426 = vmatprep.subr.bf16.mxu0 %v467_v1 }
  0x23   : > { %427 = vmatpush3.bf16.msra.mxu0 %v449_v8 }
  0x26   : > { %429 = vmatmul.mubr.bf16.vlgmr.msra.gmra.mrb[0].mxu0 %v450_v9 }
  0xf9   : > { %v288_v11 = vpop.f32.mrb[0].mxu0 }
  0xfa   : > { %v289_v12 = vadd.f32 %v382_v10, %v288_v11  ;;  %v430_v13 = vpop.f32.mrb[1].mxu0 }
  0xfb   : > { %v291_v14 = vpop.f32.mrb[2].mxu0 }
  0xfc   : > { %v295_v15 = vsub.f32 0.0, %v289_v12  ;;  %v292_v16 = vadd.f32 %v382_v10, %v291_v14  ;;  %v431_v17 = vpop.f32.mrb[3].mxu0 }
  0xfe   : > { %v297_v18 = vmul.f32 1.442695, %v295_v15  ;;  %v296_v19 = vsub.f32 0.0, %v292_v16 }
 0x100   : > { %451 = vpow2.f32 %v297_v18  ;;  %v299_v20 = vmul.f32 1.442695, %v296_v19 }
 0x102   : > { %453 = vpow2.f32 %v299_v20 }
 0x10a   : > { %v452_v21 = vpop.eup %451 }
 0x10b   : > { %v301_v22 = vadd.f32 1.0, %v452_v21 }
 0x10c   : > { %v454_v23 = vpop.eup %453 }
 0x10d   : > { %455 = vrcp.f32 %v301_v22  ;;  %v302_v24 = vadd.f32 1.0, %v454_v23 }
 0x10f   : > { %457 = vrcp.f32 %v302_v24 }
 0x117   : > { %v456_v25 = vpop.eup %455 }
 0x118   : > { %v305_v27 = vmul.f32 %v456_v25, %v289_v12 }
 0x119   : > { %v458_v26 = vpop.eup %457 }
 0x11a   : > { %v306_v28 = vmul.f32 %v458_v26, %v292_v16 }
 0x11c   : > { %v401_v29 = vpack.c.bf16 %v306_v28, %v305_v27 }
 0x11e   : > { %402 = vst [vmem:[%s172_s13] sm:$0xff] %v401_v29  }
 0x11f PF: > { %s13_s12 = sadd.s32 1, %s465_s12  }
 0x120   : > { %p10_p4 = scmp.ge.s32.totalorder %s13_s12, 4  }
 0x122   :  { %12 = sbr.rel (!%p10_p4) target bundleno = 1 (0x1), region = 62 }

// kernel: cnn_encoder_forward.18
= control target key start
LH: loop header
LB: loop body
LE: loop exit
PB: predicated region body
PF: predicated region fallthrough
CT: control target
= control target key end

     0   :  { %s1452_s27 = smov 0   ;;  %s1950_s0 = inlined_call_operand.vmem [shape: bf16[2,6,6,256], index: 0, kind: input, shape index: {}]   ;;  %s1951_s1 = inlined_call_operand.vmem [shape: f32[9,1,1,256], index: 1, kind: input, shape index: {}]   ;;  %s1952_s2 = inlined_call_operand.vmem [shape: f32[1,1,256], index: 2, kind: input, shape index: {}]   ;;  %s1953_s3 = inlined_call_operand.vmem [shape: f32[256,128], index: 3, kind: input, shape index: {}]   ;;  %s1954_s4 = inlined_call_operand.vmem [shape: f32[1,128], index: 4, kind: input, shape index: {}]   ;;  %s1955_s5 = inlined_call_operand.vmem [shape: f32[128,256], index: 5, kind: input, shape index: {}]   ;;  %s1956_s6 = inlined_call_operand.vmem [shape: f32[1,256], index: 6, kind: input, shape index: {}]   ;;  %s1957_s7 = inlined_call_operand.vmem [shape: bf16[2,4,4,256], index: 7, kind: output, shape index: {0}]   ;;  %s1958_s8 = inlined_call_operand.vmem [shape: f32[2,1,256], index: 8, kind: output, shape index: {1}]  }
   0x1 LB: > { %s1223_s28 = sadd.s32 4294967295, %s1403_s27   ;;  %p1227_p0 = scmp.ge.s32.totalorder %s1403_s27, 1  ;;  %s1403_s27 = sphi %s1452_s27, %s19_s27  }
   0x2   : > { %p265_p1 = scmp.lt.s32.totalorder %s1403_s27, 3 }
   0x4   : > { %p266_p2 = pnand %p1227_p0, %p265_p1 }
   0x5   : > { %v894_v0 = vld [vmem:[%s1953_s3 + $0x80] sm:$0xff] (!%p266_p2)  ;;  %v895_v1 = vld [vmem:[%s1953_s3 + $0x88] sm:$0xff] (!%p266_p2)  ;;  %p303_p3 = scmp.lt.s32.totalorder (!%p266_p2), %s1223_s28, 1  ;;  %v1959_v3 = vlaneseq (!%p266_p2)  ;;  %v896_v6 = vld [vmem:[%s1953_s3 + $0x90] sm:$0xff] (!%p266_p2)  ;;  %vm847_vm0 = vcmask (!%p266_p2), 1043456  }
   0x6   : > { %269 = sbr.rel (%p266_p2) target bundleno = 626 (0x272), region = 48  ;;  %v878_v2 = vld [vmem:[%s1953_s3] sm:$0xff] (!%p266_p2)  ;;  %v1278_v4 = vpack.c.bf16 (!%p266_p2), %v895_v1, %v894_v0  ;;  %v879_v5 = vld [vmem:[%s1953_s3 + $0x8] sm:$0xff] (!%p266_p2)  ;;  %v897_v7 = vld [vmem:[%s1953_s3 + $0x98] sm:$0xff] (!%p266_p2) }
   0x7   : > { %v1280_v8 = vpack.c.bf16 (!%p266_p2), %v879_v5, %v878_v2  ;;  %v1282_v9 = vpack.c.bf16 (!%p266_p2), %v897_v7, %v896_v6  ;;  %v880_v10 = vld [vmem:[%s1953_s3 + $0x10] sm:$0xff] (!%p266_p2)  ;;  %v881_v11 = vld [vmem:[%s1953_s3 + $0x18] sm:$0xff] (!%p266_p2)  ;;  %v898_v12 = vld [vmem:[%s1953_s3 + $0xa0] sm:$0xff] (!%p266_p2)  ;;  %v1511_v20 = vshrl.u32 (!%p266_p2), %v1959_v3, 7 }
   0x8   : > { %1279 = vmatprep.subr.bf16.mxu0 (!%p266_p2), %v1278_v4  ;;  %v899_v13 = vld [vmem:[%s1953_s3 + $0xa8] sm:$0xff] (!%p266_p2)  ;;  %v882_v14 = vld [vmem:[%s1953_s3 + $0x20] sm:$0xff] (!%p266_p2)  ;;  %v1284_v16 = vpack.c.bf16 (!%p266_p2), %v881_v11, %v880_v10  ;;  %v900_v17 = vld [vmem:[%s1953_s3 + $0xb0] sm:$0xff] (!%p266_p2) }
   0x9   : > { %v883_v15 = vld [vmem:[%s1953_s3 + $0x28] sm:$0xff] (!%p266_p2)  ;;  %1281 = vmatpush3.bf16.msra.mxu0 (!%p266_p2), %v1280_v8  ;;  %v901_v18 = vld [vmem:[%s1953_s3 + $0xb8] sm:$0xff] (!%p266_p2)  ;;  %v1507_v19 = vld [vmem:[%s1953_s3 + $0x30] sm:$0xff] (!%p266_p2)  ;;  %v1286_v21 = vpack.c.bf16 (!%p266_p2), %v899_v13, %v898_v12  ;;  %v1577_v36 = vsub.s32 (!%p266_p2), 0, %v1511_v20  ;;  %v1600_v43 = vsub.s32 (!%p266_p2), 1, %v1511_v20 }
   0xa   : > { %1283 = vmatprep.subr.bf16.mxu0 (!%p266_p2), %v1282_v9  ;;  %v885_v22 = vld [vmem:[%s1953_s3 + $0x38] sm:$0xff] (!%p266_p2)  ;;  %v1519_v23 = vld [vmem:[%s1953_s3 + $0xc0] sm:$0xff] (!%p266_p2)  ;;  %v1524_v24 = vld [vmem:[%s1953_s3 + $0xc8] sm:$0xff] (!%p266_p2)  ;;  %v1288_v31 = vpack.c.bf16 (!%p266_p2), %v883_v15, %v882_v14  ;;  %v1290_v32 = vpack.c.bf16 (!%p266_p2), %v901_v18, %v900_v17 }
   0xb   : > { %v1529_v25 = vld [vmem:[%s1953_s3 + $0x40] sm:$0xff] (!%p266_p2)  ;;  %v1534_v26 = vld [vmem:[%s1953_s3 + $0x48] sm:$0xff] (!%p266_p2)  ;;  %v1539_v27 = vld [vmem:[%s1953_s3 + $0xd0] sm:$0xff] (!%p266_p2)  ;;  %v1292_v37 = vpack.c.bf16 (!%p266_p2), %v885_v22, %v1507_v19  ;;  %v1294_v38 = vpack.c.bf16 (!%p266_p2), %v1524_v24, %v1519_v23 }
   0xc   : > { %v1544_v28 = vld [vmem:[%s1953_s3 + $0xd8] sm:$0xff] (!%p266_p2)  ;;  %v1549_v29 = vld [vmem:[%s1953_s3 + $0x50] sm:$0xff] (!%p266_p2)  ;;  %v1564_v33 = vld [vmem:[%s1953_s3 + $0xe0] sm:$0xff] (!%p266_p2)  ;;  %v1296_v39 = vpack.c.bf16 (!%p266_p2), %v1534_v26, %v1529_v25 }
   0xd   : > { %s1965_s28 = smov (!%p303_p3, %s1223_s28), 1  ;;  %v1554_v30 = vld [vmem:[%s1953_s3 + $0x58] sm:$0xff]  ;;  %1285 = vmatpush3.bf16.msra.mxu0 %v1284_v16  ;;  %v1569_v34 = vld [vmem:[%s1953_s3 + $0xe8] sm:$0xff]  ;;  %v1574_v35 = vld [vmem:[%s1953_s3 + $0x60] sm:$0xff]  ;;  %v1298_v44 = vpack.c.bf16 %v1544_v28, %v1539_v27 }
   0xe   : > { %s1342_s17 = smul.u32 48, %s1965_s28  ;;  %1287 = vmatprep.subr.bf16.mxu0 %v1286_v21  ;;  %v1587_v40 = vld [vmem:[%s1953_s3 + $0x68] sm:$0xff]  ;;  %v1592_v41 = vld [vmem:[%s1953_s3 + $0xf0] sm:$0xff]  ;;  %v1597_v42 = vld [vmem:[%s1953_s3 + $0xf8] sm:$0xff]  ;;  %v1300_v45 = vpack.c.bf16 %v1554_v30, %v1549_v29  ;;  %v1302_v46 = vpack.c.bf16 %v1569_v34, %v1564_v33  ;;  %s1242_s15 = sshll.u32 %s1965_s28, 4 }
   0xf   : > { %v1613_v48 = vld [vmem:[%s1953_s3 + $0x70] sm:$0xff]  ;;  %v1618_v49 = vld [vmem:[%s1953_s3 + $0x78] sm:$0xff]  ;;  %v335_v0 = vld [vmem:[%s1951_s1] sm:$0x3]  ;;  %s1231_s29 = sshll.u32 %s1965_s28, 1 }
  0x10   : > { %s1559_s19 = scalar_lea.vmem %s1950_s0, %s1342_s17  ;;  %v336_v6 = vld [vmem:[%s1951_s1 + $0x2] sm:$0x3]  ;;  %v337_v7 = vld [vmem:[%s1951_s1 + $0x4] sm:$0x3]  ;;  %v348_v10 = vrot.slane %v335_v0, %v1577_v36  ;;  %v352_v11 = vrot.slane %v335_v0, %v1600_v43  ;;  %v338_v29 = vld [vmem:[%s1951_s1 + $0x6] sm:$0x3]  ;;  %s316_s10 = scalar_lea.vmem %s1958_s8, %s1231_s29 }
  0x11   : > { %v317_v50 = vld [vmem:[%s1559_s19] sm:$0x77]  ;;  %v318_v53 = vld [vmem:[%s1559_s19 + $0x8] sm:$0x77]  ;;  %v319_v54 = vld [vmem:[%s1559_s19 + $0x10] sm:$0x77]  ;;  %1289 = vmatpush3.bf16.msra.mxu0 %v1288_v31  ;;  %v367_v12 = vrot.slane %v336_v6, %v1577_v36  ;;  %v371_v13 = vrot.slane %v336_v6, %v1600_v43  ;;  %v418_v14 = vrot.slane %v337_v7, %v1577_v36  ;;  %v422_v15 = vrot.slane %v337_v7, %v1600_v43 }
  0x12   : > { %v320_v55 = vld [vmem:[%s1559_s19 + $0x18] sm:$0x77]  ;;  %v323_v56 = vunpack.c.l.bf16 %v317_v50  ;;  %v324_v57 = vunpack.c.h.bf16 %v317_v50  ;;  %v321_v58 = vld [vmem:[%s1559_s19 + $0x20] sm:$0x77]  ;;  %v322_v59 = vld [vmem:[%s1559_s19 + $0x28] sm:$0x77]  ;;  %v1630_v60 = vunpack.c.l.bf16 %v318_v53  ;;  %v1632_v61 = vunpack.c.h.bf16 %v318_v53  ;;  %1291 = vmatprep.subr.bf16.mxu0 %v1290_v32  ;;  %s1815_s19 = scalar_lea.vmem %s1957_s7, %s1242_s15 }
  0x13   : > { %v1634_v62 = vunpack.c.l.bf16 %v319_v54  ;;  %v1636_v63 = vunpack.c.h.bf16 %v319_v54  ;;  %v1641_v1 = vunpack.c.l.bf16 %v320_v55  ;;  %v1643_v2 = vunpack.c.h.bf16 %v320_v55  ;;  %v339_v33 = vld [vmem:[%s1951_s1 + $0x8] sm:$0x3] }
  0x14   : > { %v1645_v4 = vunpack.c.l.bf16 %v321_v58  ;;  %v1647_v5 = vunpack.c.h.bf16 %v321_v58  ;;  %v1655_v8 = vunpack.c.l.bf16 %v322_v59  ;;  %v1657_v9 = vunpack.c.h.bf16 %v322_v59 }
  0x15   : > { %1293 = vmatpush3.bf16.msra.mxu0 %v1292_v37  ;;  %v355_v16 = vmul.f32 %v348_v10, %v323_v56  ;;  %v356_v17 = vmul.f32 %v352_v11, %v324_v57  ;;  %v357_v18 = vmul.f32 %v348_v10, %v1630_v60  ;;  %v358_v19 = vmul.f32 %v352_v11, %v1632_v61 }
  0x16   : > { %1295 = vmatprep.subr.bf16.mxu0 %v1294_v38  ;;  %v359_v21 = vmul.f32 %v348_v10, %v1634_v62  ;;  %v360_v22 = vmul.f32 %v352_v11, %v1636_v63  ;;  %v361_v23 = vmul.f32 %v348_v10, %v1641_v1  ;;  %v362_v24 = vmul.f32 %v352_v11, %v1643_v2 }
  0x17   : > { %v374_v25 = vmul.f32 %v367_v12, %v323_v56  ;;  %v375_v26 = vmul.f32 %v371_v13, %v324_v57  ;;  %v376_v27 = vmul.f32 %v367_v12, %v1630_v60  ;;  %v377_v28 = vmul.f32 %v371_v13, %v1632_v61 }
  0x18   : > { %v378_v31 = vmul.f32 %v367_v12, %v1634_v62  ;;  %v379_v32 = vmul.f32 %v371_v13, %v1636_v63  ;;  %v380_v37 = vmul.f32 %v367_v12, %v1641_v1  ;;  %v381_v38 = vmul.f32 %v371_v13, %v1643_v2 }
  0x19   : > { %1297 = vmatpush3.bf16.msra.mxu0 %v1296_v39  ;;  %v390_v50 = vrot.slane %v374_v25, 1  ;;  %v391_v53 = vrot.slane %v375_v26, 1  ;;  %v392_v54 = vrot.slane %v376_v27, 1  ;;  %v393_v55 = vrot.slane %v377_v28, 1 }
  0x1a   : > { %1299 = vmatprep.subr.bf16.mxu0 %v1298_v44  ;;  %v394_v58 = vrot.slane %v378_v31, 1  ;;  %v395_v59 = vrot.slane %v379_v32, 1  ;;  %v396_v0 = vrot.slane %v380_v37, 1  ;;  %v397_v6 = vrot.slane %v381_v38, 1 }
  0x1b   : > { %v406_v7 = vadd.f32 %v390_v50, %v355_v16  ;;  %v407_v10 = vadd.f32 %v391_v53, %v356_v17  ;;  %v408_v11 = vadd.f32 %v392_v54, %v357_v18  ;;  %v409_v3 = vadd.f32 %v393_v55, %v358_v19 }
  0x1c   : > { %v410_v52 = vadd.f32 %v394_v58, %v359_v21  ;;  %v411_v51 = vadd.f32 %v395_v59, %v360_v22  ;;  %v412_v47 = vadd.f32 %v396_v0, %v361_v23  ;;  %v413_v12 = vadd.f32 %v397_v6, %v362_v24  ;;  %v341_v23 = vld [vmem:[%s1951_s1 + $0xc] sm:$0x3] }
  0x1d   : > { %1301 = vmatpush3.bf16.msra.mxu0 %v1300_v45  ;;  %v425_v39 = vmul.f32 %v418_v14, %v323_v56  ;;  %v426_v13 = vmul.f32 %v422_v15, %v324_v57  ;;  %v427_v44 = vmul.f32 %v418_v14, %v1630_v60  ;;  %v428_v25 = vmul.f32 %v422_v15, %v1632_v61 }
  0x1e   : > { %1303 = vmatprep.subr.bf16.mxu0 %v1302_v46  ;;  %v429_v16 = vmul.f32 %v418_v14, %v1634_v62  ;;  %v430_v17 = vmul.f32 %v422_v15, %v1636_v63  ;;  %v431_v18 = vmul.f32 %v418_v14, %v1641_v1  ;;  %v432_v19 = vmul.f32 %v422_v15, %v1643_v2  ;;  %v340_v15 = vld [vmem:[%s1951_s1 + $0xa] sm:$0x3] }
  0x1f   : > { %v441_v30 = vrot.slane %v425_v39, 2  ;;  %v442_v45 = vrot.slane %v426_v13, 2  ;;  %v443_v56 = vrot.slane %v427_v44, 2  ;;  %v444_v57 = vrot.slane %v428_v25, 2 }
  0x20   : > { %v445_v34 = vrot.slane %v429_v16, 2  ;;  %v446_v46 = vrot.slane %v430_v17, 2  ;;  %v447_v21 = vrot.slane %v431_v18, 2  ;;  %v448_v22 = vrot.slane %v432_v19, 2 }
  0x21   : > { %v1960_v14 = vpack.c.bf16 %v1587_v40, %v1574_v35  ;;  %v457_v24 = vadd.f32 %v441_v30, %v406_v7  ;;  %v458_v26 = vadd.f32 %v442_v45, %v407_v10  ;;  %v459_v27 = vadd.f32 %v443_v56, %v408_v11 }
  0x22   : > { %v460_v28 = vadd.f32 %v444_v57, %v409_v3  ;;  %v1961_v31 = vpack.c.bf16 %v1597_v42, %v1592_v41  ;;  %v461_v32 = vadd.f32 %v445_v34, %v410_v52  ;;  %v462_v37 = vadd.f32 %v446_v46, %v411_v51 }
  0x23   : > { %1305 = vmatpush3.bf16.msra.mxu0 %v1960_v14  ;;  %v463_v35 = vadd.f32 %v447_v21, %v412_v47  ;;  %v464_v40 = vadd.f32 %v448_v22, %v413_v12  ;;  %v469_v38 = vrot.slane %v338_v29, %v1577_v36  ;;  %v473_v50 = vrot.slane %v338_v29, %v1600_v43 }
  0x24   : > { %1307 = vmatprep.subr.bf16.mxu0 %v1961_v31  ;;  %v496_v53 = vrot.slane %v339_v33, %v1577_v36  ;;  %v500_v54 = vrot.slane %v339_v33, %v1600_v43  ;;  %v547_v55 = vrot.slane %v340_v15, %v1577_v36  ;;  %v551_v3 = vrot.slane %v340_v15, %v1600_v43 }
  0x25   : > { %v1714_v58 = vrot.slane %v341_v23, %v1577_v36  ;;  %v1717_v41 = vrot.slane %v341_v23, %v1600_v43  ;;  %v1962_v42 = vpack.c.bf16 %v1618_v49, %v1613_v48  ;;  %v476_v47 = vmul.f32 %v469_v38, %v1630_v60 }
  0x26   : > { %v477_v51 = vmul.f32 %v473_v50, %v1632_v61  ;;  %v478_v52 = vmul.f32 %v469_v38, %v1634_v62  ;;  %v479_v59 = vmul.f32 %v473_v50, %v1636_v63  ;;  %v480_v0 = vmul.f32 %v469_v38, %v1641_v1 }
  0x27   : > { %1309 = vmatpush3.bf16.msra.mxu0 %v1962_v42  ;;  %v481_v6 = vmul.f32 %v473_v50, %v1643_v2  ;;  %v482_v7 = vmul.f32 %v469_v38, %v1645_v4  ;;  %v483_v10 = vmul.f32 %v473_v50, %v1647_v5  ;;  %v484_v11 = vadd.f32 %v476_v47, %v457_v24 }
  0x28   : > { %v485_v12 = vadd.f32 %v477_v51, %v458_v26  ;;  %v486_v48 = vadd.f32 %v478_v52, %v459_v27  ;;  %v487_v49 = vadd.f32 %v479_v59, %v460_v28  ;;  %v488_v39 = vadd.f32 %v480_v0, %v461_v32 }
  0x29   : > { %v489_v13 = vadd.f32 %v481_v6, %v462_v37  ;;  %v490_v44 = vadd.f32 %v482_v7, %v463_v35  ;;  %v491_v25 = vadd.f32 %v483_v10, %v464_v40  ;;  %v503_v16 = vmul.f32 %v496_v53, %v1630_v60 }
  0x2a   : > { %v504_v17 = vmul.f32 %v500_v54, %v1632_v61  ;;  %v505_v18 = vmul.f32 %v496_v53, %v1634_v62  ;;  %v506_v19 = vmul.f32 %v500_v54, %v1636_v63  ;;  %v507_v29 = vmul.f32 %v496_v53, %v1641_v1 }
  0x2b   : > { %v508_v30 = vmul.f32 %v500_v54, %v1643_v2  ;;  %v509_v45 = vmul.f32 %v496_v53, %v1645_v4  ;;  %v510_v56 = vmul.f32 %v500_v54, %v1647_v5  ;;  %v519_v57 = vrot.slane %v503_v16, 1 }
  0x2c   : > { %v520_v33 = vrot.slane %v504_v17, 1  ;;  %v521_v34 = vrot.slane %v505_v18, 1  ;;  %v522_v46 = vrot.slane %v506_v19, 1  ;;  %v523_v21 = vrot.slane %v507_v29, 1  ;;  %v342_v17 = vld [vmem:[%s1951_s1 + $0xe] sm:$0x3] }
  0x2d   : > { %v524_v22 = vrot.slane %v508_v30, 1  ;;  %v525_v14 = vrot.slane %v509_v45, 1  ;;  %v526_v15 = vrot.slane %v510_v56, 1  ;;  %v535_v23 = vadd.f32 %v519_v57, %v484_v11  ;;  %v343_v45 = vld [vmem:[%s1951_s1 + $0x10] sm:$0x3] }
  0x2e   : > { %v536_v24 = vadd.f32 %v520_v33, %v485_v12  ;;  %v537_v26 = vadd.f32 %v521_v34, %v486_v48  ;;  %v538_v27 = vadd.f32 %v522_v46, %v487_v49  ;;  %v539_v28 = vadd.f32 %v523_v21, %v488_v39  ;;  %v723_v33 = vld [vmem:[%s1952_s2] sm:$0x3] }
  0x2f   : > { %v540_v31 = vadd.f32 %v524_v22, %v489_v13  ;;  %v541_v32 = vadd.f32 %v525_v14, %v490_v44  ;;  %v542_v37 = vadd.f32 %v526_v15, %v491_v25  ;;  %v554_v35 = vmul.f32 %v547_v55, %v1630_v60 }
  0x30   : > { %v555_v40 = vmul.f32 %v551_v3, %v1632_v61  ;;  %v556_v38 = vmul.f32 %v547_v55, %v1634_v62  ;;  %v557_v50 = vmul.f32 %v551_v3, %v1636_v63  ;;  %v558_v53 = vmul.f32 %v547_v55, %v1641_v1 }
  0x31   : > { %v559_v54 = vmul.f32 %v551_v3, %v1643_v2  ;;  %v560_v42 = vmul.f32 %v547_v55, %v1645_v4  ;;  %v561_v47 = vmul.f32 %v551_v3, %v1647_v5  ;;  %v570_v51 = vrot.slane %v554_v35, 2 }
  0x32   : > { %v571_v52 = vrot.slane %v555_v40, 2  ;;  %v572_v59 = vrot.slane %v556_v38, 2  ;;  %v573_v0 = vrot.slane %v557_v50, 2  ;;  %v574_v6 = vrot.slane %v558_v53, 2 }
  0x33   : > { %v575_v60 = vrot.slane %v559_v54, 2  ;;  %v576_v7 = vrot.slane %v560_v42, 2  ;;  %v577_v61 = vrot.slane %v561_v47, 2  ;;  %v586_v10 = vadd.f32 %v570_v51, %v535_v23 }
  0x34   : > { %v587_v11 = vadd.f32 %v571_v52, %v536_v24  ;;  %v588_v12 = vadd.f32 %v572_v59, %v537_v26  ;;  %v589_v48 = vadd.f32 %v573_v0, %v538_v27  ;;  %v590_v49 = vadd.f32 %v574_v6, %v539_v28 }
  0x35   : > { %v591_v39 = vadd.f32 %v575_v60, %v540_v31  ;;  %v592_v13 = vadd.f32 %v576_v7, %v541_v32  ;;  %v593_v44 = vadd.f32 %v577_v61, %v542_v37  ;;  %v605_v55 = vmul.f32 %v1714_v58, %v1634_v62 }
  0x36   : > { %v606_v3 = vmul.f32 %v1717_v41, %v1636_v63  ;;  %v607_v25 = vmul.f32 %v1714_v58, %v1641_v1  ;;  %v608_v16 = vmul.f32 %v1717_v41, %v1643_v2  ;;  %v609_v18 = vmul.f32 %v1714_v58, %v1645_v4 }
  0x37   : > { %v610_v19 = vmul.f32 %v1717_v41, %v1647_v5  ;;  %v611_v29 = vmul.f32 %v1714_v58, %v1655_v8  ;;  %v612_v30 = vmul.f32 %v1717_v41, %v1657_v9  ;;  %v613_v56 = vadd.f32 %v605_v55, %v586_v10 }
  0x38   : > { %v614_v57 = vadd.f32 %v606_v3, %v587_v11  ;;  %v615_v34 = vadd.f32 %v607_v25, %v588_v12  ;;  %v616_v46 = vadd.f32 %v608_v16, %v589_v48  ;;  %v617_v21 = vadd.f32 %v609_v18, %v590_v49 }
  0x39   : > { %v618_v22 = vadd.f32 %v610_v19, %v591_v39  ;;  %v619_v14 = vadd.f32 %v611_v29, %v592_v13  ;;  %v620_v15 = vadd.f32 %v612_v30, %v593_v44  ;;  %v625_v58 = vrot.slane %v342_v17, %v1577_v36 }
  0x3a   : > { %v629_v41 = vrot.slane %v342_v17, %v1600_v43  ;;  %v676_v23 = vrot.slane %v343_v45, %v1577_v36  ;;  %v680_v24 = vrot.slane %v343_v45, %v1600_v43  ;;  %v728_v26 = vrot.slane %v723_v33, %v1577_v36 }
  0x3b   : > { %v732_v27 = vrot.slane %v723_v33, %v1600_v43  ;;  %v632_v28 = vmul.f32 %v625_v58, %v1634_v62  ;;  %v634_v32 = vmul.f32 %v625_v58, %v1641_v1  ;;  %v636_v35 = vmul.f32 %v625_v58, %v1645_v4 }
  0x3c   : > { %v633_v31 = vmul.f32 %v629_v41, %v1636_v63  ;;  %v635_v37 = vmul.f32 %v629_v41, %v1643_v2  ;;  %v637_v40 = vmul.f32 %v629_v41, %v1647_v5  ;;  %v638_v38 = vmul.f32 %v625_v58, %v1655_v8 }
  0x3d   : > { %v639_v50 = vmul.f32 %v629_v41, %v1657_v9  ;;  %v648_v53 = vrot.slane %v632_v28, 1  ;;  %v650_v42 = vrot.slane %v634_v32, 1  ;;  %v652_v51 = vrot.slane %v636_v35, 1 }
  0x3e   : > { %v649_v54 = vrot.slane %v633_v31, 1  ;;  %v651_v47 = vrot.slane %v635_v37, 1  ;;  %v653_v52 = vrot.slane %v637_v40, 1  ;;  %v654_v59 = vrot.slane %v638_v38, 1 }
  0x3f   : > { %v655_v0 = vrot.slane %v639_v50, 1  ;;  %v664_v6 = vadd.f32 %v648_v53, %v613_v56  ;;  %v666_v7 = vadd.f32 %v650_v42, %v615_v34  ;;  %v668_v10 = vadd.f32 %v652_v51, %v617_v21 }
  0x40   : > { %v665_v60 = vadd.f32 %v649_v54, %v614_v57  ;;  %v667_v61 = vadd.f32 %v651_v47, %v616_v46  ;;  %v669_v11 = vadd.f32 %v653_v52, %v618_v22  ;;  %v670_v12 = vadd.f32 %v654_v59, %v619_v14 }
  0x41   : > { %v671_v48 = vadd.f32 %v655_v0, %v620_v15  ;;  %v683_v49 = vmul.f32 %v676_v23, %v1634_v62  ;;  %v684_v39 = vmul.f32 %v680_v24, %v1636_v63  ;;  %v685_v13 = vmul.f32 %v676_v23, %v1641_v1 }
  0x42   : > { %v686_v44 = vmul.f32 %v680_v24, %v1643_v2  ;;  %v687_v55 = vmul.f32 %v676_v23, %v1645_v4  ;;  %v688_v3 = vmul.f32 %v680_v24, %v1647_v5  ;;  %v689_v25 = vmul.f32 %v676_v23, %v1655_v8 }
  0x43   : > { %v690_v16 = vmul.f32 %v680_v24, %v1657_v9  ;;  %v699_v17 = vrot.slane %v683_v49, 2  ;;  %v700_v18 = vrot.slane %v684_v39, 2  ;;  %v701_v19 = vrot.slane %v685_v13, 2 }
  0x44   : > { %v702_v29 = vrot.slane %v686_v44, 2  ;;  %v703_v30 = vrot.slane %v687_v55, 2  ;;  %v704_v62 = vrot.slane %v688_v3, 2  ;;  %v705_v45 = vrot.slane %v689_v25, 2 }
  0x45   : > { %v706_v63 = vrot.slane %v690_v16, 2  ;;  %v715_v56 = vadd.f32 %v699_v17, %v664_v6  ;;  %v716_v1 = vadd.f32 %v700_v18, %v665_v60  ;;  %v717_v57 = vadd.f32 %v701_v19, %v666_v7 }
  0x46   : > { %v718_v2 = vadd.f32 %v702_v29, %v667_v61  ;;  %v719_v33 = vadd.f32 %v703_v30, %v668_v10  ;;  %v720_v4 = vadd.f32 %v704_v62, %v669_v11  ;;  %v721_v34 = vadd.f32 %v705_v45, %v670_v12 }
  0x47   : > { %v722_v5 = vadd.f32 %v706_v63, %v671_v48  ;;  %v735_v46 = vadd.f32 %v728_v26, %v715_v56  ;;  %v736_v8 = vadd.f32 %v732_v27, %v716_v1  ;;  %v1793_v21 = vadd.f32 %v728_v26, %v717_v57 }
  0x48   : > { %v1795_v9 = vadd.f32 %v732_v27, %v718_v2  ;;  %v1797_v22 = vadd.f32 %v728_v26, %v719_v33  ;;  %v1799_v14 = vadd.f32 %v732_v27, %v720_v4  ;;  %v1801_v15 = vadd.f32 %v728_v26, %v721_v34 }
  0x49   : > { %v1803_v58 = vadd.f32 %v732_v27, %v722_v5  ;;  %v743_v41 = vsub.f32 0.0, %v735_v46  ;;  %v744_v23 = vsub.f32 0.0, %v736_v8  ;;  %v745_v24 = vsub.f32 0.0, %v1793_v21 }
  0x4a   : > { %v746_v28 = vsub.f32 0.0, %v1795_v9  ;;  %v747_v31 = vsub.f32 0.0, %v1797_v22  ;;  %v748_v32 = vsub.f32 0.0, %v1799_v14  ;;  %v749_v37 = vsub.f32 0.0, %v1801_v15 }
  0x4b   : > { %v751_v35 = vmul.f32 1.442695, %v743_v41  ;;  %v753_v40 = vmul.f32 1.442695, %v744_v23  ;;  %v755_v38 = vmul.f32 1.442695, %v745_v24 }
  0x4c   : > { %v750_v26 = vsub.f32 0.0, %v1803_v58  ;;  %v757_v50 = vmul.f32 1.442695, %v746_v28  ;;  %v759_v27 = vmul.f32 1.442695, %v747_v31 }
  0x4d   : > { %1353 = vpow2.f32 %v751_v35  ;;  %v761_v53 = vmul.f32 1.442695, %v748_v32  ;;  %v763_v54 = vmul.f32 1.442695, %v749_v37 }
  0x4e   : > { %1355 = vpow2.f32 %v753_v40  ;;  %v765_v42 = vmul.f32 1.442695, %v750_v26 }
  0x4f   : > { %1357 = vpow2.f32 %v755_v38 }
  0x50   : > { %1359 = vpow2.f32 %v757_v50 }
  0x51   : > { %1361 = vpow2.f32 %v759_v27 }
  0x52   : > { %1363 = vpow2.f32 %v761_v53 }
  0x53   : > { %1365 = vpow2.f32 %v763_v54 }
  0x54   : > { %1367 = vpow2.f32 %v765_v42 }
  0x57   : > { %v1354_v47 = vpop.eup %1353 }
  0x58   : > { %v1356_v51 = vpop.eup %1355  ;;  %v767_v52 = vadd.f32 1.0, %v1354_v47 }
  0x59   : > { %v1358_v59 = vpop.eup %1357  ;;  %v768_v0 = vadd.f32 1.0, %v1356_v51 }
  0x5a   : > { %v1360_v6 = vpop.eup %1359  ;;  %v769_v60 = vadd.f32 1.0, %v1358_v59  ;;  %1369 = vrcp.f32 %v767_v52 }
  0x5b   : > { %v1362_v7 = vpop.eup %1361  ;;  %v770_v61 = vadd.f32 1.0, %v1360_v6  ;;  %1371 = vrcp.f32 %v768_v0  ;;  %v988_v6 = vld [vmem:[%s1955_s5 + $0x8] sm:$0xff] }
  0x5c   : > { %v1364_v10 = vpop.eup %1363  ;;  %v771_v11 = vadd.f32 1.0, %v1362_v7  ;;  %1373 = vrcp.f32 %v769_v60  ;;  %v990_v60 = vld [vmem:[%s1955_s5 + $0x18] sm:$0xff] }
  0x5d   : > { %v1366_v12 = vpop.eup %1365  ;;  %v772_v48 = vadd.f32 1.0, %v1364_v10  ;;  %1375 = vrcp.f32 %v770_v61  ;;  %v1310_v7 = vpack.c.bf16 %v990_v60, %v988_v6  ;;  %v987_v61 = vld [vmem:[%s1955_s5] sm:$0xff]  ;;  %v989_v10 = vld [vmem:[%s1955_s5 + $0x10] sm:$0xff] }
  0x5e   : > { %v1368_v49 = vpop.eup %1367  ;;  %v773_v39 = vadd.f32 1.0, %v1366_v12  ;;  %1377 = vrcp.f32 %v771_v11  ;;  %v1312_v11 = vpack.c.bf16 %v989_v10, %v987_v61  ;;  %v992_v12 = vld [vmem:[%s1955_s5 + $0x28] sm:$0xff] }
  0x5f   : > { %v774_v13 = vadd.f32 1.0, %v1368_v49  ;;  %1379 = vrcp.f32 %v772_v48  ;;  %1311 = vmatprep.subr.bf16.mxu1 %v1310_v7  ;;  %v994_v48 = vld [vmem:[%s1955_s5 + $0x38] sm:$0xff] }
  0x60   : > { %1381 = vrcp.f32 %v773_v39  ;;  %1313 = vmatpush1.bf16.msra.mxu1 %v1312_v11  ;;  %v1314_v49 = vpack.c.bf16 %v994_v48, %v992_v12  ;;  %v991_v39 = vld [vmem:[%s1955_s5 + $0x20] sm:$0xff] }
  0x61   : > { %1383 = vrcp.f32 %v774_v13  ;;  %v993_v13 = vld [vmem:[%s1955_s5 + $0x30] sm:$0xff] }
  0x62   : > { %1315 = vmatprep.subr.bf16.mxu1 %v1314_v49 }
  0x64   : > { %v1370_v44 = vpop.eup %1369 }
  0x65   : > { %v1372_v55 = vpop.eup %1371  ;;  %v783_v3 = vmul.f32 %v1370_v44, %v735_v46  ;;  %v1316_v44 = vpack.c.bf16 %v993_v13, %v991_v39 }
  0x66   : > { %v1374_v25 = vpop.eup %1373  ;;  %v784_v16 = vmul.f32 %v1372_v55, %v736_v8  ;;  %v996_v55 = vld [vmem:[%s1955_s5 + $0x48] sm:$0xff] }
  0x67   : > { %v1376_v17 = vpop.eup %1375  ;;  %v785_v18 = vmul.f32 %v1374_v25, %v1793_v21  ;;  %v848_v19 = vsel %vm847_vm0, %v783_v3, 0.0  ;;  %1317 = vmatpush1.bf16.msra.mxu1 %v1316_v44 }
  0x68   : > { %v1378_v29 = vpop.eup %1377  ;;  %v786_v30 = vmul.f32 %v1376_v17, %v1795_v9  ;;  %v1232_v62 = vpack.c.bf16 %v784_v16, %v783_v3  ;;  %v855_v45 = vsel %vm847_vm0, %v784_v16, 0.0  ;;  %v998_v3 = vld [vmem:[%s1955_s5 + $0x58] sm:$0xff]  ;;  %v995_v16 = vld [vmem:[%s1955_s5 + $0x40] sm:$0xff]  ;;  %v997_v17 = vld [vmem:[%s1955_s5 + $0x50] sm:$0xff] }
  0x69   : > { %v1380_v63 = vpop.eup %1379  ;;  %v787_v56 = vmul.f32 %v1378_v29, %v1797_v22  ;;  %v849_v1 = vsel %vm847_vm0, %v785_v18, 0.0  ;;  %v1318_v25 = vpack.c.bf16 %v998_v3, %v996_v55  ;;  %v1002_v29 = vld [vmem:[%s1955_s5 + $0x78] sm:$0xff] }
  0x6a   : > { %v1382_v57 = vpop.eup %1381  ;;  %v788_v2 = vmul.f32 %v1380_v63, %v1799_v14  ;;  %v1233_v33 = vpack.c.bf16 %v786_v30, %v785_v18  ;;  %1236 = vst.sshfl [vmem:[%s1815_s19] sm:$0x33 pattern:$0x76325410] %v1232_v62  ;;  %v856_v4 = vsel %vm847_vm0, %v786_v30, 0.0  ;;  %v850_v34 = vadd.f32 %v849_v1, %v848_v19  ;;  %v1000_v19 = vld [vmem:[%s1955_s5 + $0x68] sm:$0xff]  ;;  %v999_v62 = vld [vmem:[%s1955_s5 + $0x60] sm:$0xff] }
  0x6b   : > { %v1384_v5 = vpop.eup %1383  ;;  %v789_v46 = vmul.f32 %v1382_v57, %v1801_v15  ;;  %v857_v8 = vadd.f32 %v856_v4, %v855_v45  ;;  %v851_v21 = vsel %vm847_vm0, %v787_v56, 0.0  ;;  %v1320_v18 = vpack.c.bf16 %v997_v17, %v995_v16  ;;  %1319 = vmatprep.subr.bf16.mxu1 %v1318_v25  ;;  %v1001_v45 = vld [vmem:[%s1955_s5 + $0x70] sm:$0xff]  ;;  %v1006_v1 = vld [vmem:[%s1955_s5 + $0x98] sm:$0xff] }
  0x6c   : > { %v790_v9 = vmul.f32 %v1384_v5, %v1803_v58  ;;  %v1234_v22 = vpack.c.bf16 %v788_v2, %v787_v56  ;;  %1237 = vst.sshfl [vmem:[%s1815_s19 + $0x4] sm:$0x33 pattern:$0x76325410] %v1233_v33  ;;  %v858_v41 = vsel %vm847_vm0, %v788_v2, 0.0  ;;  %v852_v14 = vadd.f32 %v851_v21, %v850_v34  ;;  %v1004_v56 = vld [vmem:[%s1955_s5 + $0x88] sm:$0xff] }
  0x6d   : > { %v859_v23 = vadd.f32 %v858_v41, %v857_v8  ;;  %v853_v24 = vsel %vm847_vm0, %v789_v46, 0.0  ;;  %1321 = vmatpush1.bf16.msra.mxu1 %v1320_v18  ;;  %v1322_v30 = vpack.c.bf16 %v1002_v29, %v1000_v19  ;;  %v1324_v63 = vpack.c.bf16 %v1001_v45, %v999_v62  ;;  %v1003_v2 = vld [vmem:[%s1955_s5 + $0x80] sm:$0xff]  ;;  %v1005_v33 = vld [vmem:[%s1955_s5 + $0x90] sm:$0xff]  ;;  %v1008_v34 = vld [vmem:[%s1955_s5 + $0xa8] sm:$0xff] }
  0x6e   : > { %v1235_v28 = vpack.c.bf16 %v790_v9, %v789_v46  ;;  %1238 = vst.sshfl [vmem:[%s1815_s19 + $0x8] sm:$0x33 pattern:$0x76325410] %v1234_v22  ;;  %v860_v31 = vsel %vm847_vm0, %v790_v9, 0.0  ;;  %v854_v32 = vadd.f32 %v853_v24, %v852_v14  ;;  %v1326_v57 = vpack.c.bf16 %v1006_v1, %v1004_v56  ;;  %v1010_v5 = vld [vmem:[%s1955_s5 + $0xb8] sm:$0xff] }
  0x6f   : > { %v861_v37 = vadd.f32 %v860_v31, %v859_v23  ;;  %1323 = vmatprep.subr.bf16.mxu1 %v1322_v30  ;;  %v1328_v4 = vpack.c.bf16 %v1005_v33, %v1003_v2  ;;  %v1330_v46 = vpack.c.bf16 %v1010_v5, %v1008_v34  ;;  %v1007_v8 = vld [vmem:[%s1955_s5 + $0xa0] sm:$0xff]  ;;  %v1009_v21 = vld [vmem:[%s1955_s5 + $0xb0] sm:$0xff]  ;;  %v1012_v22 = vld [vmem:[%s1955_s5 + $0xc8] sm:$0xff]  ;;  %v1963_v30 = vlaneseq }
  0x70   : > { %1239 = vst.sshfl [vmem:[%s1815_s19 + $0xc] sm:$0x33 pattern:$0x76325410] %v1235_v28  ;;  %v862_v15 = vsel %vm847_vm0, %v854_v32, 0.0  ;;  %v1332_v9 = vpack.c.bf16 %v1009_v21, %v1007_v8  ;;  %v1014_v41 = vld [vmem:[%s1955_s5 + $0xd8] sm:$0xff] }
  0x71   : > { %v869_v35 = vsel %vm847_vm0, %v861_v37, 0.0  ;;  %v863_v58 = vrot.slane %v862_v15, 4  ;;  %1325 = vmatpush1.bf16.msra.mxu1 %v1324_v63  ;;  %v1011_v14 = vld [vmem:[%s1955_s5 + $0xc0] sm:$0xff]  ;;  %v1334_v23 = vpack.c.bf16 %v1014_v41, %v1012_v22  ;;  %v1013_v24 = vld [vmem:[%s1955_s5 + $0xd0] sm:$0xff]  ;;  %v1016_v28 = vld [vmem:[%s1955_s5 + $0xe8] sm:$0xff]  ;;  %v1405_v32 = vmov 0.0  }
  0x72   : > { %v870_v40 = vrot.slane %v869_v35, 4  ;;  %1327 = vmatprep.subr.bf16.mxu1 %v1326_v57  ;;  %v1018_v31 = vld [vmem:[%s1955_s5 + $0xf8] sm:$0xff]  ;;  %1095 = vmatprep.mubr.f32.mxu1 %v1405_v32  ;;  %v1336_v37 = vpack.c.bf16 %v1013_v24, %v1011_v14  ;;  %vm1134_vm1 = vcmp.lt.s32.totalorder %v1963_v30, 256 }
  0x73   : > { %v864_v38 = vadd.f32 %v863_v58, %v862_v15  ;;  %v1338_v15 = vpack.c.bf16 %v1018_v31, %v1016_v28  ;;  %v1017_v58 = vld [vmem:[%s1955_s5 + $0xf0] sm:$0xff] }
  0x74   : > { %v871_v26 = vadd.f32 %v870_v40, %v869_v35  ;;  %v1015_v35 = vld [vmem:[%s1955_s5 + $0xe0] sm:$0xff] }
  0x75   : > { %v865_v50 = vrot.slane %v864_v38, 2  ;;  %1329 = vmatpush1.bf16.msra.mxu1 %v1328_v4  ;;  %v1340_v40 = vpack.c.bf16 %v1017_v58, %v1015_v35 }
  0x76   : > { %v872_v27 = vrot.slane %v871_v26, 2  ;;  %1331 = vmatprep.subr.bf16.mxu1 %v1330_v46 }
  0x77   : > { %v866_v53 = vadd.f32 %v865_v50, %v864_v38 }
  0x78   : > { %v873_v54 = vadd.f32 %v872_v27, %v871_v26  ;;  %v910_v26 = vld [vmem:[%s1954_s4] sm:$0x1] }
  0x79   : > { %v867_v42 = vrot.slane %v866_v53, 1  ;;  %1333 = vmatpush1.bf16.msra.mxu1 %v1332_v9 }
  0x7a   : > { %v874_v47 = vrot.slane %v873_v54, 1  ;;  %1335 = vmatprep.subr.bf16.mxu1 %v1334_v23 }
  0x7b   : > { %v868_v51 = vadd.f32 %v867_v42, %v866_v53 }
  0x7c   : > { %v875_v52 = vadd.f32 %v874_v47, %v873_v54 }
  0x7d   : > { %v876_v59 = vmul.f32 0.0625, %v868_v51  ;;  %1337 = vmatpush1.bf16.msra.mxu1 %v1336_v37 }
  0x7e   : > { %v877_v0 = vmul.f32 0.0625, %v875_v52  ;;  %1339 = vmatprep.subr.bf16.mxu1 %v1338_v15 }
  0x80   : > { %975 = vmatprep.mubr.f32.mxu0 %v877_v0  ;;  %v1019_v0 = vld [vmem:[%s1956_s6] sm:$0x3] }
  0x81   : > { %976 = vmatmul.mubr.f32.vlgmr.msra.gmra.mrb[0].mxu0 %v876_v59  ;;  %1341 = vmatpush1.bf16.msra.mxu1 %v1340_v40  ;;  %v1024_v6 = vrot.slane %v1019_v0, %v1577_v36  ;;  %v1028_v60 = vrot.slane %v1019_v0, %v1600_v43  ;;  %v1406_v36 = vmov 1966171168  }
  0x82   : > { %v1118_v25 = vunpack.c.l.s4 %v1406_v36 }
  0x84   : > { %v1119_v43 = vunpack.c.0.s8 %v1118_v25 }
  0x86   : > { %v1122_v17 = vsub.s32 %v1119_v43, %v1511_v20 }
 0x154   : > { %v1275_v38 = vpop.f32.mrb[0].mxu0 }
 0x155   : > { %v1276_v50 = vpop.f32.mrb[1].mxu0 }
 0x156   : > { %v1277_v27 = vadd.f32 %v1276_v50, %v1275_v38 }
 0x158   : > { %v978_v53 = vadd.f32 %v1277_v27, %v910_v26 }
 0x15a   : > { %v981_v54 = vsub.f32 0.0, %v978_v53 }
 0x15c   : > { %v982_v42 = vmul.f32 1.442695, %v981_v54 }
 0x15e   : > { %1385 = vpow2.f32 %v982_v42 }
 0x168   : > { %v1386_v47 = vpop.eup %1385 }
 0x169   : > { %v984_v51 = vadd.f32 1.0, %v1386_v47 }
 0x16b   : > { %1387 = vrcp.f32 %v984_v51 }
 0x175   : > { %v1388_v52 = vpop.eup %1387 }
 0x176   : > { %v986_v59 = vmul.f32 %v1388_v52, %v978_v53 }
 0x178   : > { %1096 = vmatmul.mubr.f32.vlgmr.msra.gmra.mrb[0].mxu1 %v986_v59 }
 0x24b   : > { %v1097_v7 = vpop.f32.mrb[0].mxu1 }
 0x24c   : > { %v1098_v61 = vadd.f32 %v1097_v7, %v1024_v6  ;;  %v1099_v10 = vpop.f32.mrb[1].mxu1 }
 0x24d   : > { %v1100_v11 = vadd.f32 %v1099_v10, %v1028_v60 }
 0x24e   : > { %v1102_v12 = vsub.f32 0.0, %v1098_v61 }
 0x24f   : > { %v1103_v48 = vsub.f32 0.0, %v1100_v11 }
 0x250   : > { %v1104_v49 = vmul.f32 1.442695, %v1102_v12 }
 0x251   : > { %v1106_v39 = vmul.f32 1.442695, %v1103_v48 }
 0x252   : > { %1389 = vpow2.f32 %v1104_v49 }
 0x253   : > { %1391 = vpow2.f32 %v1106_v39 }
 0x25c   : > { %v1390_v13 = vpop.eup %1389 }
 0x25d   : > { %v1392_v44 = vpop.eup %1391  ;;  %v1108_v55 = vadd.f32 1.0, %v1390_v13 }
 0x25e   : > { %v1109_v3 = vadd.f32 1.0, %v1392_v44 }
 0x25f   : > { %1393 = vrcp.f32 %v1108_v55 }
 0x260   : > { %1395 = vrcp.f32 %v1109_v3 }
 0x269   : > { %v1394_v16 = vpop.eup %1393 }
 0x26a   : > { %v1396_v18 = vpop.eup %1395 }
 0x26b   : > { %v1116_v19 = vcombine.low %v1394_v16, %v1396_v18 }
 0x26d   : > { %v1123_v29 = vrot.slane %v1116_v19, %v1122_v17 }
 0x26f   : > { %v1130_v62 = vrot.slane %v1123_v29, %v1122_v17 }
 0x271   : > { %1136 = vst.msk [vmem:[%s316_s10] sm:$0x3] %vm1134_vm1, %v1130_v62 }
 0x272 PF: > { %s19_s27 = sadd.s32 1, %s1403_s27  }
 0x273   : > { %p16_p4 = scmp.ge.s32.totalorder %s19_s27, 4  }
 0x275   :  { %18 = sbr.rel (!%p16_p4) target bundleno = 1 (0x1), region = 90 }

// kernel: cnn_encoder_forward.21
= control target key start
LH: loop header
LB: loop body
LE: loop exit
PB: predicated region body
PF: predicated region fallthrough
CT: control target
= control target key end

     0   :  { %v277_v3 = vmov 0.0|0.0   ;;  %v278_v6 = vmov 0.0   ;;  %vm279_vm0 = vmmov 0   ;;  %s378_s0 = inlined_call_operand.vmem [shape: bf16[2,16,128], index: 0, kind: input, shape index: {}]   ;;  %s379_s1 = inlined_call_operand.vmem [shape: f32[128,128], index: 1, kind: input, shape index: {}]   ;;  %s380_s2 = inlined_call_operand.vmem [shape: f32[1,128], index: 2, kind: input, shape index: {}]   ;;  %s381_s3 = inlined_call_operand.hbm [shape: f32[2,128], index: 3, kind: output, shape index: {}]  }
   0x1   :  { %v55_v0 = vld [vmem:[%s379_s1] sm:$0xff]  ;;  %v56_v1 = vld [vmem:[%s379_s1 + $0x8] sm:$0xff]  ;;  %v57_v2 = vld [vmem:[%s379_s1 + $0x10] sm:$0xff]  ;;  %225 = vmatprep.subr.bf16.mxu0 %v277_v3  ;;  %19 = vst [vmem:[#allocation2] sm:$0x3] %v278_v6  ;;  %222 = vmatprep.mubr.msk.f32.mxu0 %vm279_vm0, %v278_v6 }
   0x2   :  { %v226_v4 = vpack.c.bf16 %v56_v1, %v55_v0  ;;  %v58_v5 = vld [vmem:[%s379_s1 + $0x18] sm:$0xff]  ;;  %v59_v8 = vld [vmem:[%s379_s1 + $0x20] sm:$0xff]  ;;  %v60_v9 = vld [vmem:[%s379_s1 + $0x28] sm:$0xff] }
   0x3   :  { %v229_v7 = vpack.c.bf16 %v58_v5, %v57_v2  ;;  %v165_v10 = vld [vmem:[%s378_s0] sm:$0xff]   ;;  %v172_v11 = vld [vmem:[%s378_s0 + $0x8] sm:$0xff]  }
   0x4   :  { %227 = vmatpush3.bf16.msra.mxu0 %v226_v4  ;;  %v166_v12 = vunpack.c.l.bf16 %v165_v10  ;;  %v167_v13 = vunpack.c.h.bf16 %v165_v10  ;;  %v170_v14 = vunpack.c.l.bf16 %v172_v11 }
   0x5   :  { %228 = vmatprep.subr.bf16.mxu0 %v277_v3 }
   0x6   :  { %8 = vsyncpa [#allocation4], 0  ;;  %v232_v15 = vpack.c.bf16 %v60_v9, %v59_v8  ;;  %v171_v16 = vunpack.c.h.bf16 %v172_v11  ;;  %v61_v17 = vld [vmem:[%s379_s1 + $0x30] sm:$0xff]  ;;  %v62_v18 = vld [vmem:[%s379_s1 + $0x38] sm:$0xff]  ;;  %v29_v19 = vadd.f32 %v167_v13, %v166_v12  ;;  %vm45_vm1 = vcmask 1041409   ;;  %s280_s22 = smov [#allocation3]  }
   0x7   :  { %v235_v22 = vpack.c.bf16 %v62_v18, %v61_v17  ;;  %v63_v24 = vld [vmem:[%s379_s1 + $0x40] sm:$0xff]  ;;  %v64_v25 = vld [vmem:[%s379_s1 + $0x48] sm:$0xff]  ;;  %v65_v31 = vld [vmem:[%s379_s1 + $0x50] sm:$0xff]  ;;  %s155_s23 = sshll.u32 %s280_s22, 4  ;;  %s156_s23 = int_to_ptr.vmem [resolvable:$true] %s155_s23 }
   0x8   :  { %230 = vmatpush3.bf16.msra.mxu0 %v229_v7  ;;  %v36_v20 = vadd.f32 %v171_v16, %v170_v14  ;;  %v30_v21 = vrot.slane %v29_v19, 4  ;;  %v238_v29 = vpack.c.bf16 %v64_v25, %v63_v24  ;;  %v66_v32 = vld [vmem:[%s379_s1 + $0x58] sm:$0xff]  ;;  %v67_v38 = vld [vmem:[%s379_s1 + $0x60] sm:$0xff]  ;;  %v68_v39 = vld [vmem:[%s379_s1 + $0x68] sm:$0xff]  ;;  %p258_p1 = scmp.lt.s32.totalorder %s156_s23, %s156_s23 }
   0x9   :  { %231 = vmatprep.subr.bf16.mxu0 %v277_v3  ;;  %v241_v36 = vpack.c.bf16 %v66_v32, %v65_v31  ;;  %v20_v41 = vld [vmem:[#allocation2] sm:$0x3]  ;;  %v244_v43 = vpack.c.bf16 %v68_v39, %v67_v38  ;;  %v69_v45 = vld [vmem:[%s379_s1 + $0x70] sm:$0xff]  ;;  %v70_v46 = vld [vmem:[%s379_s1 + $0x78] sm:$0xff]  ;;  %s253_s1 = scalar_lea.vmem %s156_s23, 32 }
   0xa   :  { %v37_v23 = vrot.slane %v36_v20, 4  ;;  %v31_v26 = vadd.f32 %v30_v21, %v29_v19  ;;  %v247_v48 = vpack.c.bf16 %v70_v46, %v69_v45  ;;  %v163_v51 = vld [vmem:[%s380_s2] ss:$0 sm:$0xff]  ;;  %p254_p0 = scmp.ne.s32.totalorder %s156_s23, %s253_s1  ;;  %p259_p2 = scmp.lt.s32.totalorder %s253_s1, %s253_s1 }
   0xc   :  { %233 = vmatpush3.bf16.msra.mxu0 %v232_v15  ;;  %v38_v27 = vadd.f32 %v37_v23, %v36_v20  ;;  %v32_v28 = vrot.slane %v31_v26, 2  ;;  %p260_p3 = por %p259_p2, %p258_p1 }
   0xd   :  { %234 = vmatprep.subr.bf16.mxu0 %v277_v3 }
   0xe   :  { %v39_v30 = vrot.slane %v38_v27, 2  ;;  %v33_v33 = vadd.f32 %v32_v28, %v31_v26  ;;  %p261_p4 = pnand %p260_p3, %p254_p0 }
  0x10   :  { %236 = vmatpush3.bf16.msra.mxu0 %v235_v22  ;;  %v40_v34 = vadd.f32 %v39_v30, %v38_v27  ;;  %v34_v35 = vrot.slane %v33_v33, 1 }
  0x11   :  { %237 = vmatprep.subr.bf16.mxu0 %v277_v3 }
  0x12   :  { %v41_v37 = vrot.slane %v40_v34, 1  ;;  %v35_v40 = vadd.f32 %v34_v35, %v33_v33 }
  0x14   :  { %239 = vmatpush3.bf16.msra.mxu0 %v238_v29  ;;  %v42_v42 = vadd.f32 %v41_v37, %v40_v34 }
  0x15   :  { %240 = vmatprep.subr.bf16.mxu0 %v277_v3 }
  0x16   :  { %v46_v44 = vsel %vm45_vm1, %v42_v42, %v35_v40 }
  0x17   :  { %v48_v47 = vadd.f32 %v46_v44, %v20_v41 }
  0x18   :  { %242 = vmatpush3.bf16.msra.mxu0 %v241_v36 }
  0x19   :  { %243 = vmatprep.subr.bf16.mxu0 %v277_v3  ;;  %49 = vst [vmem:[#allocation2] sm:$0x3] %v48_v47 }
  0x1c   :  { %245 = vmatpush3.bf16.msra.mxu0 %v244_v43 }
  0x1d   :  { %246 = vmatprep.subr.bf16.mxu0 %v277_v3 }
  0x20   :  { %248 = vmatpush3.bf16.msra.mxu0 %v247_v48  ;;  %v53_v49 = vld [vmem:[#allocation2] sm:$0x3] }
  0x21   :  { %v54_v50 = vmul.f32 0.0625, %v53_v49 }
  0x23   :  { %223 = vmatmul.mubr.f32.vlgmr.msra.gmra.mrb[0].mxu0 %v54_v50 }
  0xf6   :  { %v144_v52 = vpop.f32.mrb[0].mxu0 }
  0xf7   :  { %v145_v53 = vadd.f32 %v163_v51, %v144_v52  ;;  %v224_v54 = vpop.f32.mrb[1].mxu0 }
  0xf9   :  { %148 = vst [vmem:[#allocation3] sm:$0x3] %v145_v53 }
  0xfa   :  { %264 = shalt.err (!%p261_p4)
}
  0xfb   :  { %s265_s26 = scalar_lea.hbm %s381_s3, 32 }
  0xfc   :  { %p266_p5 = scmp.ne.s32.totalorder %s381_s3, %s265_s26  ;;  %p269_p6 = scmp.lt.u32.totalorder %s265_s26, %s381_s3 }
  0xfe   :  { %p271_p7 = pnand %p269_p6, %p266_p5 }
 0x100   :  { %274 = shalt.err (!%p271_p7)
}
 0x101   :  { %158 = dma.vmem_to_hbm [thread:$0]  %s156_s23, 32, %s381_s3, [#allocation4]  }
 0x102   :  { %275 = dma.done.wait [#allocation4], 32  }
 0x103   :  { %276 = vsyncadd [#allocation4], 4294967264 }
 0x104   :  { %162 = vsyncpa [#allocation4], 1 }

</bundles_post_ra>
